<compile_context>
chip_gen: v5e
topology: v5e:2x2
jax: 0.10.0
libtpu: 0.0.40
codegen_flags: <defaults>
</compile_context>

<pallas_src>
import jax
import jax.numpy as jnp
from jax.experimental import pallas as pl
from jax.experimental.pallas import tpu as pltpu


# ---------------------------------------------------------------------------
# Fused whole-net kernel
# ---------------------------------------------------------------------------
def _net_kernel(x_ref, t1_ref, b1c_ref, t2_ref, b2c_ref,
                w1_ref, b1f_ref, w2_ref, b2f_ref, o_ref):
    """Full forward pass for one batch tile.

    x_ref : (28, bt, 28) bf16  images, layout (H, n, W); n in sublanes
    t1_ref: (140, 256) bf16    conv1 band: rows=(kh, w_in), cols=(par*128 + w_pool*10 + c_out)
    t2_ref: (640, 256) bf16    conv2 band: rows=(kh*128 + w1*10 + c_in), cols=(par*128 + w_pool*20 + c_out)
    w1_ref: (512, 50)  bf16    fc1, rows at (h2*128 + w2*20 + c2); padding rows zero
    w2_ref: (50, 128)  bf16    fc2, classes zero-padded to 128 lanes
    b*_ref: f32 bias rows (128-lane padded); b2f carries -1e30 on the 118 padding lanes
    o_ref : (bt, 128)  f32     log-probs (first 10 lanes valid)
    """
    f32, bf16 = jnp.float32, jnp.bfloat16
    bt = x_ref.shape[1]

    # ---- conv1 (1->10, 5x5) + maxpool 2x2 + bias + relu --------------------
    x = x_ref[...]                                                     # (28, bt, 28) bf16
    l1 = jnp.concatenate([x[kh:kh + 24] for kh in range(5)], axis=-1)  # (24, bt, 140)
    l1 = l1.reshape(24 * bt, 140)                                      # rows = (r, n)
    m1 = jnp.dot(l1, t1_ref[...], preferred_element_type=f32)          # (24*bt, 256)
    m1 = m1.reshape(24, bt, 256).reshape(12, 2, bt, 256)
    m1 = jnp.max(m1, axis=1)                                           # pool rows
    a1 = jnp.maximum(m1[..., :128], m1[..., 128:])                     # pool cols (vreg-aligned)
    a1 = jnp.maximum(a1 + b1c_ref[...], 0.0).astype(bf16)              # (12, bt, 128)

    # ---- conv2 (10->20, 5x5) + maxpool 2x2 + bias + relu -------------------
    l2 = jnp.concatenate([a1[kh:kh + 8] for kh in range(5)], axis=-1)  # (8, bt, 640)
    l2 = l2.reshape(8 * bt, 640)
    m2 = jnp.dot(l2, t2_ref[...], preferred_element_type=f32)          # (8*bt, 256)
    m2 = m2.reshape(8, bt, 256).reshape(4, 2, bt, 256)
    m2 = jnp.max(m2, axis=1)                                           # pool rows
    a2 = jnp.maximum(m2[..., :128], m2[..., 128:])                     # pool cols (vreg-aligned)
    a2 = jnp.maximum(a2 + b2c_ref[...], 0.0).astype(bf16)              # (4, bt, 128)

    # ---- flatten to (bt, 512): lane = h2*128 + w2*20 + c2 (128-aligned) ----
    xf = jnp.concatenate([a2[h] for h in range(4)], axis=-1)

    # ---- fc1 + relu, fc2 (padded to 128 classes), log-softmax (f32) --------
    h = jnp.dot(xf, w1_ref[...], preferred_element_type=f32) + b1f_ref[...]
    h = jnp.maximum(h, 0.0).astype(bf16)                               # (bt, 50)
    logits = jnp.dot(h, w2_ref[...], preferred_element_type=f32) + b2f_ref[...]
    m = jnp.max(logits, axis=-1, keepdims=True)
    s = logits - m
    lse = jnp.log(jnp.sum(jnp.exp(s), axis=-1, keepdims=True))
    o_ref[...] = s - lse


# ---------------------------------------------------------------------------
# One-time parameter preparation (wrapper-side XLA)
# ---------------------------------------------------------------------------
def _conv1_band(w):
    """(10, 1, 5, 5) -> (5*28, 2*128) banded GEMM matrix (128-lane parity stride)."""
    kh, kw, co, cp, par = jnp.meshgrid(
        jnp.arange(5), jnp.arange(5), jnp.arange(10),
        jnp.arange(12), jnp.arange(2), indexing="ij")
    rows = kh * 28 + (2 * cp + par) + kw          # (kh, w_in = w_out + kw)
    cols = par * 128 + cp * 10 + co               # (parity, pooled col, c_out)
    vals = w[co, 0, kh, kw]
    return jnp.zeros((140, 256), jnp.float32).at[rows, cols].set(vals)


def _conv2_band(w):
    """(20, 10, 5, 5) -> (5*128, 2*128) banded GEMM matrix (128-lane strides)."""
    kh, kw, ci, co, qp, par = jnp.meshgrid(
        jnp.arange(5), jnp.arange(5), jnp.arange(10), jnp.arange(20),
        jnp.arange(4), jnp.arange(2), indexing="ij")
    rows = kh * 128 + ((2 * qp + par) + kw) * 10 + ci
    cols = par * 128 + qp * 20 + co
    vals = w[co, ci, kh, kw]
    return jnp.zeros((640, 256), jnp.float32).at[rows, cols].set(vals)


def net_forward(x_nchw, p, *, block_n=128):
    """Eval-mode forward of the PyTorch `Net` via one fused Pallas kernel."""
    n = x_nchw.shape[0]
    # Batch tile: multiple of 32 so all GEMM M dims (24*bt, 8*bt, bt) stay
    # 256-friendly; clamp so tiny batches don't over-pad.  (For v7x's smaller
    # VMEM keep block_n <= 256.)
    bt = max(32, min(block_n, ((n + 31) // 32) * 32) // 32 * 32)
    npad = ((n + bt - 1) // bt) * bt

    # NCHW (C=1) -> (H, N, W) in bf16: batch lands in the block's sublane dim;
    # spatial shifts inside the kernel touch only leading dims; bf16 halves
    # the streamed-image DMA.
    x = x_nchw[:, 0, :, :].astype(jnp.float32)
    x = jnp.pad(x, ((0, npad - n), (0, 0), (0, 0)))
    x_hnw = jnp.transpose(x, (1, 0, 2)).astype(jnp.bfloat16)   # (28, npad, 28)

    t1 = _conv1_band(p["conv1_w"]).astype(jnp.bfloat16)
    t2 = _conv2_band(p["conv2_w"]).astype(jnp.bfloat16)
    b1c = jnp.zeros((1, 128), jnp.float32).at[0, :120].set(jnp.tile(p["conv1_b"], 12))
    b2c = jnp.zeros((1, 128), jnp.float32).at[0, :80].set(jnp.tile(p["conv2_b"], 4))
    # fc1 rows: PyTorch flatten order (c, h, w) -> kernel lane (h*128 + w*20 + c),
    # padded to 512 rows (padding rows hit zero activation lanes).
    w1_chw = p["fc1_w"].T.reshape(20, 4, 4, 50)                # (c, h, w, 50)
    ci, hi, wi = jnp.meshgrid(jnp.arange(20), jnp.arange(4), jnp.arange(4),
                              indexing="ij")
    w1_rows = (hi * 128 + wi * 20 + ci).reshape(-1)
    w1p = jnp.zeros((512, 50), jnp.float32).at[w1_rows].set(w1_chw.reshape(320, 50))
    w1p = w1p.astype(jnp.bfloat16)
    b1f = p["fc1_b"].reshape(1, 50).astype(jnp.float32)
    # fc2 padded to a lane-dense 128 classes; padded logits get -1e30 bias.
    w2p = jnp.zeros((50, 128), jnp.float32).at[:, :10].set(p["fc2_w"].T)
    w2p = w2p.astype(jnp.bfloat16)
    b2f = jnp.full((1, 128), -1e30, jnp.float32).at[0, :10].set(p["fc2_b"])

    full = lambda i: (0, 0)
    out = pl.pallas_call(
        _net_kernel,
        out_shape=jax.ShapeDtypeStruct((npad, 128), jnp.float32),
        grid=(npad // bt,),
        in_specs=[
            pl.BlockSpec((28, bt, 28), lambda i: (0, i, 0)),   # images (bf16)
            pl.BlockSpec((140, 256), full),                    # conv1 band
            pl.BlockSpec((1, 128), full),                      # conv1 bias
            pl.BlockSpec((640, 256), full),                    # conv2 band
            pl.BlockSpec((1, 128), full),                      # conv2 bias
            pl.BlockSpec((512, 50), full),                     # fc1 weight
            pl.BlockSpec((1, 50), full),                       # fc1 bias
            pl.BlockSpec((50, 128), full),                     # fc2 weight (padded)
            pl.BlockSpec((1, 128), full),                      # fc2 bias (padded)
        ],
        out_specs=pl.BlockSpec((bt, 128), lambda i: (i, 0)),
        compiler_params=pltpu.CompilerParams(
            dimension_semantics=("parallel",),
            vmem_limit_bytes=64 * 1024 * 1024),
    )(x_hnw, t1, b1c, t2, b2c, w1p, b1f, w2p, b2f)
    return out[:n, :10]


# ---------------------------------------------------------------------------
# Parameters and pure-JAX reference (PyTorch eval-mode semantics)
# ---------------------------------------------------------------------------
def init_params(key):
    ks = jax.random.split(key, 8)
    p = {}
    # PyTorch layouts: conv (Cout, Cin, kH, kW); linear (out, in)
    p["conv1_w"] = 0.10 * jax.random.normal(ks[0], (10, 1, 5, 5), jnp.float32)
    p["conv1_b"] = 0.10 * jax.random.normal(ks[1], (10,), jnp.float32)
    p["conv2_w"] = 0.05 * jax.random.normal(ks[2], (20, 10, 5, 5), jnp.float32)
    p["conv2_b"] = 0.05 * jax.random.normal(ks[3], (20,), jnp.float32)
    p["fc1_w"] = 0.05 * jax.random.normal(ks[4], (50, 320), jnp.float32)
    p["fc1_b"] = 0.05 * jax.random.normal(ks[5], (50,), jnp.float32)
    p["fc2_w"] = 0.10 * jax.random.normal(ks[6], (10, 50), jnp.float32)
    p["fc2_b"] = 0.10 * jax.random.normal(ks[7], (10,), jnp.float32)
    return p


def ref_forward(x_nchw, p):
    n = x_nchw.shape[0]
    x = x_nchw[:, 0]                                             # (N, 28, 28)
    c1 = jnp.zeros((n, 10, 24, 24), jnp.float32)
    for kh in range(5):
        for kw in range(5):
            c1 = c1 + (p["conv1_w"][:, 0, kh, kw][None, :, None, None]
                       * x[:, None, kh:kh + 24, kw:kw + 24])
    c1 = c1 + p["conv1_b"][None, :, None, None]
    a1 = jnp.maximum(jnp.max(c1.reshape(n, 10, 12, 2, 12, 2), axis=(3, 5)), 0.0)
    c2 = jnp.zeros((n, 20, 8, 8), jnp.float32)
    for kh in range(5):
        for kw in range(5):
            c2 = c2 + jnp.einsum("ncij,oc->noij",
                                 a1[:, :, kh:kh + 8, kw:kw + 8],
                                 p["conv2_w"][:, :, kh, kw])
    c2 = c2 + p["conv2_b"][None, :, None, None]
    a2 = jnp.maximum(jnp.max(c2.reshape(n, 20, 4, 2, 4, 2), axis=(3, 5)), 0.0)
    xf = a2.reshape(n, 320)                                      # NCHW .view(-1, 320)
    h = jnp.maximum(xf @ p["fc1_w"].T + p["fc1_b"], 0.0)
    logits = h @ p["fc2_w"].T + p["fc2_b"]
    return jax.nn.log_softmax(logits, axis=-1)


if __name__ == "__main__":
    key = jax.random.PRNGKey(0)
    pkey, xkey = jax.random.split(key)
    params = init_params(pkey)
    # MNIST-shaped input (28x28, 1 channel, required by the 320-wide flatten);
    # batch 30 is not a multiple of the 32-row tile, so the padding path runs.
    x = jax.random.normal(xkey, (30, 1, 28, 28), jnp.float32)

    out = jax.block_until_ready(jax.jit(net_forward)(x, params))

    assert out.shape == (30, 10), out.shape
    row_sums = jnp.sum(jnp.exp(out), axis=1)                 # log-softmax rows sum to 1
    assert bool(jnp.all(jnp.abs(row_sums - 1.0) < 1e-3)), row_sums

    ref = jax.jit(ref_forward)(x, params)
    err = float(jnp.max(jnp.abs(out - ref)))                 # bf16-MXU vs f32 reference
    assert err < 1e-1, f"max |kernel - reference| = {err}"
    print("KERNEL_OK")
</pallas_src>

<mosaic_0001>
module attributes {stable_mosaic.version = 11 : i64} {
  func.func @_net_kernel(%arg0: i32, %arg1: memref<28x32x28xbf16, #tpu.memory_space<vmem>>, %arg2: memref<140x256xbf16, #tpu.memory_space<vmem>>, %arg3: memref<1x128xf32, #tpu.memory_space<vmem>>, %arg4: memref<640x256xbf16, #tpu.memory_space<vmem>>, %arg5: memref<1x128xf32, #tpu.memory_space<vmem>>, %arg6: memref<512x50xbf16, #tpu.memory_space<vmem>>, %arg7: memref<1x50xf32, #tpu.memory_space<vmem>>, %arg8: memref<50x128xbf16, #tpu.memory_space<vmem>>, %arg9: memref<1x128xf32, #tpu.memory_space<vmem>>, %arg10: memref<32x128xf32, #tpu.memory_space<vmem>>) attributes {dimension_semantics = [#tpu.dimension_semantics<parallel>], iteration_bounds = array<i64: 1>, scalar_prefetch = 0 : i64, scratch_operands = 0 : i64, tpu.core_type = #tpu.core_type<tc>, window_params = [{transform_indices = @transform_0, window_bounds = array<i64: 28, 32, 28>}, {pipeline_mode = #tpu.pipeline_mode<synchronous>, transform_indices = @transform_1, window_bounds = array<i64: 140, 256>}, {pipeline_mode = #tpu.pipeline_mode<synchronous>, transform_indices = @transform_2, window_bounds = array<i64: 1, 128>}, {pipeline_mode = #tpu.pipeline_mode<synchronous>, transform_indices = @transform_3, window_bounds = array<i64: 640, 256>}, {pipeline_mode = #tpu.pipeline_mode<synchronous>, transform_indices = @transform_4, window_bounds = array<i64: 1, 128>}, {pipeline_mode = #tpu.pipeline_mode<synchronous>, transform_indices = @transform_5, window_bounds = array<i64: 512, 50>}, {pipeline_mode = #tpu.pipeline_mode<synchronous>, transform_indices = @transform_6, window_bounds = array<i64: 1, 50>}, {pipeline_mode = #tpu.pipeline_mode<synchronous>, transform_indices = @transform_7, window_bounds = array<i64: 50, 128>}, {pipeline_mode = #tpu.pipeline_mode<synchronous>, transform_indices = @transform_8, window_bounds = array<i64: 1, 128>}, {transform_indices = @transform_9, window_bounds = array<i64: 32, 128>}]} {
    %c0 = arith.constant 0 : index
    %c0_0 = arith.constant 0 : index
    %c0_1 = arith.constant 0 : index
    %0 = vector.load %arg1[%c0, %c0_0, %c0_1] : memref<28x32x28xbf16, #tpu.memory_space<vmem>>, vector<28x32x28xbf16>
    %1 = vector.extract_strided_slice %0 {offsets = [0, 0, 0], sizes = [24, 32, 28], strides = [1, 1, 1]} : vector<28x32x28xbf16> to vector<24x32x28xbf16>
    %2 = vector.extract_strided_slice %0 {offsets = [1, 0, 0], sizes = [24, 32, 28], strides = [1, 1, 1]} : vector<28x32x28xbf16> to vector<24x32x28xbf16>
    %3 = vector.extract_strided_slice %0 {offsets = [2, 0, 0], sizes = [24, 32, 28], strides = [1, 1, 1]} : vector<28x32x28xbf16> to vector<24x32x28xbf16>
    %4 = vector.extract_strided_slice %0 {offsets = [3, 0, 0], sizes = [24, 32, 28], strides = [1, 1, 1]} : vector<28x32x28xbf16> to vector<24x32x28xbf16>
    %5 = vector.extract_strided_slice %0 {offsets = [4, 0, 0], sizes = [24, 32, 28], strides = [1, 1, 1]} : vector<28x32x28xbf16> to vector<24x32x28xbf16>
    %6 = tpu.concatenate %1, %2, %3, %4, %5 in 2 : vector<24x32x28xbf16>, vector<24x32x28xbf16>, vector<24x32x28xbf16>, vector<24x32x28xbf16>, vector<24x32x28xbf16> -> vector<24x32x140xbf16>
    %7 = vector.shape_cast %6 : vector<24x32x140xbf16> to vector<768x140xbf16>
    %c0_2 = arith.constant 0 : index
    %c0_3 = arith.constant 0 : index
    %8 = vector.load %arg2[%c0_2, %c0_3] : memref<140x256xbf16, #tpu.memory_space<vmem>>, vector<140x256xbf16>
    %cst = arith.constant dense<0.000000e+00> : vector<768x256xf32>
    %9 = tpu.matmul %7, %8, %cst {dimension_numbers = #tpu.dot_dimension_numbers<[1], [0], [0], [1], [0, 0, 1, 1], [], []>} : vector<768x140xbf16>, vector<140x256xbf16>, vector<768x256xf32> -> vector<768x256xf32>
    %10 = vector.shape_cast %9 : vector<768x256xf32> to vector<24x32x256xf32>
    %11 = vector.shape_cast %10 : vector<24x32x256xf32> to vector<12x2x32x256xf32>
    %cst_4 = arith.constant dense<0xFF800000> : vector<12x32x256xf32>
    %12 = vector.multi_reduction <maximumf>, %11, %cst_4 [1] : vector<12x2x32x256xf32> to vector<12x32x256xf32>
    %13 = vector.extract_strided_slice %12 {offsets = [0, 0, 0], sizes = [12, 32, 128], strides = [1, 1, 1]} : vector<12x32x256xf32> to vector<12x32x128xf32>
    %14 = vector.extract_strided_slice %12 {offsets = [0, 0, 128], sizes = [12, 32, 128], strides = [1, 1, 1]} : vector<12x32x256xf32> to vector<12x32x128xf32>
    %15 = arith.maximumf %13, %14 : vector<12x32x128xf32>
    %c0_5 = arith.constant 0 : index
    %c0_6 = arith.constant 0 : index
    %16 = vector.load %arg3[%c0_5, %c0_6] : memref<1x128xf32, #tpu.memory_space<vmem>>, vector<1x128xf32>
    %17 = vector.shape_cast %16 : vector<1x128xf32> to vector<1x1x128xf32>
    %18 = vector.broadcast %17 : vector<1x1x128xf32> to vector<12x32x128xf32>
    %19 = arith.addf %15, %18 : vector<12x32x128xf32>
    %cst_7 = arith.constant 0.000000e+00 : f32
    %20 = vector.broadcast %cst_7 : f32 to vector<12x32x128xf32>
    %21 = arith.maximumf %19, %20 : vector<12x32x128xf32>
    %22 = arith.truncf %21 : vector<12x32x128xf32> to vector<12x32x128xbf16>
    %23 = vector.extract_strided_slice %22 {offsets = [0, 0, 0], sizes = [8, 32, 128], strides = [1, 1, 1]} : vector<12x32x128xbf16> to vector<8x32x128xbf16>
    %24 = vector.extract_strided_slice %22 {offsets = [1, 0, 0], sizes = [8, 32, 128], strides = [1, 1, 1]} : vector<12x32x128xbf16> to vector<8x32x128xbf16>
    %25 = vector.extract_strided_slice %22 {offsets = [2, 0, 0], sizes = [8, 32, 128], strides = [1, 1, 1]} : vector<12x32x128xbf16> to vector<8x32x128xbf16>
    %26 = vector.extract_strided_slice %22 {offsets = [3, 0, 0], sizes = [8, 32, 128], strides = [1, 1, 1]} : vector<12x32x128xbf16> to vector<8x32x128xbf16>
    %27 = vector.extract_strided_slice %22 {offsets = [4, 0, 0], sizes = [8, 32, 128], strides = [1, 1, 1]} : vector<12x32x128xbf16> to vector<8x32x128xbf16>
    %28 = tpu.concatenate %23, %24, %25, %26, %27 in 2 : vector<8x32x128xbf16>, vector<8x32x128xbf16>, vector<8x32x128xbf16>, vector<8x32x128xbf16>, vector<8x32x128xbf16> -> vector<8x32x640xbf16>
    %29 = vector.shape_cast %28 : vector<8x32x640xbf16> to vector<256x640xbf16>
    %c0_8 = arith.constant 0 : index
    %c0_9 = arith.constant 0 : index
    %30 = vector.load %arg4[%c0_8, %c0_9] : memref<640x256xbf16, #tpu.memory_space<vmem>>, vector<640x256xbf16>
    %cst_10 = arith.constant dense<0.000000e+00> : vector<256x256xf32>
    %31 = tpu.matmul %29, %30, %cst_10 {dimension_numbers = #tpu.dot_dimension_numbers<[1], [0], [0], [1], [0, 0, 1, 1], [], []>} : vector<256x640xbf16>, vector<640x256xbf16>, vector<256x256xf32> -> vector<256x256xf32>
    %32 = vector.shape_cast %31 : vector<256x256xf32> to vector<8x32x256xf32>
    %33 = vector.shape_cast %32 : vector<8x32x256xf32> to vector<4x2x32x256xf32>
    %cst_11 = arith.constant dense<0xFF800000> : vector<4x32x256xf32>
    %34 = vector.multi_reduction <maximumf>, %33, %cst_11 [1] : vector<4x2x32x256xf32> to vector<4x32x256xf32>
    %35 = vector.extract_strided_slice %34 {offsets = [0, 0, 0], sizes = [4, 32, 128], strides = [1, 1, 1]} : vector<4x32x256xf32> to vector<4x32x128xf32>
    %36 = vector.extract_strided_slice %34 {offsets = [0, 0, 128], sizes = [4, 32, 128], strides = [1, 1, 1]} : vector<4x32x256xf32> to vector<4x32x128xf32>
    %37 = arith.maximumf %35, %36 : vector<4x32x128xf32>
    %c0_12 = arith.constant 0 : index
    %c0_13 = arith.constant 0 : index
    %38 = vector.load %arg5[%c0_12, %c0_13] : memref<1x128xf32, #tpu.memory_space<vmem>>, vector<1x128xf32>
    %39 = vector.shape_cast %38 : vector<1x128xf32> to vector<1x1x128xf32>
    %40 = vector.broadcast %39 : vector<1x1x128xf32> to vector<4x32x128xf32>
    %41 = arith.addf %37, %40 : vector<4x32x128xf32>
    %cst_14 = arith.constant 0.000000e+00 : f32
    %42 = vector.broadcast %cst_14 : f32 to vector<4x32x128xf32>
    %43 = arith.maximumf %41, %42 : vector<4x32x128xf32>
    %44 = arith.truncf %43 : vector<4x32x128xf32> to vector<4x32x128xbf16>
    %45 = vector.extract_strided_slice %44 {offsets = [0, 0, 0], sizes = [1, 32, 128], strides = [1, 1, 1]} : vector<4x32x128xbf16> to vector<1x32x128xbf16>
    %46 = vector.shape_cast %45 : vector<1x32x128xbf16> to vector<32x128xbf16>
    %47 = vector.extract_strided_slice %44 {offsets = [1, 0, 0], sizes = [1, 32, 128], strides = [1, 1, 1]} : vector<4x32x128xbf16> to vector<1x32x128xbf16>
    %48 = vector.shape_cast %47 : vector<1x32x128xbf16> to vector<32x128xbf16>
    %49 = vector.extract_strided_slice %44 {offsets = [2, 0, 0], sizes = [1, 32, 128], strides = [1, 1, 1]} : vector<4x32x128xbf16> to vector<1x32x128xbf16>
    %50 = vector.shape_cast %49 : vector<1x32x128xbf16> to vector<32x128xbf16>
    %51 = vector.extract_strided_slice %44 {offsets = [3, 0, 0], sizes = [1, 32, 128], strides = [1, 1, 1]} : vector<4x32x128xbf16> to vector<1x32x128xbf16>
    %52 = vector.shape_cast %51 : vector<1x32x128xbf16> to vector<32x128xbf16>
    %53 = tpu.concatenate %46, %48, %50, %52 in 1 : vector<32x128xbf16>, vector<32x128xbf16>, vector<32x128xbf16>, vector<32x128xbf16> -> vector<32x512xbf16>
    %c0_15 = arith.constant 0 : index
    %c0_16 = arith.constant 0 : index
    %54 = vector.load %arg6[%c0_15, %c0_16] : memref<512x50xbf16, #tpu.memory_space<vmem>>, vector<512x50xbf16>
    %cst_17 = arith.constant dense<0.000000e+00> : vector<32x50xf32>
    %55 = tpu.matmul %53, %54, %cst_17 {dimension_numbers = #tpu.dot_dimension_numbers<[1], [0], [0], [1], [0, 0, 1, 1], [], []>} : vector<32x512xbf16>, vector<512x50xbf16>, vector<32x50xf32> -> vector<32x50xf32>
    %c0_18 = arith.constant 0 : index
    %c0_19 = arith.constant 0 : index
    %56 = vector.load %arg7[%c0_18, %c0_19] : memref<1x50xf32, #tpu.memory_space<vmem>>, vector<1x50xf32>
    %57 = vector.broadcast %56 : vector<1x50xf32> to vector<32x50xf32>
    %58 = arith.addf %55, %57 : vector<32x50xf32>
    %cst_20 = arith.constant 0.000000e+00 : f32
    %59 = vector.broadcast %cst_20 : f32 to vector<32x50xf32>
    %60 = arith.maximumf %58, %59 : vector<32x50xf32>
    %61 = arith.truncf %60 : vector<32x50xf32> to vector<32x50xbf16>
    %c0_21 = arith.constant 0 : index
    %c0_22 = arith.constant 0 : index
    %62 = vector.load %arg8[%c0_21, %c0_22] : memref<50x128xbf16, #tpu.memory_space<vmem>>, vector<50x128xbf16>
    %cst_23 = arith.constant dense<0.000000e+00> : vector<32x128xf32>
    %63 = tpu.matmul %61, %62, %cst_23 {dimension_numbers = #tpu.dot_dimension_numbers<[1], [0], [0], [1], [0, 0, 1, 1], [], []>} : vector<32x50xbf16>, vector<50x128xbf16>, vector<32x128xf32> -> vector<32x128xf32>
    %c0_24 = arith.constant 0 : index
    %c0_25 = arith.constant 0 : index
    %64 = vector.load %arg9[%c0_24, %c0_25] : memref<1x128xf32, #tpu.memory_space<vmem>>, vector<1x128xf32>
    %65 = vector.broadcast %64 : vector<1x128xf32> to vector<32x128xf32>
    %66 = arith.addf %63, %65 : vector<32x128xf32>
    %cst_26 = arith.constant dense<0xFF800000> : vector<32xf32>
    %67 = vector.multi_reduction <maximumf>, %66, %cst_26 [1] : vector<32x128xf32> to vector<32xf32>
    %68 = vector.shape_cast %67 : vector<32xf32> to vector<32x1xf32>
    %69 = vector.broadcast %68 : vector<32x1xf32> to vector<32x128xf32>
    %70 = arith.subf %66, %69 : vector<32x128xf32>
    %71 = math.exp %70 : vector<32x128xf32>
    %cst_27 = arith.constant dense<0.000000e+00> : vector<32xf32>
    %72 = vector.multi_reduction <add>, %71, %cst_27 [1] : vector<32x128xf32> to vector<32xf32>
    %73 = vector.shape_cast %72 : vector<32xf32> to vector<32x1xf32>
    %74 = math.log %73 : vector<32x1xf32>
    %75 = vector.broadcast %74 : vector<32x1xf32> to vector<32x128xf32>
    %76 = arith.subf %70, %75 : vector<32x128xf32>
    %c0_28 = arith.constant 0 : index
    %c0_29 = arith.constant 0 : index
    %77 = vector.load %arg10[%c0_28, %c0_29] : memref<32x128xf32, #tpu.memory_space<vmem>>, vector<32x128xf32>
    tpu.vector_store %arg10[%c0_28, %c0_29], %76 {strides = array<i32>} : memref<32x128xf32, #tpu.memory_space<vmem>>, vector<32x128xf32>,
    return
  }
  func.func @transform_0(%arg0: i32) -> (i32, i32, i32) {
    %c0_i32 = arith.constant 0 : i32
    %c0_i32_0 = arith.constant 0 : i32
    %c0_i32_1 = arith.constant 0 : i32
    return %c0_i32, %arg0, %c0_i32_0 : i32, i32, i32
  }
  func.func @transform_1(%arg0: i32) -> (i32, i32) {
    %c0_i32 = arith.constant 0 : i32
    %c0_i32_0 = arith.constant 0 : i32
    %c0_i32_1 = arith.constant 0 : i32
    return %c0_i32, %c0_i32_0 : i32, i32
  }
  func.func @transform_2(%arg0: i32) -> (i32, i32) {
    %c0_i32 = arith.constant 0 : i32
    %c0_i32_0 = arith.constant 0 : i32
    %c0_i32_1 = arith.constant 0 : i32
    return %c0_i32, %c0_i32_0 : i32, i32
  }
  func.func @transform_3(%arg0: i32) -> (i32, i32) {
    %c0_i32 = arith.constant 0 : i32
    %c0_i32_0 = arith.constant 0 : i32
    %c0_i32_1 = arith.constant 0 : i32
    return %c0_i32, %c0_i32_0 : i32, i32
  }
  func.func @transform_4(%arg0: i32) -> (i32, i32) {
    %c0_i32 = arith.constant 0 : i32
    %c0_i32_0 = arith.constant 0 : i32
    %c0_i32_1 = arith.constant 0 : i32
    return %c0_i32, %c0_i32_0 : i32, i32
  }
  func.func @transform_5(%arg0: i32) -> (i32, i32) {
    %c0_i32 = arith.constant 0 : i32
    %c0_i32_0 = arith.constant 0 : i32
    %c0_i32_1 = arith.constant 0 : i32
    return %c0_i32, %c0_i32_0 : i32, i32
  }
  func.func @transform_6(%arg0: i32) -> (i32, i32) {
    %c0_i32 = arith.constant 0 : i32
    %c0_i32_0 = arith.constant 0 : i32
    %c0_i32_1 = arith.constant 0 : i32
    return %c0_i32, %c0_i32_0 : i32, i32
  }
  func.func @transform_7(%arg0: i32) -> (i32, i32) {
    %c0_i32 = arith.constant 0 : i32
    %c0_i32_0 = arith.constant 0 : i32
    %c0_i32_1 = arith.constant 0 : i32
    return %c0_i32, %c0_i32_0 : i32, i32
  }
  func.func @transform_8(%arg0: i32) -> (i32, i32) {
    %c0_i32 = arith.constant 0 : i32
    %c0_i32_0 = arith.constant 0 : i32
    %c0_i32_1 = arith.constant 0 : i32
    return %c0_i32, %c0_i32_0 : i32, i32
  }
  func.func @transform_9(%arg0: i32) -> (i32, i32) {
    %c0_i32 = arith.constant 0 : i32
    %c0_i32_0 = arith.constant 0 : i32
    return %arg0, %c0_i32 : i32, i32
  }
}

</mosaic_0001>

<bundles_post_ra>
// kernel: net_forward.1
= control target key start
LH: loop header
LB: loop body
LE: loop exit
PB: predicated region body
PF: predicated region fallthrough
CT: control target
= control target key end

     0   :  { %s5996_s13 = smov 84   ;;  %s5997_s14 = smov 28   ;;  %vm1496_vm0 = vcmask 1045504   ;;  %vm809_vm1 = vcmask 228352   ;;  %vm954_vm2 = vcmask 457728   ;;  %vm1399_vm3 = vcmask 97280   ;;  %s10169_s0 = inlined_call_operand.vmem [shape: bf16[28,32,28], index: 0, kind: input, shape index: {}]   ;;  %s10170_s1 = inlined_call_operand.vmem [shape: bf16[140,256], index: 1, kind: input, shape index: {}]   ;;  %s10171_s3 = inlined_call_operand.vmem [shape: bf16[640,256], index: 3, kind: input, shape index: {}]   ;;  %s10172_s2 = inlined_call_operand.vmem [shape: f32[1,128], index: 2, kind: input, shape index: {}]   ;;  %s10173_s5 = inlined_call_operand.vmem [shape: bf16[512,50], index: 5, kind: input, shape index: {}]   ;;  %s10174_s4 = inlined_call_operand.vmem [shape: f32[1,128], index: 4, kind: input, shape index: {}]   ;;  %s10175_s6 = inlined_call_operand.vmem [shape: f32[1,50], index: 6, kind: input, shape index: {}]   ;;  %s10176_s8 = inlined_call_operand.vmem [shape: f32[1,128], index: 8, kind: input, shape index: {}]   ;;  %s10177_s7 = inlined_call_operand.vmem [shape: bf16[50,128], index: 7, kind: input, shape index: {}]   ;;  %s10178_s9 = inlined_call_operand.vmem [shape: f32[32,128], index: 9, kind: output, shape index: {}]  }
   0x1   :  { %v6053_v0 = vld [vmem:[%s10169_s0 + $0x30] sm:$0xff]  ;;  %v6067_v2 = vld [vmem:[%s10169_s0 + $0x18] sm:$0xff]  ;;  %v6074_v3 = vld [vmem:[%s10169_s0 + $0x40] sm:$0xff]  ;;  %s5998_s23 = smov 112   ;;  %s5999_s24 = smov 56   ;;  %vm1051_vm4 = vcmask 687104  }
   0x2   :  { %v6058_v1 = vld [vmem:[%s10169_s0 + $0x10] sm:$0xff]  ;;  %607 = vrot.lane.b32.xlu1 %v6053_v0, %s5996_s13  ;;  %397 = vrot.lane.b32.xlu2 %v6067_v2, %s5997_s14  ;;  %v6079_v4 = vld [vmem:[%s10169_s0 + $0x20] sm:$0xff]  ;;  %vm1148_vm5 = vcmask 916480   ;;  %vm4834_vm6 = vcmask 1040384   ;;  %vm4827_vm7 = vcmask 408576  }
   0x3   :  { %395 = vrot.lane.b32.xlu0 %v6058_v1, %s5997_s14  ;;  %v6084_v5 = vld [vmem:[%s10169_s0 + $0x28] sm:$0xff]  ;;  %v6100_v7 = vld [vmem:[%s10169_s0 + $0x38] sm:$0xff]  ;;  %v6111_v8 = vld [vmem:[%s10169_s0 + $0x50] sm:$0xff] }
   0x4   :  { %v6095_v6 = vld [vmem:[%s10169_s0 + $0x48] sm:$0xff]  ;;  %v6128_v9 = vld [vmem:[%s10169_s0 + $0x58] sm:$0xff]  ;;  %v6139_v10 = vld [vmem:[%s10169_s0 + $0x60] sm:$0xff] }
   0x5   :  { %v6150_v11 = vld [vmem:[%s10169_s0 + $0x68] sm:$0xff]  ;;  %v5187_v12 = vld [vmem:[%s10170_s1 + $0x70] sm:$0xf]  ;;  %v5830_v13 = vld [vmem:[%s10170_s1 + $0x74] sm:$0xf0] }
   0x6   :  { %v5188_v14 = vor.u32 %v5830_v13, %v5187_v12  ;;  %v5179_v15 = vld [vmem:[%s10170_s1 + $0x60] sm:$0xf]  ;;  %v5828_v16 = vld [vmem:[%s10170_s1 + $0x64] sm:$0xf0]  ;;  %v5171_v18 = vld [vmem:[%s10170_s1 + $0x50] sm:$0xf] }
   0x7   :  { %v5180_v17 = vor.u32 %v5828_v16, %v5179_v15  ;;  %v5826_v19 = vld [vmem:[%s10170_s1 + $0x54] sm:$0xf0]  ;;  %v6185_v21 = vld [vmem:[%s10169_s0 + $0x70] sm:$0xff]  ;;  %v5163_v22 = vld [vmem:[%s10170_s1 + $0x40] sm:$0xf] }
   0x8   :  { %1503 = vmatpush.bf16.msra.mxu0 %v5188_v14  ;;  %v5172_v20 = vor.u32 %v5826_v19, %v5171_v18  ;;  %v5824_v23 = vld [vmem:[%s10170_s1 + $0x44] sm:$0xf0]  ;;  %v5155_v25 = vld [vmem:[%s10170_s1 + $0x30] sm:$0xf]  ;;  %v5822_v26 = vld [vmem:[%s10170_s1 + $0x34] sm:$0xf0] }
   0x9   :  { %v5164_v24 = vor.u32 %v5824_v23, %v5163_v22  ;;  %v5156_v27 = vor.u32 %v5822_v26, %v5155_v25  ;;  %v6208_v28 = vld [vmem:[%s10169_s0 + $0x78] sm:$0xff]  ;;  %v5147_v29 = vld [vmem:[%s10170_s1 + $0x20] sm:$0xf]  ;;  %v5820_v30 = vld [vmem:[%s10170_s1 + $0x24] sm:$0xf0] }
   0xa   :  { %713 = vrot.lane.b32.xlu1 %v6074_v3, %s5998_s23  ;;  %503 = vrot.lane.b32.xlu2 %v6084_v5, %s5999_s24  ;;  %v5148_v31 = vor.u32 %v5820_v30, %v5147_v29  ;;  %v5139_v32 = vld [vmem:[%s10170_s1 + $0x10] sm:$0xf]  ;;  %v5818_v33 = vld [vmem:[%s10170_s1 + $0x14] sm:$0xf0] }
   0xb   :  { %501 = vrot.lane.b32.xlu0 %v6079_v4, %s5999_s24  ;;  %v5195_v34 = vld [vmem:[%s10170_s1 + $0x80] sm:$0xf]  ;;  %v5140_v35 = vor.u32 %v5818_v33, %v5139_v32  ;;  %v5832_v36 = vld [vmem:[%s10170_s1 + $0x84] sm:$0x30]  ;;  %v5831_v44 = vld [vmem:[%s10170_s1 + $0x84] sm:$0xf] }
   0xc   :  { %1504 = vmatpush.bf16.msra.mxu0 %v5180_v17  ;;  %v5196_v37 = vor.u32 %v5832_v36, %v5195_v34  ;;  %v6237_v38 = vld [vmem:[%s10169_s0 + $0x80] sm:$0xff]  ;;  %v5816_v41 = vld [vmem:[%s10170_s1 + $0x4] sm:$0xf0]  ;;  %v5197_v45 = vld [vmem:[%s10170_s1 + $0x88] sm:$0x30] }
   0xd   :  { %v5131_v40 = vld [vmem:[%s10170_s1] sm:$0xf]  ;;  %v5200_v46 = vor.u32 %v5831_v44, %v5197_v45  ;;  %v6268_v48 = vld [vmem:[%s10169_s0 + $0x88] sm:$0xff]  ;;  %v6279_v50 = vld [vmem:[%s10169_s0 + $0x90] sm:$0xff] }
   0xe   :  { %v1498_v39 = vsel %vm1496_vm0, %v5196_v37, 0  ;;  %v5132_v42 = vor.u32 %v5816_v41, %v5131_v40  ;;  %v5759_v55 = vld [vmem:[%s10169_s0] sm:$0xff]  ;;  %v6299_v56 = vld [vmem:[%s10169_s0 + $0x98] sm:$0xff]  ;;  %v5760_v12 = vld [vmem:[%s10169_s0 + $0x8] sm:$0xff] }
   0xf   :  { %1759 = vmatpush.bf16.msra.mxu1 %v1498_v39  ;;  %5948 = vmatpush.bf16.msra.mxu2 %v1498_v39  ;;  %v1501_v47 = vsel %vm1496_vm0, %v5200_v46, 0  ;;  %v6330_v16 = vld [vmem:[%s10169_s0 + $0xa0] sm:$0xff]  ;;  %v6345_v23 = vld [vmem:[%s10169_s0 + $0xa8] sm:$0xff]  ;;  %v6374_v32 = vld [vmem:[%s10169_s0 + $0xb0] sm:$0xff] }
  0x10   :  { %1505 = vmatpush.bf16.msra.mxu0 %v5172_v20  ;;  %5949 = vmatpush.bf16.msra.mxu3 %v1501_v47  ;;  %v6403_v41 = vld [vmem:[%s10169_s0 + $0xb8] sm:$0xff] }
  0x12   :  { %715 = vrot.lane.b32.xlu1 %v6095_v6, %s5998_s23  ;;  %399 = vrot.lane.b32.xlu2 %v6079_v4, %s5997_s14 }
  0x13   :  { %609 = vrot.lane.b32.xlu0 %v6100_v7, %s5996_s13 }
  0x14   :  { %1506 = vmatpush.bf16.msra.mxu0 %v5164_v24 }
  0x18   :  { %1507 = vmatpush.bf16.msra.mxu0 %v5156_v27 }
  0x1a   :  { %611 = vrot.lane.b32.xlu1 %v6074_v3, %s5996_s13  ;;  %717 = vrot.lane.b32.xlu2 %v6111_v8, %s5998_s23 }
  0x1b   :  { %505 = vrot.lane.b32.xlu0 %v6053_v0, %s5999_s24 }
  0x1c   :  { %1508 = vmatpush.bf16.msra.mxu0 %v5148_v31 }
  0x20   :  { %1509 = vmatpush.bf16.msra.mxu0 %v5140_v35 }
  0x22   :  { %507 = vrot.lane.b32.xlu1 %v6100_v7, %s5999_s24  ;;  %613 = vrot.lane.b32.xlu2 %v6095_v6, %s5996_s13 }
  0x23   :  { %401 = vrot.lane.b32.xlu0 %v6084_v5, %s5997_s14 }
  0x24   :  { %1510 = vmatpush.bf16.msra.mxu0 %v5132_v42 }
  0x28   :  { %2257 = vmatpush.bf16.msrb.mxu0 %v1501_v47 }
  0x2a   :  { %403 = vrot.lane.b32.xlu1 %v6053_v0, %s5997_s14  ;;  %509 = vrot.lane.b32.xlu2 %v6074_v3, %s5999_s24 }
  0x2b   :  { %719 = vrot.lane.b32.xlu0 %v6128_v9, %s5998_s23 }
  0x32   :  { %721 = vrot.lane.b32.xlu1 %v6139_v10, %s5998_s23  ;;  %405 = vrot.lane.b32.xlu2 %v6100_v7, %s5997_s14 }
  0x33   :  { %615 = vrot.lane.b32.xlu0 %v6111_v8, %s5996_s13 }
  0x3a   :  { %617 = vrot.lane.b32.xlu1 %v6128_v9, %s5996_s13  ;;  %723 = vrot.lane.b32.xlu2 %v6150_v11, %s5998_s23 }
  0x3b   :  { %511 = vrot.lane.b32.xlu0 %v6095_v6, %s5999_s24 }
  0x42   :  { %513 = vrot.lane.b32.xlu1 %v6111_v8, %s5999_s24  ;;  %619 = vrot.lane.b32.xlu2 %v6139_v10, %s5996_s13 }
  0x43   :  { %407 = vrot.lane.b32.xlu0 %v6074_v3, %s5997_s14 }
  0x4a   :  { %409 = vrot.lane.b32.xlu1 %v6095_v6, %s5997_s14  ;;  %515 = vrot.lane.b32.xlu2 %v6128_v9, %s5999_s24 }
  0x4b   :  { %725 = vrot.lane.b32.xlu0 %v6185_v21, %s5998_s23 }
  0x52   :  { %727 = vrot.lane.b32.xlu1 %v6208_v28, %s5998_s23  ;;  %411 = vrot.lane.b32.xlu2 %v6111_v8, %s5997_s14 }
  0x53   :  { %621 = vrot.lane.b32.xlu0 %v6150_v11, %s5996_s13 }
  0x5a   :  { %623 = vrot.lane.b32.xlu1 %v6185_v21, %s5996_s13  ;;  %729 = vrot.lane.b32.xlu2 %v6237_v38, %s5998_s23 }
  0x5b   :  { %517 = vrot.lane.b32.xlu0 %v6139_v10, %s5999_s24 }
  0x5c   :  { %v398_v43 = vpop.permute.xlu2 %397 }
  0x5d   :  { %v815_v15 = vsel %vm809_vm1, %v5760_v12, %v398_v43 }
  0x62   :  { %519 = vrot.lane.b32.xlu1 %v6150_v11, %s5999_s24  ;;  %625 = vrot.lane.b32.xlu2 %v6208_v28, %s5996_s13 }
  0x63   :  { %413 = vrot.lane.b32.xlu0 %v6128_v9, %s5997_s14 }
  0x64   :  { %v504_v49 = vpop.permute.xlu2 %503 }
  0x65   :  { %v958_v18 = vsel %vm954_vm2, %v815_v15, %v504_v49 }
  0x6a   :  { %415 = vrot.lane.b32.xlu1 %v6139_v10, %s5997_s14  ;;  %521 = vrot.lane.b32.xlu2 %v6185_v21, %s5999_s24 }
  0x6b   :  { %731 = vrot.lane.b32.xlu0 %v6268_v48, %s5998_s23 }
  0x6c   :  { %v400_v51 = vpop.permute.xlu2 %399 }
  0x6d   :  { %v818_v29 = vsel %vm809_vm1, %v6058_v1, %v400_v51 }
  0x72   :  { %733 = vrot.lane.b32.xlu1 %v6279_v50, %s5998_s23  ;;  %417 = vrot.lane.b32.xlu2 %v6150_v11, %s5997_s14 }
  0x73   :  { %627 = vrot.lane.b32.xlu0 %v6237_v38, %s5996_s13 }
  0x74   :  { %v608_v52 = vpop.permute.xlu1 %607  ;;  %v6287_v54 = vpop.permute.xlu2 %717 }
  0x75   :  { %v396_v53 = vpop.permute.xlu0 %395  ;;  %10322 = vst [vmem:[#allocation2_spill] sm:$0xff] %v6287_v54 }
  0x76   :  { %v812_v57 = vsel %vm809_vm1, %v5759_v55, %v396_v53 }
  0x7a   :  { %629 = vrot.lane.b32.xlu1 %v6268_v48, %s5996_s13  ;;  %735 = vrot.lane.b32.xlu2 %v6299_v56, %s5998_s23 }
  0x7b   :  { %523 = vrot.lane.b32.xlu0 %v6208_v28, %s5999_s24 }
  0x7c   :  { %v6302_v58 = vpop.permute.xlu1 %713  ;;  %v614_v62 = vpop.permute.xlu2 %613 }
  0x7d   :  { %10323 = vst [vmem:[#allocation3_spill] sm:$0xff] %v6302_v58  ;;  %v502_v59 = vpop.permute.xlu0 %501  ;;  %5201 = vmatmul.msk.bf16.vlgmr.msra.gmra.mxu1 %vm1399_vm3, %v6302_v58 }
  0x7e   :  { %v956_v60 = vsel %vm954_vm2, %v812_v57, %v502_v59  ;;  %v6447_v59 = vld [vmem:[%s10169_s0 + $0xc8] sm:$0xff] }
  0x7f   :  { %v1053_v61 = vsel %vm1051_vm4, %v956_v60, %v608_v52 }
  0x80   :  { %v6312_v63 = vsel %vm1148_vm5, %v1053_v61, %v6302_v58 }
  0x81   :  { %1511 = vmatmul.bf16.vlgmr.msra.gmra.mxu0 %v6312_v63 }
  0x82   :  { %525 = vrot.lane.b32.xlu1 %v6237_v38, %s5999_s24  ;;  %631 = vrot.lane.b32.xlu2 %v6279_v50, %s5996_s13 }
  0x83   :  { %419 = vrot.lane.b32.xlu0 %v6185_v21, %s5997_s14 }
  0x84   :  { %v6322_v13 = vpop.permute.xlu1 %715  ;;  %v510_v17 = vpop.permute.xlu2 %509 }
  0x85   :  { %10324 = vst [vmem:[#allocation4_spill] sm:$0xff] %v6322_v13  ;;  %v610_v14 = vpop.permute.xlu0 %609 }
  0x86   :  { %v1055_v19 = vsel %vm1051_vm4, %v958_v18, %v610_v14  ;;  %v6474_v18 = vld [vmem:[%s10169_s0 + $0xd0] sm:$0xff] }
  0x87   :  { %v6351_v25 = vsel %vm1148_vm5, %v1055_v19, %v6322_v13 }
  0x8a   :  { %421 = vrot.lane.b32.xlu1 %v6208_v28, %s5997_s14  ;;  %527 = vrot.lane.b32.xlu2 %v6268_v48, %s5999_s24 }
  0x8b   :  { %737 = vrot.lane.b32.xlu0 %v6330_v16, %s5998_s23 }
  0x8c   :  { %v612_v20 = vpop.permute.xlu1 %611  ;;  %v6347_v24 = vpop.permute.xlu2 %405 }
  0x8d   :  { %v506_v22 = vpop.permute.xlu0 %505  ;;  %5202 = vmatmul.msk.bf16.gmra.mxu1 %vm1399_vm3, %v6322_v13 }
  0x8e   :  { %v960_v31 = vsel %vm954_vm2, %v818_v29, %v506_v22 }
  0x8f   :  { %v1057_v34 = vsel %vm1051_vm4, %v960_v31, %v612_v20 }
  0x90   :  { %v6387_v36 = vsel %vm1148_vm5, %v1057_v34, %v6287_v54 }
  0x91   :  { %1516 = vmatmul.bf16.gmra.mxu0 %v6351_v25 }
  0x92   :  { %739 = vrot.lane.b32.xlu1 %v6345_v23, %s5998_s23  ;;  %423 = vrot.lane.b32.xlu2 %v6237_v38, %s5997_s14 }
  0x93   :  { %633 = vrot.lane.b32.xlu0 %v6299_v56, %s5996_s13 }
  0x94   :  { %v508_v26 = vpop.permute.xlu1 %507  ;;  %v6362_v30 = vpop.permute.xlu2 %723 }
  0x95   :  { %v402_v27 = vpop.permute.xlu0 %401  ;;  %5254 = vmatmul.msk.bf16.vlgmr.msra.gmra.mxu3 %vm1399_vm3, %v6362_v30 }
  0x96   :  { %v821_v40 = vsel %vm809_vm1, %v6067_v2, %v402_v27  ;;  %v6420_v2 = vld [vmem:[%s10169_s0 + $0xc0] sm:$0xff] }
  0x97   :  { %v962_v43 = vsel %vm954_vm2, %v821_v40, %v508_v26  ;;  %v6525_v40 = vld [vmem:[%s10169_s0 + $0xe0] sm:$0xff] }
  0x98   :  { %v1059_v46 = vsel %vm1051_vm4, %v962_v43, %v614_v62 }
  0x9a   :  { %635 = vrot.lane.b32.xlu1 %v6330_v16, %s5996_s13  ;;  %741 = vrot.lane.b32.xlu2 %v6374_v32, %s5998_s23 }
  0x9b   :  { %529 = vrot.lane.b32.xlu0 %v6279_v50, %s5999_s24 }
  0x9c   :  { %v404_v33 = vpop.permute.xlu1 %403  ;;  %v6383_v35 = vpop.permute.xlu2 %619 }
  0x9d   :  { %v6376_v1 = vpop.permute.xlu0 %719  ;;  %5203 = vmatmul.msk.bf16.gmra.mxu1 %vm1399_vm3, %v6287_v54  ;;  %v824_v53 = vsel %vm809_vm1, %v6079_v4, %v404_v33 }
  0x9e   :  { %10325 = vst [vmem:[#allocation5_spill] sm:$0xff] %v6376_v1  ;;  %v6426_v49 = vsel %vm1148_vm5, %v1059_v46, %v6376_v1  ;;  %v964_v57 = vsel %vm954_vm2, %v824_v53, %v510_v17  ;;  %v827_v17 = vsel %vm809_vm1, %v6084_v5, %v6347_v24  ;;  %v6494_v24 = vld [vmem:[%s10169_s0 + $0xd8] sm:$0xff]  ;;  %v6559_v53 = vld [vmem:[%s10169_s0 + $0xe8] sm:$0xff] }
  0xa1   :  { %1521 = vmatmul.bf16.gmra.mxu0 %v6387_v36 }
  0xa2   :  { %531 = vrot.lane.b32.xlu1 %v6299_v56, %s5999_s24  ;;  %637 = vrot.lane.b32.xlu2 %v6345_v23, %s5996_s13 }
  0xa3   :  { %425 = vrot.lane.b32.xlu0 %v6268_v48, %s5997_s14 }
  0xa4   :  { %v6394_v37 = vpop.permute.xlu1 %721  ;;  %v6405_v42 = vpop.permute.xlu2 %515 }
  0xa5   :  { %10326 = vst [vmem:[#allocation6_spill] sm:$0xff] %v6394_v37  ;;  %v616_v39 = vpop.permute.xlu0 %615 }
  0xa6   :  { %v1061_v60 = vsel %vm1051_vm4, %v964_v57, %v616_v39 }
  0xa7   :  { %v6459_v12 = vsel %vm1148_vm5, %v1061_v60, %v6394_v37 }
  0xaa   :  { %427 = vrot.lane.b32.xlu1 %v6279_v50, %s5997_s14  ;;  %533 = vrot.lane.b32.xlu2 %v6330_v16, %s5999_s24 }
  0xab   :  { %743 = vrot.lane.b32.xlu0 %v6403_v41, %s5998_s23 }
  0xac   :  { %v618_v44 = vpop.permute.xlu1 %617  ;;  %v6422_v47 = vpop.permute.xlu2 %411 }
  0xad   :  { %v512_v45 = vpop.permute.xlu0 %511  ;;  %5204 = vmatmul.msk.bf16.gmra.mxu1 %vm1399_vm3, %v6376_v1 }
  0xae   :  { %v966_v20 = vsel %vm954_vm2, %v827_v17, %v512_v45 }
  0xaf   :  { %v1063_v5 = vsel %vm1051_vm4, %v966_v20, %v618_v44 }
  0xb0   :  { %v6500_v29 = vsel %vm1148_vm5, %v1063_v5, %v6362_v30 }
  0xb1   :  { %1526 = vmatmul.bf16.gmra.mxu0 %v6426_v49 }
  0xb2   :  { %745 = vrot.lane.b32.xlu1 %v6420_v2, %s5998_s23  ;;  %429 = vrot.lane.b32.xlu2 %v6299_v56, %s5997_s14 }
  0xb3   :  { %639 = vrot.lane.b32.xlu0 %v6374_v32, %s5996_s13 }
  0xb4   :  { %v514_v51 = vpop.permute.xlu1 %513  ;;  %v6437_v55 = vpop.permute.xlu2 %729 }
  0xb5   :  { %v408_v52 = vpop.permute.xlu0 %407 }
  0xb6   :  { %v830_v34 = vsel %vm809_vm1, %v6053_v0, %v408_v52 }
  0xb7   :  { %v968_v39 = vsel %vm954_vm2, %v830_v34, %v514_v51 }
  0xb8   :  { %v1065_v43 = vsel %vm1051_vm4, %v968_v39, %v6383_v35  ;;  %v6604_v39 = vld [vmem:[%s10169_s0 + $0xf8] sm:$0xff] }
  0xba   :  { %641 = vrot.lane.b32.xlu1 %v6403_v41, %s5996_s13  ;;  %747 = vrot.lane.b32.xlu2 %v6447_v59, %s5998_s23 }
  0xbb   :  { %535 = vrot.lane.b32.xlu0 %v6345_v23, %s5999_s24 }
  0xbc   :  { %v410_v61 = vpop.permute.xlu1 %409  ;;  %v6455_v4 = vpop.permute.xlu2 %625 }
  0xbd   :  { %v726_v62 = vpop.permute.xlu0 %725  ;;  %5205 = vmatmul.msk.bf16.gmra.mxu1 %vm1399_vm3, %v6394_v37  ;;  %v833_v52 = vsel %vm809_vm1, %v6100_v7, %v410_v61 }
  0xbe   :  { %5255 = vmatmul.msk.bf16.gmra.mxu3 %vm1399_vm3, %v726_v62  ;;  %v6541_v46 = vsel %vm1148_vm5, %v1065_v43, %v726_v62  ;;  %v970_v60 = vsel %vm954_vm2, %v833_v52, %v6405_v42  ;;  %v6580_v42 = vld [vmem:[%s10169_s0 + $0xf0] sm:$0xff] }
  0xc1   :  { %1531 = vmatmul.bf16.gmra.mxu0 %v6459_v12 }
  0xc2   :  { %537 = vrot.lane.b32.xlu1 %v6374_v32, %s5999_s24  ;;  %643 = vrot.lane.b32.xlu2 %v6420_v2, %s5996_s13 }
  0xc3   :  { %431 = vrot.lane.b32.xlu0 %v6330_v16, %s5997_s14 }
  0xc4   :  { %v728_v14 = vpop.permute.xlu1 %727  ;;  %v6476_v19 = vpop.permute.xlu2 %521 }
  0xc5   :  { %v622_v15 = vpop.permute.xlu0 %621 }
  0xca   :  { %433 = vrot.lane.b32.xlu1 %v6345_v23, %s5997_s14  ;;  %539 = vrot.lane.b32.xlu2 %v6403_v41, %s5999_s24 }
  0xcb   :  { %749 = vrot.lane.b32.xlu0 %v6474_v18, %s5998_s23 }
  0xcc   :  { %v6483_v22 = vpop.permute.xlu1 %623  ;;  %v6496_v27 = vpop.permute.xlu2 %417 }
  0xcd   :  { %v518_v26 = vpop.permute.xlu0 %517  ;;  %5206 = vmatmul.msk.bf16.gmra.mxu1 %vm1399_vm3, %v6362_v30 }
  0xce   :  { %5256 = vmatmul.msk.bf16.gmra.mxu3 %vm1399_vm3, %v728_v14 }
  0xd1   :  { %1536 = vmatmul.bf16.gmra.mxu0 %v6500_v29 }
  0xd2   :  { %751 = vrot.lane.b32.xlu1 %v6494_v24, %s5998_s23  ;;  %435 = vrot.lane.b32.xlu2 %v6374_v32, %s5997_s14 }
  0xd3   :  { %645 = vrot.lane.b32.xlu0 %v6447_v59, %s5996_s13 }
  0xd4   :  { %v6507_v31 = vpop.permute.xlu1 %519  ;;  %v6515_v30 = vpop.permute.xlu2 %735 }
  0xd5   :  { %v6509_v33 = vpop.permute.xlu0 %413 }
  0xda   :  { %647 = vrot.lane.b32.xlu1 %v6474_v18, %s5996_s13  ;;  %753 = vrot.lane.b32.xlu2 %v6525_v40, %s5998_s23 }
  0xdb   :  { %541 = vrot.lane.b32.xlu0 %v6420_v2, %s5999_s24 }
  0xdc   :  { %v6529_v44 = vpop.permute.xlu1 %415  ;;  %v6538_v45 = vpop.permute.xlu2 %631 }
  0xdd   :  { %v6531_v0 = vpop.permute.xlu0 %731  ;;  %5207 = vmatmul.msk.bf16.gmra.mxu1 %vm1399_vm3, %v726_v62  ;;  %v1067_v62 = vsel %vm1051_vm4, %v970_v60, %v622_v15 }
  0xde   :  { %5257 = vmatmul.msk.bf16.gmra.mxu3 %vm1399_vm3, %v6437_v55  ;;  %v6583_v15 = vsel %vm1148_vm5, %v1067_v62, %v728_v14 }
  0xdf   :  { %10327 = vst [vmem:[#allocation7_spill] sm:$0xff] %v6583_v15 }
  0xe1   :  { %1541 = vmatmul.bf16.gmra.mxu0 %v6541_v46 }
  0xe2   :  { %543 = vrot.lane.b32.xlu1 %v6447_v59, %s5999_s24  ;;  %649 = vrot.lane.b32.xlu2 %v6494_v24, %s5996_s13 }
  0xe3   :  { %437 = vrot.lane.b32.xlu0 %v6403_v41, %s5997_s14 }
  0xe4   :  { %v6548_v35 = vpop.permute.xlu1 %733  ;;  %v528_v57 = vpop.permute.xlu2 %527 }
  0xe5   :  { %v6550_v51 = vpop.permute.xlu0 %627 }
  0xea   :  { %439 = vrot.lane.b32.xlu1 %v6420_v2, %s5997_s14  ;;  %545 = vrot.lane.b32.xlu2 %v6474_v18, %s5999_s24 }
  0xeb   :  { %755 = vrot.lane.b32.xlu0 %v6559_v53, %s5998_s23 }
  0xec   :  { %v6568_v17 = vpop.permute.xlu1 %629  ;;  %v424_v61 = vpop.permute.xlu2 %423 }
  0xed   :  { %v6570_v7 = vpop.permute.xlu0 %523  ;;  %5208 = vmatmul.msk.bf16.gmra.mxu1 %vm1399_vm3, %v728_v14  ;;  %v836_v14 = vsel %vm809_vm1, %v6074_v3, %v6422_v47 }
  0xee   :  { %5258 = vmatmul.msk.bf16.gmra.mxu3 %vm1399_vm3, %v6531_v0  ;;  %v972_v43 = vsel %vm954_vm2, %v836_v14, %v518_v26 }
  0xef   :  { %v1069_v3 = vsel %vm1051_vm4, %v972_v43, %v6483_v22 }
  0xf0   :  { %v6627_v1 = vsel %vm1148_vm5, %v1069_v3, %v6437_v55  ;;  %v6655_v3 = vld [vmem:[%s10169_s0 + $0x100] sm:$0xff] }
  0xf1   :  { %1546 = vmatmul.bf16.gmra.mxu0 %v6583_v15  ;;  %10329 = vst [vmem:[#allocation9_spill] sm:$0xff] %v6627_v1 }
  0xf2   :  { %757 = vrot.lane.b32.xlu1 %v6580_v42, %s5998_s23  ;;  %441 = vrot.lane.b32.xlu2 %v6447_v59, %s5997_s14 }
  0xf3   :  { %651 = vrot.lane.b32.xlu0 %v6525_v40, %s5996_s13 }
  0xf4   :  { %v6590_v20 = vpop.permute.xlu1 %525  ;;  %v6599_v34 = vpop.permute.xlu2 %741 }
  0xf5   :  { %v6592_v5 = vpop.permute.xlu0 %419 }
  0xfa   :  { %653 = vrot.lane.b32.xlu1 %v6559_v53, %s5996_s13  ;;  %v1761_v52 = vpop.f32.mrf.mxu1  ;;  %759 = vrot.lane.b32.xlu2 %v6604_v39, %s5998_s23 }
  0xfb   :  { %547 = vrot.lane.b32.xlu0 %v6494_v24, %s5999_s24 }
  0xfc   :  { %v422_v60 = vpop.permute.xlu1 %421  ;;  %v638_v14 = vpop.permute.xlu2 %637 }
  0xfd   :  { %v6611_v62 = vpop.permute.xlu0 %737  ;;  %5209 = vmatmul.msk.bf16.gmra.mxu1 %vm1399_vm3, %v6437_v55  ;;  %v851_v37 = vsel %vm809_vm1, %v6150_v11, %v422_v60  ;;  %v6650_v60 = vld [vmem:[%s10169_s0 + $0x198] sm:$0xff] }
  0xfe   :  { %v1512_v47 = vpop.f32.mrf.mxu0  ;;  %5259 = vmatmul.msk.bf16.gmra.mxu3 %vm1399_vm3, %v6548_v35  ;;  %v982_v22 = vsel %vm954_vm2, %v851_v37, %v528_v57  ;;  %v839_v37 = vsel %vm809_vm1, %v6095_v6, %v6509_v33 }
  0xff   :  { %v6621_v26 = vadd.f32 %v1761_v52, %v1512_v47 }
 0x101   :  { %10328 = vst [vmem:[#allocation8_spill] sm:$0xff] %v6621_v26  ;;  %1551 = vmatmul.bf16.gmra.mxu0 %v6627_v1 }
 0x102   :  { %549 = vrot.lane.b32.xlu1 %v6525_v40, %s5999_s24  ;;  %v1763_v43 = vpop.f32.mrf.mxu1  ;;  %655 = vrot.lane.b32.xlu2 %v6580_v42, %s5996_s13 }
 0x103   :  { %443 = vrot.lane.b32.xlu0 %v6474_v18, %s5997_s14 }
 0x104   :  { %v6635_v52 = vpop.permute.xlu1 %739  ;;  %v534_v54 = vpop.permute.xlu2 %533 }
 0x105   :  { %v634_v47 = vpop.permute.xlu0 %633 }
 0x106   :  { %v6640_v11 = vsel %vm1051_vm4, %v982_v22, %v634_v47  ;;  %v1514_v55 = vpop.f32.mrf.mxu0  ;;  %v974_v22 = vsel %vm954_vm2, %v839_v37, %v6507_v31  ;;  %v854_v47 = vsel %vm809_vm1, %v6185_v21, %v424_v61 }
 0x107   :  { %v6645_v57 = vadd.f32 %v1763_v43, %v1514_v55  ;;  %v1071_v33 = vsel %vm1051_vm4, %v974_v22, %v6455_v4  ;;  %v6688_v22 = vld [vmem:[%s10169_s0 + $0x108] sm:$0xff] }
 0x108   :  { %v6682_v4 = vsel %vm1148_vm5, %v1071_v33, %v6531_v0 }
 0x109   :  { %10330 = vst [vmem:[#allocation10_spill] sm:$0xff] %v6645_v57 }
 0x10a   :  { %799 = vrot.lane.b32.xlu1 %v6650_v60, %s5998_s23  ;;  %v1766_v6 = vpop.f32.mrf.mxu1  ;;  %445 = vrot.lane.b32.xlu2 %v6494_v24, %s5997_s14  ;;  %10332 = vst [vmem:[#allocation12_spill] sm:$0xff] %v6682_v4 }
 0x10b   :  { %761 = vrot.lane.b32.xlu0 %v6655_v3, %s5998_s23 }
 0x10c   :  { %v6667_v43 = vpop.permute.xlu1 %635  ;;  %v430_v37 = vpop.permute.xlu2 %429 }
 0x10d   :  { %v530_v55 = vpop.permute.xlu0 %529  ;;  %5210 = vmatmul.msk.bf16.gmra.mxu1 %vm1399_vm3, %v6531_v0 }
 0x10e   :  { %v6672_v31 = vsel %vm954_vm2, %v854_v47, %v530_v55  ;;  %v1517_v21 = vpop.f32.mrf.mxu0  ;;  %5260 = vmatmul.msk.bf16.gmra.mxu3 %vm1399_vm3, %v6515_v30 }
 0x10f   :  { %v6678_v61 = vadd.f32 %v1766_v6, %v1517_v21  ;;  %v842_v21 = vsel %vm809_vm1, %v6111_v8, %v6529_v44 }
 0x111   :  { %10331 = vst [vmem:[#allocation11_spill] sm:$0xff] %v6678_v61  ;;  %1556 = vmatmul.bf16.gmra.mxu0 %v6682_v4  ;;  %v6707_v4 = vld [vmem:[%s10169_s0 + $0x1a0] sm:$0xff] }
 0x112   :  { %v1768_v47 = vpop.f32.mrf.mxu1  ;;  %657 = vrot.lane.b32.xlu1 %v6604_v39, %s5996_s13  ;;  %763 = vrot.lane.b32.xlu2 %v6688_v22, %s5998_s23 }
 0x113   :  { %551 = vrot.lane.b32.xlu0 %v6559_v53, %s5999_s24 }
 0x114   :  { %v532_v6 = vpop.permute.xlu1 %531  ;;  %v6709_v1 = vpop.permute.xlu2 %747 }
 0x115   :  { %v426_v55 = vpop.permute.xlu0 %425 }
 0x116   :  { %v857_v0 = vsel %vm809_vm1, %v6208_v28, %v426_v55  ;;  %v1519_v33 = vpop.f32.mrf.mxu0  ;;  %v976_v28 = vsel %vm954_vm2, %v842_v21, %v6476_v19 }
 0x117   :  { %v6701_v13 = vadd.f32 %v1768_v47, %v1519_v33  ;;  %v986_v58 = vsel %vm954_vm2, %v857_v0, %v532_v6  ;;  %v1073_v8 = vsel %vm1051_vm4, %v976_v28, %v6550_v51  ;;  %v6750_v33 = vld [vmem:[%s10169_s0 + $0x1a8] sm:$0xff] }
 0x118   :  { %v6712_v15 = vsel %vm1051_vm4, %v986_v58, %v638_v14  ;;  %v6738_v14 = vld [vmem:[%s10169_s0 + $0x110] sm:$0xff]  ;;  %v6742_v6 = vsel %vm1148_vm5, %v1073_v8, %v6548_v35  ;;  %v845_v8 = vsel %vm809_vm1, %v6128_v9, %v6496_v27  ;;  %v6778_v9 = vpop.f32.mrf.mxu3 }
 0x119   :  { %10333 = vst [vmem:[#allocation13_spill] sm:$0xff] %v6701_v13 }
 0x11a   :  { %v1771_v55 = vpop.f32.mrf.mxu1  ;;  %447 = vrot.lane.b32.xlu1 %v6525_v40, %s5997_s14  ;;  %553 = vrot.lane.b32.xlu2 %v6580_v42, %s5999_s24 }
 0x11b   :  { %801 = vrot.lane.b32.xlu0 %v6707_v4, %s5998_s23 }
 0x11c   :  { %v428_v44 = vpop.permute.xlu1 %427 }
 0x11d   :  { %v6722_v47 = vpop.permute.xlu0 %743  ;;  %v860_v58 = vsel %vm809_vm1, %v6237_v38, %v428_v44  ;;  %5211 = vmatmul.msk.bf16.gmra.mxu1 %vm1399_vm3, %v6548_v35  ;;  %v644_v38 = vpop.permute.xlu2 %643 }
 0x11e   :  { %v1522_v19 = vpop.f32.mrf.mxu0  ;;  %5261 = vmatmul.msk.bf16.gmra.mxu3 %vm1399_vm3, %v6611_v62  ;;  %v988_v51 = vsel %vm954_vm2, %v860_v58, %v534_v54 }
 0x11f   :  { %v6732_v40 = vadd.f32 %v1771_v55, %v1522_v19  ;;  %v978_v19 = vsel %vm954_vm2, %v845_v8, %v6570_v7 }
 0x121   :  { %10334 = vst [vmem:[#allocation14_spill] sm:$0xff] %v6732_v40  ;;  %1561 = vmatmul.bf16.gmra.mxu0 %v6742_v6  ;;  %v863_v40 = vsel %vm809_vm1, %v6268_v48, %v430_v37  ;;  %v6798_v37 = vld [vmem:[%s10169_s0 + $0x118] sm:$0xff] }
 0x122   :  { %v1773_v54 = vpop.f32.mrf.mxu1  ;;  %765 = vrot.lane.b32.xlu1 %v6738_v14, %s5998_s23  ;;  %803 = vrot.lane.b32.xlu2 %v6750_v33, %s5998_s23 }
 0x123   :  { %659 = vrot.lane.b32.xlu0 %v6655_v3, %s5996_s13 }
 0x124   :  { %v6756_v35 = vpop.permute.xlu1 %745 }
 0x125   :  { %v640_v21 = vpop.permute.xlu0 %639  ;;  %v540_v0 = vpop.permute.xlu2 %539 }
 0x126   :  { %v6761_v28 = vsel %vm1051_vm4, %v988_v51, %v640_v21  ;;  %v1524_v55 = vpop.f32.mrf.mxu0  ;;  %v1075_v21 = vsel %vm1051_vm4, %v978_v19, %v6568_v17  ;;  %v5813_v17 = vld [vmem:[%s10169_s0 + $0x1b0] sm:$0xff] }
 0x127   :  { %v6766_v44 = vadd.f32 %v1773_v54, %v1524_v55 }
 0x129   :  { %10335 = vst [vmem:[#allocation15_spill] sm:$0xff] %v6766_v44 }
 0x12a   :  { %v1776_v51 = vpop.f32.mrf.mxu1  ;;  %555 = vrot.lane.b32.xlu1 %v6604_v39, %s5999_s24  ;;  %661 = vrot.lane.b32.xlu2 %v6688_v22, %s5996_s13 }
 0x12b   :  { %449 = vrot.lane.b32.xlu0 %v6559_v53, %s5997_s14 }
 0x12c   :  { %v6780_v27 = vpop.permute.xlu1 %641 }
 0x12d   :  { %v536_v54 = vpop.permute.xlu0 %535  ;;  %5212 = vmatmul.msk.bf16.gmra.mxu1 %vm1399_vm3, %v6515_v30  ;;  %v436_v19 = vpop.permute.xlu2 %435 }
 0x12e   :  { %v6787_v48 = vsel %vm954_vm2, %v863_v40, %v536_v54  ;;  %v1527_v7 = vpop.f32.mrf.mxu0  ;;  %5262 = vmatmul.msk.bf16.gmra.mxu3 %vm1399_vm3, %v6635_v52  ;;  %v6805_v40 = vsel %vm1148_vm5, %v1075_v21, %v6515_v30 }
 0x12f   :  { %v6793_v53 = vadd.f32 %v1776_v51, %v1527_v7  ;;  %v848_v7 = vsel %vm809_vm1, %v6139_v10, %v6592_v5  ;;  %v6840_v5 = vsel %vm1051_vm4, %v6672_v31, %v6667_v43 }
 0x130   :  { %v980_v10 = vsel %vm954_vm2, %v848_v7, %v6590_v20 }
 0x131   :  { %10336 = vst [vmem:[#allocation16_spill] sm:$0xff] %v6793_v53  ;;  %1566 = vmatmul.bf16.gmra.mxu0 %v6805_v40  ;;  %v6823_v53 = vpop.f32.mrf.mxu3 }
 0x132   :  { %v1778_v8 = vpop.f32.mrf.mxu1  ;;  %805 = vrot.lane.b32.xlu1 %v5813_v17, %s5998_s23  ;;  %451 = vrot.lane.b32.xlu2 %v6580_v42, %s5997_s14 }
 0x133   :  { %767 = vrot.lane.b32.xlu0 %v6798_v37, %s5998_s23 }
 0x134   :  { %v538_v51 = vpop.permute.xlu1 %537 }
 0x135   :  { %v432_v54 = vpop.permute.xlu0 %431  ;;  %v6858_v31 = vpop.permute.xlu2 %753 }
 0x136   :  { %v866_v30 = vsel %vm809_vm1, %v6279_v50, %v432_v54  ;;  %v1529_v21 = vpop.f32.mrf.mxu0  ;;  %v6833_v50 = vld [vmem:[%s10169_s0 + $0x120] sm:$0xff] }
 0x137   :  { %v6820_v55 = vadd.f32 %v1778_v8, %v1529_v21  ;;  %v992_v58 = vsel %vm954_vm2, %v866_v30, %v538_v51  ;;  %v5814_v30 = vld [vmem:[%s10169_s0 + $0x1b8] sm:$0xff] }
 0x138   :  { %v6826_v17 = vsel %vm1051_vm4, %v992_v58, %v644_v38  ;;  %v1077_v58 = vsel %vm1051_vm4, %v980_v10, %v6538_v45 }
 0x139   :  { %10337 = vst [vmem:[#allocation17_spill] sm:$0xff] %v6820_v55 }
 0x13a   :  { %v1781_v38 = vpop.f32.mrf.mxu1  ;;  %663 = vrot.lane.b32.xlu1 %v6738_v14, %s5996_s13  ;;  %769 = vrot.lane.b32.xlu2 %v6833_v50, %s5998_s23 }
 0x13b   :  { %557 = vrot.lane.b32.xlu0 %v6655_v3, %s5999_s24 }
 0x13c   :  { %v434_v8 = vpop.permute.xlu1 %433 }
 0x13d   :  { %v6848_v51 = vpop.permute.xlu0 %749  ;;  %v869_v20 = vsel %vm809_vm1, %v6299_v56, %v434_v8  ;;  %5213 = vmatmul.msk.bf16.gmra.mxu1 %vm1399_vm3, %v6611_v62  ;;  %v6868_v56 = vsel %vm1148_vm5, %v1077_v58, %v6611_v62  ;;  %v6888_v8 = vld [vmem:[%s10169_s0 + $0x128] sm:$0xff] }
 0x13e   :  { %v1532_v43 = vpop.f32.mrf.mxu0  ;;  %5263 = vmatmul.msk.bf16.gmra.mxu3 %vm1399_vm3, %v6599_v34  ;;  %v994_v45 = vsel %vm954_vm2, %v869_v20, %v540_v0  ;;  %v650_v20 = vpop.permute.xlu2 %649 }
 0x13f   :  { %v6860_v54 = vadd.f32 %v1781_v38, %v1532_v43 }
 0x141   :  { %10338 = vst [vmem:[#allocation18_spill] sm:$0xff] %v6860_v54  ;;  %1571 = vmatmul.bf16.gmra.mxu0 %v6868_v56  ;;  %v6871_v21 = vpop.f32.mrf.mxu3 }
 0x142   :  { %10339 = vst [vmem:[#allocation19_spill] sm:$0xff] %v6871_v21  ;;  %v1783_v7 = vpop.f32.mrf.mxu1  ;;  %453 = vrot.lane.b32.xlu1 %v6604_v39, %s5997_s14  ;;  %559 = vrot.lane.b32.xlu2 %v6688_v22, %s5999_s24  ;;  %v872_v39 = vsel %vm809_vm1, %v6330_v16, %v436_v19  ;;  %v6914_v19 = vsel %vm1148_vm5, %v6640_v11, %v6635_v52 }
 0x143   :  { %807 = vrot.lane.b32.xlu0 %v5814_v30, %s5998_s23 }
 0x144   :  { %v6876_v10 = vpop.permute.xlu1 %751 }
 0x145   :  { %v646_v0 = vpop.permute.xlu0 %645 }
 0x146   :  { %v6881_v38 = vsel %vm1051_vm4, %v994_v45, %v646_v0  ;;  %v1534_v62 = vpop.f32.mrf.mxu0 }
 0x147   :  { %v6883_v58 = vadd.f32 %v1783_v7, %v1534_v62 }
 0x149   :  { %10340 = vst [vmem:[#allocation20_spill] sm:$0xff] %v6883_v58  ;;  %v6890_v43 = vpop.f32.mrf.mxu3 }
 0x14a   :  { %10341 = vst [vmem:[#allocation21_spill] sm:$0xff] %v6890_v43  ;;  %v1786_v30 = vpop.f32.mrf.mxu1  ;;  %771 = vrot.lane.b32.xlu1 %v6888_v8, %s5998_s23  ;;  %455 = vrot.lane.b32.xlu2 %v6655_v3, %s5997_s14 }
 0x14b   :  { %665 = vrot.lane.b32.xlu0 %v6798_v37, %s5996_s13 }
 0x14c   :  { %v6898_v45 = vpop.permute.xlu1 %647 }
 0x14d   :  { %v542_v7 = vpop.permute.xlu0 %541  ;;  %5214 = vmatmul.msk.bf16.gmra.mxu1 %vm1399_vm3, %v6635_v52 }
 0x14e   :  { %v6903_v0 = vsel %vm954_vm2, %v872_v39, %v542_v7  ;;  %v1537_v62 = vpop.f32.mrf.mxu0  ;;  %5264 = vmatmul.msk.bf16.gmra.mxu3 %vm1399_vm3, %v6722_v47  ;;  %v546_v39 = vpop.permute.xlu2 %545 }
 0x14f   :  { %v6909_v16 = vadd.f32 %v1786_v30, %v1537_v62  ;;  %v6926_v30 = vld [vmem:[%s10169_s0 + $0x130] sm:$0xff] }
 0x151   :  { %1576 = vmatmul.bf16.gmra.mxu0 %v6914_v19  ;;  %v6917_v3 = vpop.f32.mrf.mxu3 }
 0x152   :  { %v1788_v7 = vpop.f32.mrf.mxu1  ;;  %667 = vrot.lane.b32.xlu1 %v6833_v50, %s5996_s13  ;;  %773 = vrot.lane.b32.xlu2 %v6926_v30, %s5998_s23 }
 0x153   :  { %561 = vrot.lane.b32.xlu0 %v6738_v14, %s5999_s24 }
 0x154   :  { %v544_v62 = vpop.permute.xlu1 %543 }
 0x155   :  { %v438_v52 = vpop.permute.xlu0 %437 }
 0x156   :  { %v875_v11 = vsel %vm809_vm1, %v6345_v23, %v438_v52  ;;  %v1539_v42 = vpop.f32.mrf.mxu0  ;;  %v442_v44 = vpop.permute.xlu2 %441 }
 0x157   :  { %v6932_v43 = vadd.f32 %v1788_v7, %v1539_v42  ;;  %v998_v21 = vsel %vm954_vm2, %v875_v11, %v544_v62  ;;  %v6960_v7 = vld [vmem:[%s10169_s0 + $0x138] sm:$0xff] }
 0x158   :  { %v6936_v55 = vsel %vm1051_vm4, %v998_v21, %v650_v20 }
 0x159   :  { %10342 = vst [vmem:[#allocation22_spill] sm:$0xff] %v6932_v43  ;;  %v6938_v13 = vpop.f32.mrf.mxu3 }
 0x15a   :  { %v1791_v61 = vpop.f32.mrf.mxu1  ;;  %563 = vrot.lane.b32.xlu1 %v6798_v37, %s5999_s24  ;;  %669 = vrot.lane.b32.xlu2 %v6888_v8, %s5996_s13 }
 0x15b   :  { %457 = vrot.lane.b32.xlu0 %v6688_v22, %s5997_s14 }
 0x15c   :  { %v440_v57 = vpop.permute.xlu1 %439 }
 0x15d   :  { %v6944_v23 = vpop.permute.xlu0 %755  ;;  %v878_v42 = vsel %vm809_vm1, %v6374_v32, %v440_v57  ;;  %5215 = vmatmul.msk.bf16.gmra.mxu1 %vm1399_vm3, %v6599_v34  ;;  %v6965_v32 = vsel %vm1148_vm5, %v6840_v5, %v6599_v34 }
 0x15e   :  { %v1542_v21 = vpop.f32.mrf.mxu0  ;;  %5265 = vmatmul.msk.bf16.gmra.mxu3 %vm1399_vm3, %v6756_v35  ;;  %v1000_v20 = vsel %vm954_vm2, %v878_v42, %v546_v39  ;;  %v6983_v11 = vpop.permute.xlu2 %759 }
 0x15f   :  { %v6954_v22 = vadd.f32 %v1791_v61, %v1542_v21  ;;  %v6990_v21 = vld [vmem:[%s10169_s0 + $0x140] sm:$0xff] }
 0x161   :  { %10343 = vst [vmem:[#allocation23_spill] sm:$0xff] %v6954_v22  ;;  %1581 = vmatmul.bf16.gmra.mxu0 %v6965_v32  ;;  %v6970_v62 = vpop.f32.mrf.mxu3  ;;  %v881_v22 = vsel %vm809_vm1, %v6403_v41, %v442_v44 }
 0x162   :  { %10344 = vst [vmem:[#allocation24_spill] sm:$0xff] %v6970_v62  ;;  %v1793_v61 = vpop.f32.mrf.mxu1  ;;  %459 = vrot.lane.b32.xlu1 %v6738_v14, %s5997_s14  ;;  %565 = vrot.lane.b32.xlu2 %v6833_v50, %s5999_s24 }
 0x163   :  { %775 = vrot.lane.b32.xlu0 %v6960_v7, %s5998_s23 }
 0x164   :  { %v6976_v39 = vpop.permute.xlu1 %757 }
 0x165   :  { %v652_v52 = vpop.permute.xlu0 %651 }
 0x166   :  { %v6981_v34 = vsel %vm1051_vm4, %v1000_v20, %v652_v52  ;;  %v1544_v5 = vpop.f32.mrf.mxu0 }
 0x167   :  { %v6985_v42 = vadd.f32 %v1793_v61, %v1544_v5  ;;  %v7005_v61 = vsel %vm1051_vm4, %v6787_v48, %v6780_v27  ;;  %v7023_v27 = vsel %vm1148_vm5, %v6712_v15, %v6722_v47  ;;  %v656_v48 = vpop.permute.xlu2 %655  ;;  %v7037_v15 = vld [vmem:[%s10169_s0 + $0x148] sm:$0xff] }
 0x169   :  { %10345 = vst [vmem:[#allocation25_spill] sm:$0xff] %v6985_v42  ;;  %v6994_v57 = vpop.f32.mrf.mxu3 }
 0x16a   :  { %10346 = vst [vmem:[#allocation26_spill] sm:$0xff] %v6994_v57  ;;  %v1796_v20 = vpop.f32.mrf.mxu1  ;;  %777 = vrot.lane.b32.xlu1 %v6990_v21, %s5998_s23  ;;  %461 = vrot.lane.b32.xlu2 %v6798_v37, %s5997_s14 }
 0x16b   :  { %671 = vrot.lane.b32.xlu0 %v6926_v30, %s5996_s13 }
 0x16c   :  { %v7007_v52 = vpop.permute.xlu1 %653 }
 0x16d   :  { %v548_v5 = vpop.permute.xlu0 %547  ;;  %5216 = vmatmul.msk.bf16.gmra.mxu1 %vm1399_vm3, %v6722_v47 }
 0x16e   :  { %v7012_v41 = vsel %vm954_vm2, %v881_v22, %v548_v5  ;;  %v1547_v44 = vpop.f32.mrf.mxu0  ;;  %5266 = vmatmul.msk.bf16.gmra.mxu3 %vm1399_vm3, %v6709_v1 }
 0x16f   :  { %v7018_v14 = vadd.f32 %v1796_v20, %v1547_v44  ;;  %v446_v57 = vpop.permute.xlu2 %445 }
 0x171   :  { %1586 = vmatmul.bf16.gmra.mxu0 %v7023_v27  ;;  %v7028_v22 = vpop.f32.mrf.mxu3 }
 0x172   :  { %10347 = vst [vmem:[#allocation27_spill] sm:$0xff] %v7028_v22  ;;  %v1798_v5 = vpop.f32.mrf.mxu1  ;;  %673 = vrot.lane.b32.xlu1 %v6960_v7, %s5996_s13  ;;  %779 = vrot.lane.b32.xlu2 %v7037_v15, %s5998_s23 }
 0x173   :  { %567 = vrot.lane.b32.xlu0 %v6888_v8, %s5999_s24 }
 0x174   :  { %v550_v47 = vpop.permute.xlu1 %549 }
 0x175   :  { %v444_v20 = vpop.permute.xlu0 %443 }
 0x176   :  { %v884_v44 = vsel %vm809_vm1, %v6420_v2, %v444_v20  ;;  %v1549_v37 = vpop.f32.mrf.mxu0 }
 0x177   :  { %v7043_v42 = vadd.f32 %v1798_v5, %v1549_v37  ;;  %v1004_v58 = vsel %vm954_vm2, %v884_v44, %v550_v47  ;;  %v7079_v5 = vsel %vm1148_vm5, %v6761_v28, %v6756_v35  ;;  %v7090_v44 = vpop.permute.xlu2 %763 }
 0x178   :  { %v7047_v54 = vsel %vm1051_vm4, %v1004_v58, %v656_v48  ;;  %10351 = vst [vmem:[#allocation31_spill] sm:$0xff] %v7079_v5 }
 0x179   :  { %10348 = vst [vmem:[#allocation28_spill] sm:$0xff] %v7043_v42  ;;  %v7051_v22 = vpop.f32.mrf.mxu3  ;;  %v5165_v42 = vld [vmem:[%s10170_s1 + $0x48] sm:$0xf0] }
 0x17a   :  { %10349 = vst [vmem:[#allocation29_spill] sm:$0xff] %v7051_v22  ;;  %v1801_v62 = vpop.f32.mrf.mxu1  ;;  %569 = vrot.lane.b32.xlu1 %v6926_v30, %s5999_s24  ;;  %675 = vrot.lane.b32.xlu2 %v6990_v21, %s5996_s13  ;;  %v5419_v22 = vld [vmem:[%s10171_s3 + $0xf0] sm:$0xf] }
 0x17b   :  { %463 = vrot.lane.b32.xlu0 %v6833_v50, %s5997_s14  ;;  %v7074_v50 = vld [vmem:[%s10169_s0 + $0x150] sm:$0xff] }
 0x17c   :  { %v7057_v2 = vpop.permute.xlu1 %799 }
 0x17d   :  { %10350 = vst [vmem:[#allocation30_spill] sm:$0xff] %v7057_v2  ;;  %v7059_v37 = vpop.permute.xlu0 %761  ;;  %5217 = vmatmul.msk.bf16.gmra.mxu1 %vm1399_vm3, %v6756_v35  ;;  %5244 = vmatmul.msk.bf16.vlgmr.msra.gmra.mxu2 %vm1399_vm3, %v7057_v2 }
 0x17e   :  { %v1552_v58 = vpop.f32.mrf.mxu0  ;;  %5267 = vmatmul.msk.bf16.gmra.mxu3 %vm1399_vm3, %v6848_v51 }
 0x17f   :  { %v7067_v48 = vadd.f32 %v1801_v62, %v1552_v58  ;;  %v887_v62 = vsel %vm809_vm1, %v6447_v59, %v446_v57  ;;  %v7103_v57 = vld [vmem:[%s10169_s0 + $0x158] sm:$0xff] }
 0x181   :  { %1591 = vmatmul.bf16.gmra.mxu0 %v7079_v5  ;;  %v7082_v47 = vpop.f32.mrf.mxu3 }
 0x182   :  { %10352 = vst [vmem:[#allocation32_spill] sm:$0xff] %v7082_v47  ;;  %v1803_v20 = vpop.f32.mrf.mxu1  ;;  %465 = vrot.lane.b32.xlu1 %v6888_v8, %s5997_s14  ;;  %571 = vrot.lane.b32.xlu2 %v6960_v7, %s5999_s24 }
 0x183   :  { %781 = vrot.lane.b32.xlu0 %v7074_v50, %s5998_s23 }
 0x184   :  { %v658_v26 = vpop.permute.xlu1 %657 }
 0x185   :  { %v552_v58 = vpop.permute.xlu0 %551 }
 0x186   :  { %v1006_v35 = vsel %vm954_vm2, %v887_v62, %v552_v58  ;;  %v1554_v28 = vpop.f32.mrf.mxu0  ;;  %v5864_v62 = vld [vmem:[%s10171_s3 + $0xf4] sm:$0xf0] }
 0x187   :  { %v7096_v2 = vsel %vm1051_vm4, %v1006_v35, %v658_v26  ;;  %v7098_v59 = vadd.f32 %v1803_v20, %v1554_v28  ;;  %v5355_v26 = vld [vmem:[%s10171_s3 + $0x70] sm:$0xf]  ;;  %v5420_v20 = vor.u32 %v5864_v62, %v5419_v22  ;;  %v5848_v58 = vld [vmem:[%s10171_s3 + $0x74] sm:$0xf0]  ;;  %v5829_v22 = vld [vmem:[%s10170_s1 + $0x74] sm:$0xf] }
 0x188   :  { %v5356_v28 = vor.u32 %v5848_v58, %v5355_v26  ;;  %v5189_v62 = vld [vmem:[%s10170_s1 + $0x78] sm:$0xf0] }
 0x189   :  { %v7105_v8 = vpop.f32.mrf.mxu3  ;;  %3504 = vmatpush.bf16.msrb.mxu3 %v5420_v20  ;;  %v5192_v20 = vor.u32 %v5829_v22, %v5189_v62  ;;  %v5181_v22 = vld [vmem:[%s10170_s1 + $0x68] sm:$0xf0] }
 0x18a   :  { %10353 = vst [vmem:[#allocation33_spill] sm:$0xff] %v7105_v8  ;;  %v1806_v35 = vpop.f32.mrf.mxu1  ;;  %783 = vrot.lane.b32.xlu1 %v7103_v57, %s5998_s23  ;;  %467 = vrot.lane.b32.xlu2 %v6926_v30, %s5997_s14  ;;  %v554_v30 = vpop.permute.xlu2 %553 }
 0x18b   :  { %677 = vrot.lane.b32.xlu0 %v7037_v15, %s5996_s13  ;;  %3415 = vmatpush.bf16.msrb.mxu1 %v5356_v28 }
 0x18c   :  { %v448_v47 = vpop.permute.xlu1 %447  ;;  %2001 = vmatpush.bf16.msrb.mxu2 %v5192_v20  ;;  %v5173_v20 = vld [vmem:[%s10170_s1 + $0x58] sm:$0xf0] }
 0x18d   :  { %v7123_v8 = vpop.permute.xlu0 %801  ;;  %v890_v5 = vsel %vm809_vm1, %v6474_v18, %v448_v47  ;;  %5218 = vmatmul.msk.bf16.gmra.mxu1 %vm1399_vm3, %v6709_v1  ;;  %v7147_v18 = vsel %vm1148_vm5, %v7005_v61, %v6709_v1  ;;  %v7165_v1 = vld [vmem:[%s10169_s0 + $0x160] sm:$0xff] }
 0x18e   :  { %10354 = vst [vmem:[#allocation34_spill] sm:$0xff] %v7123_v8  ;;  %v1557_v26 = vpop.f32.mrf.mxu0  ;;  %5245 = vmatmul.msk.bf16.gmra.mxu2 %vm1399_vm3, %v7123_v8  ;;  %5268 = vmatmul.msk.bf16.gmra.mxu3 %vm1399_vm3, %v6876_v10  ;;  %v1008_v28 = vsel %vm954_vm2, %v890_v5, %v554_v30  ;;  %v5825_v30 = vld [vmem:[%s10170_s1 + $0x54] sm:$0xf] }
 0x18f   :  { %v7139_v58 = vadd.f32 %v1806_v35, %v1557_v26  ;;  %10355 = vst [vmem:[#allocation35_spill] sm:$0xff] %v7147_v18  ;;  %v5827_v35 = vld [vmem:[%s10170_s1 + $0x64] sm:$0xf]  ;;  %v5176_v8 = vor.u32 %v5825_v30, %v5173_v20 }
 0x190   :  { %v5184_v62 = vor.u32 %v5827_v35, %v5181_v22 }
 0x191   :  { %1596 = vmatmul.bf16.gmra.mxu0 %v7147_v18  ;;  %v7150_v47 = vpop.f32.mrf.mxu3  ;;  %v5823_v18 = vld [vmem:[%s10170_s1 + $0x44] sm:$0xf] }
 0x192   :  { %10356 = vst [vmem:[#allocation36_spill] sm:$0xff] %v7150_v47  ;;  %v1808_v5 = vpop.f32.mrf.mxu1  ;;  %679 = vrot.lane.b32.xlu1 %v7074_v50, %s5996_s13  ;;  %2002 = vmatpush.bf16.msrb.mxu2 %v5184_v62  ;;  %v5168_v43 = vor.u32 %v5823_v18, %v5165_v42  ;;  %v5157_v42 = vld [vmem:[%s10170_s1 + $0x38] sm:$0xf0] }
 0x193   :  { %573 = vrot.lane.b32.xlu0 %v6990_v21, %s5999_s24  ;;  %785 = vrot.lane.b32.xlu2 %v7165_v1, %s5998_s23 }
 0x194   :  { %v7167_v26 = vpop.permute.xlu1 %765 }
 0x195   :  { %v660_v61 = vpop.permute.xlu0 %659 }
 0x196   :  { %v7178_v35 = vsel %vm1051_vm4, %v1008_v28, %v660_v61  ;;  %v1559_v22 = vpop.f32.mrf.mxu0  ;;  %2003 = vmatpush.bf16.msrb.mxu2 %v5176_v8  ;;  %v7194_v8 = vpop.permute.xlu2 %803  ;;  %v5821_v61 = vld [vmem:[%s10170_s1 + $0x34] sm:$0xf] }
 0x197   :  { %v7180_v62 = vadd.f32 %v1808_v5, %v1559_v22  ;;  %10358 = vst [vmem:[#allocation38_spill] sm:$0xff] %v7194_v8 }
 0x199   :  { %v7182_v47 = vpop.f32.mrf.mxu3 }
 0x19a   :  { %10357 = vst [vmem:[#allocation37_spill] sm:$0xff] %v7182_v47  ;;  %v1811_v28 = vpop.f32.mrf.mxu1  ;;  %575 = vrot.lane.b32.xlu1 %v7037_v15, %s5999_s24  ;;  %2004 = vmatpush.bf16.msrb.mxu2 %v5168_v43  ;;  %v5160_v43 = vor.u32 %v5821_v61, %v5157_v42  ;;  %v5819_v42 = vld [vmem:[%s10170_s1 + $0x24] sm:$0xf]  ;;  %v1093_v47 = vsel %vm1051_vm4, %v6903_v0, %v6898_v45 }
 0x19b   :  { %469 = vrot.lane.b32.xlu0 %v6960_v7, %s5997_s14  ;;  %681 = vrot.lane.b32.xlu2 %v7103_v57, %s5996_s13  ;;  %v7340_v45 = vsel %vm1148_vm5, %v1093_v47, %v6858_v31 }
 0x19c   :  { %v556_v18 = vpop.permute.xlu1 %555 }
 0x19d   :  { %v450_v5 = vpop.permute.xlu0 %449  ;;  %5219 = vmatmul.msk.bf16.gmra.mxu1 %vm1399_vm3, %v6848_v51 }
 0x19e   :  { %v893_v7 = vsel %vm809_vm1, %v6494_v24, %v450_v5  ;;  %v1562_v30 = vpop.f32.mrf.mxu0  ;;  %5246 = vmatmul.msk.bf16.gmra.mxu2 %vm1399_vm3, %v7194_v8  ;;  %5269 = vmatmul.msk.bf16.gmra.mxu3 %vm1399_vm3, %v6858_v31  ;;  %v7220_v24 = vld [vmem:[%s10169_s0 + $0x168] sm:$0xff]  ;;  %v7225_v5 = vsel %vm1148_vm5, %v6826_v17, %v6848_v51  ;;  %v5817_v51 = vld [vmem:[%s10170_s1 + $0x14] sm:$0xf]  ;;  %v5815_v8 = vld [vmem:[%s10170_s1 + $0x4] sm:$0xf] }
 0x19f   :  { %v7211_v20 = vsel %vm954_vm2, %v893_v7, %v556_v18  ;;  %v7213_v22 = vadd.f32 %v1811_v28, %v1562_v30  ;;  %2005 = vmatpush.bf16.msrb.mxu2 %v5160_v43  ;;  %v5149_v7 = vld [vmem:[%s10170_s1 + $0x28] sm:$0xf0]  ;;  %v5141_v30 = vld [vmem:[%s10170_s1 + $0x18] sm:$0xf0] }
 0x1a0   :  { %v5152_v18 = vor.u32 %v5819_v42, %v5149_v7  ;;  %v5144_v42 = vor.u32 %v5817_v51, %v5141_v30 }
 0x1a1   :  { %1601 = vmatmul.bf16.gmra.mxu0 %v7225_v5  ;;  %v7230_v28 = vpop.f32.mrf.mxu3 }
 0x1a2   :  { %10359 = vst [vmem:[#allocation39_spill] sm:$0xff] %v7230_v28  ;;  %v1813_v17 = vpop.f32.mrf.mxu1  ;;  %471 = vrot.lane.b32.xlu1 %v6990_v21, %s5997_s14  ;;  %v7255_v21 = vld [vmem:[%s10169_s0 + $0x170] sm:$0xff] }
 0x1a3   :  { %787 = vrot.lane.b32.xlu0 %v7220_v24, %s5998_s23  ;;  %2006 = vmatpush.bf16.msrb.mxu2 %v5152_v18 }
 0x1a4   :  { %577 = vrot.lane.b32.xlu2 %v7074_v50, %s5999_s24 }
 0x1a5   :  { %v7257_v18 = vpop.permute.xlu0 %767 }
 0x1a6   :  { %v1564_v43 = vpop.f32.mrf.mxu0 }
 0x1a7   :  { %v7250_v7 = vadd.f32 %v1813_v17, %v1564_v43  ;;  %2007 = vmatpush.bf16.msrb.mxu2 %v5144_v42  ;;  %v5133_v17 = vld [vmem:[%s10170_s1 + $0x8] sm:$0xf0]  ;;  %v7273_v43 = vpop.permute.xlu1 %805 }
 0x1a8   :  { %v5136_v51 = vor.u32 %v5815_v8, %v5133_v17  ;;  %10361 = vst [vmem:[#allocation41_spill] sm:$0xff] %v7273_v43  ;;  %v7288_v17 = vsel %vm1148_vm5, %v6881_v38, %v6876_v10 }
 0x1a9   :  { %v7261_v28 = vpop.f32.mrf.mxu3 }
 0x1aa   :  { %10360 = vst [vmem:[#allocation40_spill] sm:$0xff] %v7261_v28  ;;  %v1816_v30 = vpop.f32.mrf.mxu1  ;;  %789 = vrot.lane.b32.xlu1 %v7255_v21, %s5998_s23 }
 0x1ab   :  { %683 = vrot.lane.b32.xlu0 %v7165_v1, %s5996_s13  ;;  %2008 = vmatpush.bf16.msrb.mxu2 %v5136_v51 }
 0x1ac   :  { %473 = vrot.lane.b32.xlu2 %v7037_v15, %s5997_s14 }
 0x1ad   :  { %5220 = vmatmul.msk.bf16.gmra.mxu1 %vm1399_vm3, %v6876_v10  ;;  %v7295_v61 = vpop.permute.xlu0 %557  ;;  %v7304_v10 = vld [vmem:[%s10169_s0 + $0x178] sm:$0xff] }
 0x1ae   :  { %v1567_v42 = vpop.f32.mrf.mxu0  ;;  %5247 = vmatmul.msk.bf16.gmra.mxu2 %vm1399_vm3, %v7273_v43  ;;  %5270 = vmatmul.msk.bf16.gmra.mxu3 %vm1399_vm3, %v6944_v23 }
 0x1af   :  { %v7281_v8 = vadd.f32 %v1816_v30, %v1567_v42 }
 0x1b1   :  { %1606 = vmatmul.bf16.gmra.mxu0 %v7288_v17  ;;  %v7293_v51 = vpop.f32.mrf.mxu3 }
 0x1b2   :  { %10362 = vst [vmem:[#allocation42_spill] sm:$0xff] %v7293_v51  ;;  %v1818_v30 = vpop.f32.mrf.mxu1  ;;  %685 = vrot.lane.b32.xlu1 %v7220_v24, %s5996_s13 }
 0x1b3   :  { %579 = vrot.lane.b32.xlu0 %v7103_v57, %s5999_s24 }
 0x1b4   :  { %791 = vrot.lane.b32.xlu2 %v7304_v10, %s5998_s23 }
 0x1b5   :  { %v7318_v28 = vpop.permute.xlu0 %807 }
 0x1b6   :  { %v1569_v38 = vpop.f32.mrf.mxu0  ;;  %10364 = vst [vmem:[#allocation44_spill] sm:$0xff] %v7318_v28 }
 0x1b7   :  { %v7308_v42 = vadd.f32 %v1818_v30, %v1569_v38  ;;  %v7336_v38 = vld [vmem:[%s10169_s0 + $0x180] sm:$0xff] }
 0x1b9   :  { %v7312_v51 = vpop.f32.mrf.mxu3 }
 0x1ba   :  { %10363 = vst [vmem:[#allocation43_spill] sm:$0xff] %v7312_v51  ;;  %v1821_v43 = vpop.f32.mrf.mxu1  ;;  %581 = vrot.lane.b32.xlu1 %v7165_v1, %s5999_s24 }
 0x1bb   :  { %475 = vrot.lane.b32.xlu0 %v7074_v50, %s5997_s14 }
 0x1bc   :  { %687 = vrot.lane.b32.xlu2 %v7255_v21, %s5996_s13 }
 0x1bd   :  { %5221 = vmatmul.msk.bf16.gmra.mxu1 %vm1399_vm3, %v6858_v31  ;;  %v7356_v31 = vld [vmem:[%s10169_s0 + $0x188] sm:$0xff] }
 0x1be   :  { %v1572_v30 = vpop.f32.mrf.mxu0  ;;  %5248 = vmatmul.msk.bf16.gmra.mxu2 %vm1399_vm3, %v7318_v28  ;;  %5271 = vmatmul.msk.bf16.gmra.mxu3 %vm1399_vm3, %v6976_v39 }
 0x1bf   :  { %v7329_v50 = vadd.f32 %v1821_v43, %v1572_v30 }
 0x1c1   :  { %1611 = vmatmul.bf16.gmra.mxu0 %v7340_v45  ;;  %v7343_v0 = vpop.f32.mrf.mxu3 }
 0x1c2   :  { %10365 = vst [vmem:[#allocation45_spill] sm:$0xff] %v7343_v0  ;;  %v1823_v43 = vpop.f32.mrf.mxu1  ;;  %477 = vrot.lane.b32.xlu1 %v7103_v57, %s5997_s14 }
 0x1c3   :  { %793 = vrot.lane.b32.xlu0 %v7336_v38, %s5998_s23 }
 0x1c4   :  { %583 = vrot.lane.b32.xlu2 %v7220_v24, %s5999_s24 }
 0x1c6   :  { %v1574_v30 = vpop.f32.mrf.mxu0 }
 0x1c7   :  { %v7351_v15 = vadd.f32 %v1823_v43, %v1574_v30  ;;  %v7376_v30 = vsel %vm1148_vm5, %v6936_v55, %v6944_v23 }
 0x1c9   :  { %v7358_v47 = vpop.f32.mrf.mxu3 }
 0x1ca   :  { %10366 = vst [vmem:[#allocation46_spill] sm:$0xff] %v7358_v47  ;;  %v1826_v28 = vpop.f32.mrf.mxu1  ;;  %795 = vrot.lane.b32.xlu1 %v7356_v31, %s5998_s23  ;;  %v5862_v47 = vld [vmem:[%s10171_s3 + $0xe4] sm:$0xf0] }
 0x1cb   :  { %689 = vrot.lane.b32.xlu0 %v7304_v10, %s5996_s13 }
 0x1cc   :  { %479 = vrot.lane.b32.xlu2 %v7165_v1, %s5997_s14  ;;  %v5809_v1 = vld [vmem:[%s10169_s0 + $0x190] sm:$0xff] }
 0x1cd   :  { %5222 = vmatmul.msk.bf16.gmra.mxu1 %vm1399_vm3, %v6944_v23 }
 0x1ce   :  { %v1577_v57 = vpop.f32.mrf.mxu0  ;;  %2009 = vmatmul.bf16.vlgmr.msrb.gmra.mxu2 %v6312_v63  ;;  %5272 = vmatmul.msk.bf16.gmra.mxu3 %vm1399_vm3, %v6983_v11 }
 0x1cf   :  { %v7369_v43 = vadd.f32 %v1826_v28, %v1577_v57 }
 0x1d1   :  { %1616 = vmatmul.bf16.gmra.mxu0 %v7376_v30  ;;  %v7379_v51 = vpop.f32.mrf.mxu3 }
 0x1d2   :  { %10367 = vst [vmem:[#allocation47_spill] sm:$0xff] %v7379_v51  ;;  %v1828_v63 = vpop.f32.mrf.mxu1  ;;  %691 = vrot.lane.b32.xlu1 %v7336_v38, %s5996_s13  ;;  %v5411_v51 = vld [vmem:[%s10171_s3 + $0xe0] sm:$0xf] }
 0x1d3   :  { %585 = vrot.lane.b32.xlu0 %v7255_v21, %s5999_s24  ;;  %v5412_v0 = vor.u32 %v5862_v47, %v5411_v51 }
 0x1d4   :  { %797 = vrot.lane.b32.xlu2 %v5809_v1, %s5998_s23 }
 0x1d5   :  { %3505 = vmatpush.bf16.msrb.mxu3 %v5412_v0 }
 0x1d6   :  { %v1579_v28 = vpop.f32.mrf.mxu0 }
 0x1d7   :  { %v7389_v55 = vadd.f32 %v1828_v63, %v1579_v28  ;;  %v7415_v28 = vsel %vm1148_vm5, %v6981_v34, %v6976_v39 }
 0x1d9   :  { %v7391_v23 = vpop.f32.mrf.mxu3 }
 0x1da   :  { %v1831_v57 = vpop.f32.mrf.mxu1  ;;  %587 = vrot.lane.b32.xlu1 %v7304_v10, %s5999_s24 }
 0x1db   :  { %481 = vrot.lane.b32.xlu0 %v7220_v24, %s5997_s14 }
 0x1dc   :  { %693 = vrot.lane.b32.xlu2 %v7356_v31, %s5996_s13 }
 0x1dd   :  { %5223 = vmatmul.msk.bf16.gmra.mxu1 %vm1399_vm3, %v6976_v39 }
 0x1de   :  { %v1582_v63 = vpop.f32.mrf.mxu0  ;;  %2014 = vmatmul.bf16.gmra.mxu2 %v6351_v25  ;;  %5273 = vmatmul.msk.bf16.gmra.mxu3 %vm1399_vm3, %v7059_v37  ;;  %v5347_v25 = vld [vmem:[%s10171_s3 + $0x60] sm:$0xf] }
 0x1df   :  { %v7408_v24 = vadd.f32 %v1831_v57, %v1582_v63  ;;  %v5846_v57 = vld [vmem:[%s10171_s3 + $0x64] sm:$0xf0] }
 0x1e0   :  { %v5348_v34 = vor.u32 %v5846_v57, %v5347_v25  ;;  %v1099_v25 = vsel %vm1051_vm4, %v7012_v41, %v7007_v52 }
 0x1e1   :  { %1621 = vmatmul.bf16.gmra.mxu0 %v7415_v28  ;;  %v7420_v47 = vpop.f32.mrf.mxu3 }
 0x1e2   :  { %10368 = vst [vmem:[#allocation48_spill] sm:$0xff] %v7420_v47  ;;  %v1833_v39 = vpop.f32.mrf.mxu1  ;;  %589 = vrot.lane.b32.xlu1 %v7336_v38, %s5999_s24  ;;  %3416 = vmatpush.bf16.msrb.mxu1 %v5348_v34 }
 0x1e3   :  { %483 = vrot.lane.b32.xlu0 %v7255_v21, %s5997_s14 }
 0x1e4   :  { %695 = vrot.lane.b32.xlu2 %v5809_v1, %s5996_s13 }
 0x1e6   :  { %v1584_v0 = vpop.f32.mrf.mxu0 }
 0x1e7   :  { %v7433_v63 = vadd.f32 %v1833_v39, %v1584_v0 }
 0x1e9   :  { %v7437_v47 = vpop.f32.mrf.mxu3 }
 0x1ea   :  { %10369 = vst [vmem:[#allocation49_spill] sm:$0xff] %v7437_v47  ;;  %v1836_v21 = vpop.f32.mrf.mxu1  ;;  %591 = vrot.lane.b32.xlu1 %v7356_v31, %s5999_s24 }
 0x1eb   :  { %485 = vrot.lane.b32.xlu0 %v7304_v10, %s5997_s14  ;;  %v7457_v10 = vsel %vm1148_vm5, %v1099_v25, %v6983_v11 }
 0x1ec   :  { %697 = vrot.lane.b32.xlu2 %v6650_v60, %s5996_s13 }
 0x1ed   :  { %5224 = vmatmul.msk.bf16.gmra.mxu1 %vm1399_vm3, %v6983_v11 }
 0x1ee   :  { %v1587_v57 = vpop.f32.mrf.mxu0  ;;  %2019 = vmatmul.bf16.gmra.mxu2 %v6387_v36  ;;  %5274 = vmatmul.msk.bf16.gmra.mxu3 %vm1399_vm3, %v7090_v44 }
 0x1ef   :  { %v7451_v39 = vadd.f32 %v1836_v21, %v1587_v57 }
 0x1f1   :  { %1626 = vmatmul.bf16.gmra.mxu0 %v7457_v10  ;;  %v7462_v41 = vpop.f32.mrf.mxu3 }
 0x1f2   :  { %10370 = vst [vmem:[#allocation50_spill] sm:$0xff] %v7462_v41  ;;  %v1838_v36 = vpop.f32.mrf.mxu1  ;;  %593 = vrot.lane.b32.xlu1 %v5809_v1, %s5999_s24 }
 0x1f3   :  { %487 = vrot.lane.b32.xlu0 %v7336_v38, %s5997_s14 }
 0x1f4   :  { %699 = vrot.lane.b32.xlu2 %v6707_v4, %s5996_s13 }
 0x1f6   :  { %v1589_v34 = vpop.f32.mrf.mxu0 }
 0x1f7   :  { %v7469_v0 = vadd.f32 %v1838_v36, %v1589_v34  ;;  %v662_v34 = vpop.permute.xlu2 %661 }
 0x1f9   :  { %v7473_v21 = vpop.f32.mrf.mxu3 }
 0x1fa   :  { %10371 = vst [vmem:[#allocation51_spill] sm:$0xff] %v7473_v21  ;;  %v1841_v25 = vpop.f32.mrf.mxu1  ;;  %595 = vrot.lane.b32.xlu1 %v6650_v60, %s5999_s24 }
 0x1fb   :  { %489 = vrot.lane.b32.xlu0 %v7356_v31, %s5997_s14  ;;  %v7491_v31 = vsel %vm1148_vm5, %v7047_v54, %v7059_v37 }
 0x1fc   :  { %701 = vrot.lane.b32.xlu2 %v6750_v33, %s5996_s13 }
 0x1fd   :  { %5225 = vmatmul.msk.bf16.gmra.mxu1 %vm1399_vm3, %v7059_v37  ;;  %v7514_v37 = vsel %vm1148_vm5, %v7096_v2, %v7090_v44 }
 0x1fe   :  { %v1592_v38 = vpop.f32.mrf.mxu0  ;;  %2024 = vmatmul.bf16.gmra.mxu2 %v6426_v49  ;;  %5275 = vmatmul.msk.bf16.gmra.mxu3 %vm1399_vm3, %v7167_v26 }
 0x1ff   :  { %v7484_v4 = vadd.f32 %v1841_v25, %v1592_v38  ;;  %v452_v51 = vpop.permute.xlu2 %451 }
 0x200   :  { %v7494_v60 = vpop.f32.mrf.mxu2 }
 0x201   :  { %10372 = vst [vmem:[#allocation52_spill] sm:$0xff] %v7484_v4  ;;  %1631 = vmatmul.bf16.gmra.mxu0 %v7491_v31  ;;  %v7496_v33 = vpop.f32.mrf.mxu3 }
 0x202   :  { %10373 = vst [vmem:[#allocation53_spill] sm:$0xff] %v7494_v60  ;;  %v1843_v1 = vpop.f32.mrf.mxu1 }
 0x203   :  { %10374 = vst [vmem:[#allocation54_spill] sm:$0xff] %v7496_v33 }
 0x206   :  { %v1594_v57 = vpop.f32.mrf.mxu0 }
 0x207   :  { %v7498_v36 = vadd.f32 %v1843_v1, %v1594_v57  ;;  %v7527_v41 = vpop.permute.xlu2 %769 }
 0x208   :  { %v7500_v49 = vpop.f32.mrf.mxu2 }
 0x209   :  { %10375 = vst [vmem:[#allocation55_spill] sm:$0xff] %v7498_v36  ;;  %v7502_v25 = vpop.f32.mrf.mxu3 }
 0x20a   :  { %10376 = vst [vmem:[#allocation56_spill] sm:$0xff] %v7500_v49  ;;  %v1846_v38 = vpop.f32.mrf.mxu1 }
 0x20b   :  { %10377 = vst [vmem:[#allocation57_spill] sm:$0xff] %v7502_v25 }
 0x20d   :  { %5226 = vmatmul.msk.bf16.gmra.mxu1 %vm1399_vm3, %v7090_v44 }
 0x20e   :  { %v1597_v11 = vpop.f32.mrf.mxu0  ;;  %2029 = vmatmul.bf16.gmra.mxu2 %v6459_v12  ;;  %5276 = vmatmul.msk.bf16.gmra.mxu3 %vm1399_vm3, %v7257_v18 }
 0x20f   :  { %v7507_v54 = vadd.f32 %v1846_v38, %v1597_v11  ;;  %v664_v38 = vpop.permute.xlu1 %663 }
 0x211   :  { %10378 = vst [vmem:[#allocation58_spill] sm:$0xff] %v7507_v54  ;;  %1636 = vmatmul.bf16.gmra.mxu0 %v7514_v37  ;;  %v7517_v1 = vpop.f32.mrf.mxu2  ;;  %v7519_v57 = vpop.f32.mrf.mxu3 }
 0x212   :  { %10379 = vst [vmem:[#allocation59_spill] sm:$0xff] %v7517_v1  ;;  %v1848_v52 = vpop.f32.mrf.mxu1 }
 0x213   :  { %10380 = vst [vmem:[#allocation60_spill] sm:$0xff] %v7519_v57 }
 0x216   :  { %v1599_v49 = vpop.f32.mrf.mxu0 }
 0x217   :  { %v7521_v12 = vadd.f32 %v1848_v52, %v1599_v49  ;;  %v7539_v52 = vsel %vm1148_vm5, %v7178_v35, %v7167_v26  ;;  %v560_v35 = vpop.permute.xlu2 %559 }
 0x218   :  { %10385 = vst [vmem:[#allocation65_spill] sm:$0xff] %v7539_v52 }
 0x219   :  { %10381 = vst [vmem:[#allocation61_spill] sm:$0xff] %v7521_v12  ;;  %v7523_v11 = vpop.f32.mrf.mxu2  ;;  %v7525_v60 = vpop.f32.mrf.mxu3 }
 0x21a   :  { %10382 = vst [vmem:[#allocation62_spill] sm:$0xff] %v7523_v11  ;;  %v1851_v21 = vpop.f32.mrf.mxu1 }
 0x21b   :  { %10383 = vst [vmem:[#allocation63_spill] sm:$0xff] %v7525_v60 }
 0x21d   :  { %5227 = vmatmul.msk.bf16.gmra.mxu1 %vm1399_vm3, %v7167_v26 }
 0x21e   :  { %v1602_v2 = vpop.f32.mrf.mxu0  ;;  %2034 = vmatmul.bf16.gmra.mxu2 %v6500_v29  ;;  %5277 = vmatmul.msk.bf16.gmra.mxu3 %vm1399_vm3, %v7527_v41 }
 0x21f   :  { %v7532_v44 = vadd.f32 %v1851_v21, %v1602_v2  ;;  %v7548_v21 = vpop.permute.xlu1 %453 }
 0x221   :  { %10384 = vst [vmem:[#allocation64_spill] sm:$0xff] %v7532_v44  ;;  %1641 = vmatmul.bf16.gmra.mxu0 %v7539_v52  ;;  %v7544_v11 = vpop.f32.mrf.mxu2  ;;  %v7546_v1 = vpop.f32.mrf.mxu3  ;;  %v10405_v44 = vld [vmem:[#allocation9_spill] sm:$0xff] }
 0x222   :  { %10386 = vst [vmem:[#allocation66_spill] sm:$0xff] %v7544_v11  ;;  %v1853_v29 = vpop.f32.mrf.mxu1  ;;  %v1107_v11 = vsel %vm1051_vm4, %v7211_v20, %v662_v34 }
 0x223   :  { %10387 = vst [vmem:[#allocation67_spill] sm:$0xff] %v7546_v1  ;;  %v7571_v57 = vsel %vm1148_vm5, %v1107_v11, %v7257_v18  ;;  %v456_v11 = vpop.permute.xlu2 %455 }
 0x224   :  { %10392 = vst [vmem:[#allocation72_spill] sm:$0xff] %v7571_v57 }
 0x226   :  { %v1604_v2 = vpop.f32.mrf.mxu0 }
 0x227   :  { %v7550_v60 = vadd.f32 %v1853_v29, %v1604_v2  ;;  %v7560_v47 = vpop.permute.xlu1 %771  ;;  %v666_v2 = vpop.permute.xlu0 %665 }
 0x229   :  { %10388 = vst [vmem:[#allocation68_spill] sm:$0xff] %v7550_v60  ;;  %v7554_v26 = vpop.f32.mrf.mxu2  ;;  %v7556_v25 = vpop.f32.mrf.mxu3 }
 0x22a   :  { %10389 = vst [vmem:[#allocation69_spill] sm:$0xff] %v7554_v26  ;;  %v1856_v49 = vpop.f32.mrf.mxu1 }
 0x22b   :  { %10390 = vst [vmem:[#allocation70_spill] sm:$0xff] %v7556_v25  ;;  %v774_v60 = vpop.permute.xlu2 %773 }
 0x22d   :  { %5228 = vmatmul.msk.bf16.gmra.mxu1 %vm1399_vm3, %v7257_v18  ;;  %v5547_v18 = vld [vmem:[%s10171_s3 + $0x1f0] sm:$0xf] }
 0x22e   :  { %v1607_v1 = vpop.f32.mrf.mxu0  ;;  %2039 = vmatmul.bf16.gmra.mxu2 %v6541_v46  ;;  %5278 = vmatmul.msk.bf16.gmra.mxu3 %vm1399_vm3, %v7560_v47 }
 0x22f   :  { %v7565_v29 = vadd.f32 %v1856_v49, %v1607_v1  ;;  %v5403_v1 = vld [vmem:[%s10171_s3 + $0xd0] sm:$0xf]  ;;  %v5860_v49 = vld [vmem:[%s10171_s3 + $0xd4] sm:$0xf0] }
 0x230   :  { %v5404_v20 = vor.u32 %v5860_v49, %v5403_v1  ;;  %v5339_v1 = vld [vmem:[%s10171_s3 + $0x50] sm:$0xf]  ;;  %v5844_v49 = vld [vmem:[%s10171_s3 + $0x54] sm:$0xf0] }
 0x231   :  { %10391 = vst [vmem:[#allocation71_spill] sm:$0xff] %v7565_v29  ;;  %1646 = vmatmul.bf16.gmra.mxu0 %v7571_v57  ;;  %v7576_v34 = vpop.f32.mrf.mxu2  ;;  %v7578_v26 = vpop.f32.mrf.mxu3  ;;  %v5974_v29 = vld [vmem:[%s10169_s0 + $0xe0] sm:$0xff] }
 0x232   :  { %10393 = vst [vmem:[#allocation73_spill] sm:$0xff] %v7576_v34  ;;  %v1858_v46 = vpop.f32.mrf.mxu1  ;;  %v5896_v34 = vld [vmem:[%s10171_s3 + $0x1f4] sm:$0xf0]  ;;  %3506 = vmatpush.bf16.msrb.mxu3 %v5404_v20  ;;  %v896_v54 = vsel %vm809_vm1, %v5974_v29, %v452_v51  ;;  %v668_v20 = vpop.permute.xlu1 %667 }
 0x233   :  { %10394 = vst [vmem:[#allocation74_spill] sm:$0xff] %v7578_v26  ;;  %v5548_v26 = vor.u32 %v5896_v34, %v5547_v18  ;;  %v5340_v34 = vor.u32 %v5844_v49, %v5339_v1  ;;  %v1012_v51 = vsel %vm954_vm2, %v896_v54, %v7295_v61  ;;  %v10398_v1 = vld [vmem:[#allocation7_spill] sm:$0xff] }
 0x235   :  { %3682 = vmatpush.bf16.msra.mxu2 %v5548_v26  ;;  %3417 = vmatpush.bf16.msrb.mxu1 %v5340_v34 }
 0x236   :  { %v1609_v25 = vpop.f32.mrf.mxu0 }
 0x237   :  { %v7596_v57 = vadd.f32 %v1858_v46, %v1609_v25  ;;  %v562_v25 = vpop.permute.xlu0 %561  ;;  %v1109_v46 = vsel %vm1051_vm4, %v1012_v51, %v664_v38 }
 0x238   :  { %v7621_v61 = vsel %vm1148_vm5, %v1109_v46, %v7527_v41 }
 0x239   :  { %10395 = vst [vmem:[#allocation75_spill] sm:$0xff] %v7596_v57  ;;  %v7606_v18 = vpop.f32.mrf.mxu2  ;;  %v7610_v29 = vpop.f32.mrf.mxu3 }
 0x23a   :  { %10396 = vst [vmem:[#allocation76_spill] sm:$0xff] %v7606_v18  ;;  %v1861_v26 = vpop.f32.mrf.mxu1 }
 0x23b   :  { %10397 = vst [vmem:[#allocation77_spill] sm:$0xff] %v7610_v29  ;;  %v564_v29 = vpop.permute.xlu1 %563 }
 0x23c   :  { %10400 = vst [vmem:[#allocation78_spill] sm:$0xff] %v7621_v61 }
 0x23d   :  { %5229 = vmatmul.msk.bf16.gmra.mxu1 %vm1399_vm3, %v7527_v41 }
 0x23e   :  { %v1612_v36 = vpop.f32.mrf.mxu0  ;;  %2044 = vmatmul.bf16.gmra.mxu2 %v10398_v1  ;;  %5279 = vmatmul.msk.bf16.gmra.mxu3 %vm1399_vm3, %v774_v60 }
 0x23f   :  { %v7616_v49 = vadd.f32 %v1861_v26, %v1612_v36  ;;  %v458_v51 = vpop.permute.xlu0 %457  ;;  %v5975_v36 = vld [vmem:[%s10169_s0 + $0xe8] sm:$0xff] }
 0x240   :  { %v899_v26 = vsel %vm809_vm1, %v5975_v36, %v7548_v21 }
 0x241   :  { %10399 = vst [vmem:[#allocation7_spill] sm:$0xff] %v7616_v49  ;;  %1651 = vmatmul.bf16.gmra.mxu0 %v7621_v61  ;;  %v7624_v54 = vpop.f32.mrf.mxu2  ;;  %v7626_v38 = vpop.f32.mrf.mxu3  ;;  %v1014_v46 = vsel %vm954_vm2, %v899_v26, %v560_v35 }
 0x242   :  { %10401 = vst [vmem:[#allocation79_spill] sm:$0xff] %v7624_v54  ;;  %v1863_v34 = vpop.f32.mrf.mxu1  ;;  %v1111_v61 = vsel %vm1051_vm4, %v1014_v46, %v666_v2 }
 0x243   :  { %10402 = vst [vmem:[#allocation80_spill] sm:$0xff] %v7626_v38  ;;  %v7649_v35 = vsel %vm1148_vm5, %v1111_v61, %v7560_v47  ;;  %v460_v36 = vpop.permute.xlu1 %459 }
 0x244   :  { %10407 = vst [vmem:[#allocation83_spill] sm:$0xff] %v7649_v35 }
 0x246   :  { %v1614_v18 = vpop.f32.mrf.mxu0 }
 0x247   :  { %v7633_v1 = vadd.f32 %v1863_v34, %v1614_v18  ;;  %v776_v57 = vpop.permute.xlu0 %775  ;;  %v670_v18 = vpop.permute.xlu2 %669 }
 0x249   :  { %v7635_v41 = vpop.f32.mrf.mxu2  ;;  %v7638_v54 = vpop.f32.mrf.mxu3 }
 0x24a   :  { %10403 = vst [vmem:[#allocation81_spill] sm:$0xff] %v7635_v41  ;;  %v1866_v38 = vpop.f32.mrf.mxu1 }
 0x24b   :  { %10404 = vst [vmem:[#allocation82_spill] sm:$0xff] %v7638_v54 }
 0x24d   :  { %5230 = vmatmul.msk.bf16.gmra.mxu1 %vm1399_vm3, %v7560_v47 }
 0x24e   :  { %v1617_v12 = vpop.f32.mrf.mxu0  ;;  %2049 = vmatmul.bf16.gmra.mxu2 %v10405_v44  ;;  %5280 = vmatmul.msk.bf16.gmra.mxu3 %vm1399_vm3, %v776_v57 }
 0x24f   :  { %v7644_v21 = vadd.f32 %v1866_v38, %v1617_v12  ;;  %v5976_v12 = vld [vmem:[%s10169_s0 + $0xf0] sm:$0xff]  ;;  %v566_v61 = vpop.permute.xlu2 %565 }
 0x250   :  { %v902_v44 = vsel %vm809_vm1, %v5976_v12, %v456_v11  ;;  %v672_v11 = vpop.permute.xlu0 %671 }
 0x251   :  { %10406 = vst [vmem:[#allocation9_spill] sm:$0xff] %v7644_v21  ;;  %1656 = vmatmul.bf16.gmra.mxu0 %v7649_v35  ;;  %v7652_v34 = vpop.f32.mrf.mxu2  ;;  %v7654_v26 = vpop.f32.mrf.mxu3  ;;  %v1016_v47 = vsel %vm954_vm2, %v902_v44, %v562_v25 }
 0x252   :  { %10408 = vst [vmem:[#allocation84_spill] sm:$0xff] %v7652_v34  ;;  %v1868_v2 = vpop.f32.mrf.mxu1  ;;  %v1113_v34 = vsel %vm1051_vm4, %v1016_v47, %v668_v20  ;;  %v778_v35 = vpop.permute.xlu1 %777 }
 0x253   :  { %10409 = vst [vmem:[#allocation85_spill] sm:$0xff] %v7654_v26  ;;  %v10411_v26 = vld [vmem:[#allocation12_spill] sm:$0xff] }
 0x256   :  { %v1619_v46 = vpop.f32.mrf.mxu0 }
 0x257   :  { %v7660_v38 = vadd.f32 %v1868_v2, %v1619_v46  ;;  %v7674_v2 = vsel %vm1148_vm5, %v1113_v34, %v774_v60  ;;  %v462_v12 = vpop.permute.xlu2 %461 }
 0x259   :  { %v7662_v41 = vpop.f32.mrf.mxu2  ;;  %v7668_v33 = vpop.f32.mrf.mxu3 }
 0x25a   :  { %10410 = vst [vmem:[#allocation86_spill] sm:$0xff] %v7662_v41  ;;  %v1871_v54 = vpop.f32.mrf.mxu1 }
 0x25b   :  { %10412 = vst [vmem:[#allocation12_spill] sm:$0xff] %v7668_v33 }
 0x25d   :  { %5231 = vmatmul.msk.bf16.gmra.mxu1 %vm1399_vm3, %v774_v60 }
 0x25e   :  { %v1622_v4 = vpop.f32.mrf.mxu0  ;;  %2054 = vmatmul.bf16.gmra.mxu2 %v10411_v26  ;;  %5281 = vmatmul.msk.bf16.gmra.mxu3 %vm1399_vm3, %v778_v35 }
 0x25f   :  { %v7670_v52 = vadd.f32 %v1871_v54, %v1622_v4  ;;  %v5977_v4 = vld [vmem:[%s10169_s0 + $0xf8] sm:$0xff] }
 0x260   :  { %v905_v54 = vsel %vm809_vm1, %v5977_v4, %v458_v51 }
 0x261   :  { %10413 = vst [vmem:[#allocation87_spill] sm:$0xff] %v7670_v52  ;;  %1661 = vmatmul.bf16.gmra.mxu0 %v7674_v2  ;;  %v7679_v20 = vpop.f32.mrf.mxu2  ;;  %v7687_v60 = vpop.f32.mrf.mxu3  ;;  %v1018_v25 = vsel %vm954_vm2, %v905_v54, %v564_v29 }
 0x262   :  { %10414 = vst [vmem:[#allocation88_spill] sm:$0xff] %v7679_v20  ;;  %v1873_v46 = vpop.f32.mrf.mxu1  ;;  %v568_v20 = vpop.permute.xlu0 %567  ;;  %v1115_v33 = vsel %vm1051_vm4, %v1018_v25, %v670_v18 }
 0x263   :  { %10415 = vst [vmem:[#allocation89_spill] sm:$0xff] %v7687_v60  ;;  %v7695_v52 = vpop.permute.xlu2 %779 }
 0x266   :  { %v1624_v26 = vpop.f32.mrf.mxu0 }
 0x267   :  { %v7685_v44 = vadd.f32 %v1873_v46, %v1624_v26  ;;  %v674_v46 = vpop.permute.xlu1 %673  ;;  %v7704_v26 = vsel %vm1148_vm5, %v1115_v33, %v776_v57 }
 0x269   :  { %v7691_v47 = vpop.f32.mrf.mxu2  ;;  %v7711_v25 = vpop.f32.mrf.mxu3 }
 0x26a   :  { %10416 = vst [vmem:[#allocation90_spill] sm:$0xff] %v7691_v47  ;;  %v1876_v41 = vpop.f32.mrf.mxu1 }
 0x26b   :  { %10419 = vst [vmem:[#allocation93_spill] sm:$0xff] %v7711_v25 }
 0x26d   :  { %5232 = vmatmul.msk.bf16.gmra.mxu1 %vm1399_vm3, %v776_v57 }
 0x26e   :  { %v1627_v49 = vpop.f32.mrf.mxu0  ;;  %2059 = vmatmul.bf16.gmra.mxu2 %v6742_v6  ;;  %5282 = vmatmul.msk.bf16.gmra.mxu3 %vm1399_vm3, %v7695_v52  ;;  %v464_v6 = vpop.permute.xlu0 %463 }
 0x26f   :  { %v7699_v51 = vadd.f32 %v1876_v41, %v1627_v49  ;;  %v5978_v41 = vld [vmem:[%s10169_s0 + $0x100] sm:$0xff]  ;;  %v570_v47 = vpop.permute.xlu1 %569 }
 0x270   :  { %v908_v54 = vsel %vm809_vm1, %v5978_v41, %v460_v36 }
 0x271   :  { %10417 = vst [vmem:[#allocation91_spill] sm:$0xff] %v7699_v51  ;;  %1666 = vmatmul.bf16.gmra.mxu0 %v7704_v26  ;;  %v7709_v18 = vpop.f32.mrf.mxu2  ;;  %v1020_v34 = vsel %vm954_vm2, %v908_v54, %v566_v61  ;;  %v7725_v60 = vpop.f32.mrf.mxu3 }
 0x272   :  { %10418 = vst [vmem:[#allocation92_spill] sm:$0xff] %v7709_v18  ;;  %v1878_v4 = vpop.f32.mrf.mxu1  ;;  %v1117_v25 = vsel %vm1051_vm4, %v1020_v34, %v672_v11 }
 0x273   :  { %10422 = vst [vmem:[#allocation96_spill] sm:$0xff] %v7725_v60  ;;  %v7736_v61 = vsel %vm1148_vm5, %v1117_v25, %v778_v35 }
 0x274   :  { %10424 = vst [vmem:[#allocation98_spill] sm:$0xff] %v7736_v61 }
 0x276   :  { %v1629_v49 = vpop.f32.mrf.mxu0  ;;  %v7727_v51 = vpop.permute.xlu0 %781 }
 0x277   :  { %v7717_v33 = vadd.f32 %v1878_v4, %v1629_v49  ;;  %v676_v4 = vpop.permute.xlu2 %675  ;;  %v7741_v49 = vpop.permute.xlu1 %465 }
 0x279   :  { %10420 = vst [vmem:[#allocation94_spill] sm:$0xff] %v7717_v33  ;;  %v7721_v29 = vpop.f32.mrf.mxu2 }
 0x27a   :  { %10421 = vst [vmem:[#allocation95_spill] sm:$0xff] %v7721_v29  ;;  %v1881_v18 = vpop.f32.mrf.mxu1  ;;  %v5858_v29 = vld [vmem:[%s10171_s3 + $0xc4] sm:$0xf0] }
 0x27d   :  { %5233 = vmatmul.msk.bf16.gmra.mxu1 %vm1399_vm3, %v778_v35 }
 0x27e   :  { %v1632_v21 = vpop.f32.mrf.mxu0  ;;  %2064 = vmatmul.bf16.gmra.mxu2 %v6805_v40  ;;  %5283 = vmatmul.msk.bf16.gmra.mxu3 %vm1399_vm3, %v7727_v51  ;;  %v5979_v40 = vld [vmem:[%s10169_s0 + $0x108] sm:$0xff] }
 0x27f   :  { %v7731_v36 = vadd.f32 %v1881_v18, %v1632_v21  ;;  %v911_v21 = vsel %vm809_vm1, %v5979_v40, %v462_v12  ;;  %v7747_v18 = vpop.f32.mrf.mxu3  ;;  %v572_v57 = vpop.permute.xlu2 %571  ;;  %v5331_v12 = vld [vmem:[%s10171_s3 + $0x40] sm:$0xf] }
 0x280   :  { %10426 = vst [vmem:[#allocation100_spill] sm:$0xff] %v7747_v18  ;;  %v1022_v25 = vsel %vm954_vm2, %v911_v21, %v568_v20  ;;  %v784_v40 = vpop.permute.xlu1 %783 }
 0x281   :  { %10423 = vst [vmem:[#allocation97_spill] sm:$0xff] %v7731_v36  ;;  %1671 = vmatmul.bf16.gmra.mxu0 %v7736_v61  ;;  %v7739_v11 = vpop.f32.mrf.mxu2 }
 0x282   :  { %10425 = vst [vmem:[#allocation99_spill] sm:$0xff] %v7739_v11  ;;  %v1883_v34 = vpop.f32.mrf.mxu1  ;;  %v5395_v11 = vld [vmem:[%s10171_s3 + $0xc0] sm:$0xf] }
 0x283   :  { %v5396_v61 = vor.u32 %v5858_v29, %v5395_v11  ;;  %v678_v11 = vpop.permute.xlu0 %677 }
 0x285   :  { %3507 = vmatpush.bf16.msrb.mxu3 %v5396_v61 }
 0x286   :  { %v1634_v41 = vpop.f32.mrf.mxu0 }
 0x287   :  { %v7749_v54 = vadd.f32 %v1883_v34, %v1634_v41  ;;  %v5842_v34 = vld [vmem:[%s10171_s3 + $0x44] sm:$0xf0]  ;;  %v1119_v41 = vsel %vm1051_vm4, %v1022_v25, %v674_v46  ;;  %v468_v25 = vpop.permute.xlu2 %467 }
 0x288   :  { %v5332_v20 = vor.u32 %v5842_v34, %v5331_v12  ;;  %v7777_v12 = vpop.f32.mrf.mxu3 }
 0x289   :  { %v7751_v35 = vpop.f32.mrf.mxu2  ;;  %10430 = vst [vmem:[#allocation104_spill] sm:$0xff] %v7777_v12 }
 0x28a   :  { %10427 = vst [vmem:[#allocation101_spill] sm:$0xff] %v7751_v35  ;;  %v1886_v60 = vpop.f32.mrf.mxu1  ;;  %3418 = vmatpush.bf16.msrb.mxu1 %v5332_v20  ;;  %v7775_v35 = vsel %vm1148_vm5, %v1119_v41, %v7695_v52 }
 0x28b   :  { %10429 = vst [vmem:[#allocation103_spill] sm:$0xff] %v7775_v35  ;;  %v574_v12 = vpop.permute.xlu0 %573 }
 0x28d   :  { %5234 = vmatmul.msk.bf16.gmra.mxu1 %vm1399_vm3, %v7695_v52  ;;  %v5980_v52 = vld [vmem:[%s10169_s0 + $0x110] sm:$0xff] }
 0x28e   :  { %v1637_v21 = vpop.f32.mrf.mxu0  ;;  %2069 = vmatmul.bf16.gmra.mxu2 %v6868_v56  ;;  %5284 = vmatmul.msk.bf16.gmra.mxu3 %vm1399_vm3, %v784_v40  ;;  %v5539_v56 = vld [vmem:[%s10171_s3 + $0x1e0] sm:$0xf]  ;;  %v914_v41 = vsel %vm809_vm1, %v5980_v52, %v464_v6 }
 0x28f   :  { %v7770_v29 = vadd.f32 %v1886_v60, %v1637_v21  ;;  %v5894_v60 = vld [vmem:[%s10171_s3 + $0x1e4] sm:$0xf0]  ;;  %v1024_v18 = vsel %vm954_vm2, %v914_v41, %v570_v47 }
 0x290   :  { %v5540_v34 = vor.u32 %v5894_v60, %v5539_v56  ;;  %v1121_v56 = vsel %vm1051_vm4, %v1024_v18, %v676_v4  ;;  %v786_v60 = vpop.permute.xlu2 %785 }
 0x291   :  { %10428 = vst [vmem:[#allocation102_spill] sm:$0xff] %v7770_v29  ;;  %1676 = vmatmul.bf16.gmra.mxu0 %v7775_v35  ;;  %v7780_v46 = vpop.f32.mrf.mxu2  ;;  %v7797_v35 = vpop.f32.mrf.mxu3  ;;  %v7808_v47 = vsel %vm1148_vm5, %v1121_v56, %v7727_v51 }
 0x292   :  { %10431 = vst [vmem:[#allocation105_spill] sm:$0xff] %v7780_v46  ;;  %v1888_v61 = vpop.f32.mrf.mxu1  ;;  %3683 = vmatpush.bf16.msra.mxu2 %v5540_v34 }
 0x293   :  { %10433 = vst [vmem:[#allocation107_spill] sm:$0xff] %v7797_v35  ;;  %v470_v52 = vpop.permute.xlu0 %469 }
 0x294   :  { %10435 = vst [vmem:[#allocation109_spill] sm:$0xff] %v7808_v47 }
 0x296   :  { %v1639_v20 = vpop.f32.mrf.mxu0 }
 0x297   :  { %v7792_v21 = vadd.f32 %v1888_v61, %v1639_v20  ;;  %v680_v61 = vpop.permute.xlu1 %679 }
 0x299   :  { %v7794_v46 = vpop.f32.mrf.mxu2  ;;  %v7813_v41 = vpop.f32.mrf.mxu3 }
 0x29a   :  { %10432 = vst [vmem:[#allocation106_spill] sm:$0xff] %v7794_v46  ;;  %v1891_v33 = vpop.f32.mrf.mxu1 }
 0x29b   :  { %10436 = vst [vmem:[#allocation110_spill] sm:$0xff] %v7813_v41  ;;  %v7826_v36 = vpop.permute.xlu0 %787 }
 0x29d   :  { %5235 = vmatmul.msk.bf16.gmra.mxu1 %vm1399_vm3, %v7727_v51 }
 0x29e   :  { %v1642_v34 = vpop.f32.mrf.mxu0  ;;  %2074 = vmatmul.bf16.gmra.mxu2 %v6914_v19  ;;  %5285 = vmatmul.msk.bf16.gmra.mxu3 %vm1399_vm3, %v786_v60 }
 0x29f   :  { %v7803_v6 = vadd.f32 %v1891_v33, %v1642_v34  ;;  %v5981_v33 = vld [vmem:[%s10169_s0 + $0x118] sm:$0xff]  ;;  %v576_v35 = vpop.permute.xlu1 %575 }
 0x2a0   :  { %v917_v34 = vsel %vm809_vm1, %v5981_v33, %v7741_v49 }
 0x2a1   :  { %10434 = vst [vmem:[#allocation108_spill] sm:$0xff] %v7803_v6  ;;  %1681 = vmatmul.bf16.gmra.mxu0 %v7808_v47  ;;  %v2035_v4 = vpop.f32.mrf.mxu2  ;;  %v1026_v46 = vsel %vm954_vm2, %v917_v34, %v572_v57  ;;  %v7830_v49 = vpop.f32.mrf.mxu3 }
 0x2a2   :  { %v1893_v18 = vpop.f32.mrf.mxu1  ;;  %v1123_v41 = vsel %vm1051_vm4, %v1026_v46, %v678_v11  ;;  %10438 = vst [vmem:[#allocation112_spill] sm:$0xff] %v7830_v49 }
 0x2a3   :  { %v7837_v57 = vsel %vm1148_vm5, %v1123_v41, %v784_v40 }
 0x2a4   :  { %10440 = vst [vmem:[#allocation114_spill] sm:$0xff] %v7837_v57 }
 0x2a6   :  { %v1644_v19 = vpop.f32.mrf.mxu0 }
 0x2a7   :  { %v7820_v51 = vadd.f32 %v1893_v18, %v1644_v19  ;;  %v682_v19 = vpop.permute.xlu2 %681 }
 0x2a9   :  { %10437 = vst [vmem:[#allocation111_spill] sm:$0xff] %v7820_v51  ;;  %v2037_v20 = vpop.f32.mrf.mxu2 }
 0x2aa   :  { %v1896_v6 = vpop.f32.mrf.mxu1 }
 0x2ad   :  { %5236 = vmatmul.msk.bf16.gmra.mxu1 %vm1399_vm3, %v784_v40  ;;  %v7852_v40 = vpop.f32.mrf.mxu3 }
 0x2ae   :  { %v1647_v47 = vpop.f32.mrf.mxu0  ;;  %2079 = vmatmul.bf16.gmra.mxu2 %v6965_v32  ;;  %5286 = vmatmul.msk.bf16.gmra.mxu3 %vm1399_vm3, %v7826_v36  ;;  %v7844_v32 = vpop.permute.xlu1 %471  ;;  %10442 = vst [vmem:[#allocation116_spill] sm:$0xff] %v7852_v40 }
 0x2af   :  { %v7832_v18 = vadd.f32 %v1896_v6, %v1647_v47  ;;  %v5982_v6 = vld [vmem:[%s10169_s0 + $0x120] sm:$0xff]  ;;  %v7859_v49 = vpop.permute.xlu2 %577 }
 0x2b0   :  { %v920_v47 = vsel %vm809_vm1, %v5982_v6, %v468_v25 }
 0x2b1   :  { %10439 = vst [vmem:[#allocation113_spill] sm:$0xff] %v7832_v18  ;;  %1686 = vmatmul.bf16.gmra.mxu0 %v7837_v57  ;;  %v7842_v46 = vpop.f32.mrf.mxu2 }
 0x2b2   :  { %10441 = vst [vmem:[#allocation115_spill] sm:$0xff] %v7842_v46  ;;  %v1898_v33 = vpop.f32.mrf.mxu1  ;;  %v1028_v46 = vsel %vm954_vm2, %v920_v47, %v574_v12 }
 0x2b3   :  { %v1125_v29 = vsel %vm1051_vm4, %v1028_v46, %v680_v61  ;;  %v2285_v61 = vadd.f32 %v6778_v9, %v2035_v4  ;;  %v5983_v9 = vld [vmem:[%s10169_s0 + $0x128] sm:$0xff] }
 0x2b4   :  { %v7871_v12 = vsel %vm1148_vm5, %v1125_v29, %v786_v60  ;;  %v7886_v29 = vld [vmem:[%s10172_s2] ss:$0 sm:$0xff] }
 0x2b5   :  { %10445 = vst [vmem:[#allocation119_spill] sm:$0xff] %v7871_v12  ;;  %v7876_v6 = vpop.f32.mrf.mxu3 }
 0x2b6   :  { %v1649_v34 = vpop.f32.mrf.mxu0  ;;  %v7862_v57 = vpop.permute.xlu1 %789  ;;  %10446 = vst [vmem:[#allocation120_spill] sm:$0xff] %v7876_v6 }
 0x2b7   :  { %v7850_v56 = vadd.f32 %v1898_v33, %v1649_v34  ;;  %v684_v33 = vpop.permute.xlu0 %683 }
 0x2b9   :  { %v7856_v11 = vpop.f32.mrf.mxu2 }
 0x2ba   :  { %10443 = vst [vmem:[#allocation117_spill] sm:$0xff] %v7856_v11  ;;  %v1901_v18 = vpop.f32.mrf.mxu1 }
 0x2bd   :  { %5237 = vmatmul.msk.bf16.gmra.mxu1 %vm1399_vm3, %v786_v60  ;;  %v7901_v40 = vpop.f32.mrf.mxu3 }
 0x2be   :  { %v1652_v51 = vpop.f32.mrf.mxu0  ;;  %2084 = vmatmul.bf16.gmra.mxu2 %v7023_v27  ;;  %5287 = vmatmul.msk.bf16.gmra.mxu3 %vm1399_vm3, %v7862_v57  ;;  %v7878_v27 = vpop.permute.xlu2 %473  ;;  %10449 = vst [vmem:[#allocation122_spill] sm:$0xff] %v7901_v40 }
 0x2bf   :  { %v7866_v25 = vadd.f32 %v1901_v18, %v1652_v51  ;;  %v10447_v18 = vmax.f32 %v6909_v16, %v7018_v14  ;;  %v2287_v16 = vadd.f32 %v6823_v53, %v2037_v20  ;;  %v10453_v53 = vld [vmem:[#allocation31_spill] sm:$0xff]  ;;  %v686_v20 = vpop.permute.xlu1 %685 }
 0x2c1   :  { %10444 = vst [vmem:[#allocation118_spill] sm:$0xff] %v7866_v25  ;;  %1691 = vmatmul.bf16.gmra.mxu0 %v7871_v12  ;;  %v2045_v34 = vpop.f32.mrf.mxu2 }
 0x2c2   :  { %v2295_v46 = vadd.f32 %v6917_v3, %v2045_v34  ;;  %v1903_v47 = vpop.f32.mrf.mxu1  ;;  %v923_v3 = vsel %vm809_vm1, %v5983_v9, %v470_v52  ;;  %v10451_v9 = vld [vmem:[#allocation28_spill] sm:$0xff] }
 0x2c4   :  { %v2512_v51 = vmax.f32 %v2285_v61, %v2295_v46  ;;  %v1030_v61 = vsel %vm954_vm2, %v923_v3, %v576_v35  ;;  %v7895_v46 = vpop.permute.xlu0 %579 }
 0x2c5   :  { %v1127_v6 = vsel %vm1051_vm4, %v1030_v61, %v682_v19 }
 0x2c6   :  { %v2601_v41 = vmax.f32 %v10447_v18, %v2512_v51  ;;  %v1654_v60 = vpop.f32.mrf.mxu0  ;;  %v7903_v52 = vpop.permute.xlu2 %791 }
 0x2c7   :  { %v7892_v4 = vadd.f32 %v1903_v47, %v1654_v60  ;;  %v10450_v60 = vld [vmem:[#allocation22_spill] sm:$0xff] }
 0x2c8   :  { %v2653_v14 = vadd.f32 %v7886_v29, %v2601_v41  ;;  %v10452_v35 = vmax.f32 %v10450_v60, %v10451_v9  ;;  %v7918_v41 = vsel %vm1148_vm5, %v1127_v6, %v7826_v36  ;;  %v5984_v9 = vld [vmem:[%s10169_s0 + $0x130] sm:$0xff]  ;;  %v7928_v6 = vpop.f32.mrf.mxu3 }
 0x2c9   :  { %10448 = vst [vmem:[#allocation121_spill] sm:$0xff] %v7892_v4  ;;  %v2047_v34 = vpop.f32.mrf.mxu2 }
 0x2ca   :  { %v2297_v51 = vadd.f32 %v6938_v13, %v2047_v34  ;;  %v1906_v18 = vpop.f32.mrf.mxu1  ;;  %v2701_v47 = vmax.f32 %v2653_v14, 0.0  ;;  %10455 = vst [vmem:[#allocation28_spill] sm:$0xff] %v7928_v6 }
 0x2cc   :  { %v2514_v11 = vmax.f32 %v2287_v16, %v2297_v51  ;;  %v2749_v34 = vpack.c.bf16 %v2701_v47, %v2701_v47  ;;  %v7921_v14 = vpop.permute.xlu0 %475 }
 0x2cd   :  { %5238 = vmatmul.msk.bf16.gmra.mxu1 %vm1399_vm3, %v7826_v36  ;;  %v926_v36 = vsel %vm809_vm1, %v5984_v9, %v7844_v32  ;;  %v10457_v32 = vld [vmem:[#allocation35_spill] sm:$0xff] }
 0x2ce   :  { %v2602_v3 = vmax.f32 %v10452_v35, %v2514_v11  ;;  %v1657_v12 = vpop.f32.mrf.mxu0  ;;  %2089 = vmatmul.bf16.gmra.mxu2 %v10453_v53  ;;  %5288 = vmatmul.msk.bf16.gmra.mxu3 %vm1399_vm3, %v7903_v52  ;;  %v2829_v51 = vunpack.c.l.b16 %v2749_v34  ;;  %v1032_v53 = vsel %vm954_vm2, %v926_v36, %v7859_v49 }
 0x2cf   :  { %v7911_v13 = vadd.f32 %v1906_v18, %v1657_v12 }
 0x2d0   :  { %v2654_v19 = vadd.f32 %v7886_v29, %v2602_v3 }
 0x2d1   :  { %10454 = vst [vmem:[#allocation22_spill] sm:$0xff] %v7911_v13  ;;  %1696 = vmatmul.bf16.gmra.mxu0 %v7918_v41  ;;  %v2050_v11 = vpop.f32.mrf.mxu2 }
 0x2d2   :  { %v2702_v61 = vmax.f32 %v2654_v19, 0.0  ;;  %v1908_v16 = vpop.f32.mrf.mxu1  ;;  %v7938_v19 = vpop.permute.xlu1 %581 }
 0x2d4   :  { %v2750_v12 = vpack.c.bf16 %v2702_v61, %v2702_v61  ;;  %v1129_v61 = vsel %vm1051_vm4, %v1032_v53, %v684_v33  ;;  %v5985_v53 = vld [vmem:[%s10169_s0 + $0x138] sm:$0xff] }
 0x2d5   :  { %v7952_v49 = vsel %vm1148_vm5, %v1129_v61, %v7862_v57  ;;  %v5387_v61 = vld [vmem:[%s10171_s3 + $0xb0] sm:$0xf] }
 0x2d6   :  { %v2830_v18 = vunpack.c.l.b16 %v2750_v12  ;;  %v1659_v60 = vpop.f32.mrf.mxu0  ;;  %v7941_v12 = vpop.permute.xlu0 %793 }
 0x2d7   :  { %v7930_v35 = vadd.f32 %v1908_v16, %v1659_v60 }
 0x2d8   :  { %v7932_v47 = vpack.c.b16 %v2830_v18, %v2829_v51  ;;  %v688_v51 = vpop.permute.xlu2 %687  ;;  %v7954_v18 = vpop.f32.mrf.mxu3 }
 0x2d9   :  { %v7934_v3 = vpop.f32.mrf.mxu2  ;;  %10459 = vst [vmem:[#allocation123_spill] sm:$0xff] %v7954_v18 }
 0x2da   :  { %10456 = vst [vmem:[#allocation31_spill] sm:$0xff] %v7932_v47  ;;  %v1911_v34 = vpop.f32.mrf.mxu1 }
 0x2dd   :  { %5239 = vmatmul.msk.bf16.gmra.mxu1 %vm1399_vm3, %v7862_v57  ;;  %v929_v57 = vsel %vm809_vm1, %v5985_v53, %v7878_v27 }
 0x2de   :  { %v1662_v40 = vpop.f32.mrf.mxu0  ;;  %2094 = vmatmul.bf16.gmra.mxu2 %v10457_v32  ;;  %5289 = vmatmul.msk.bf16.gmra.mxu3 %vm1399_vm3, %v7941_v12  ;;  %v5856_v32 = vld [vmem:[%s10171_s3 + $0xb4] sm:$0xf0] }
 0x2df   :  { %v7946_v16 = vadd.f32 %v1911_v34, %v1662_v40  ;;  %v7961_v40 = vpop.permute.xlu1 %477  ;;  %v5388_v6 = vor.u32 %v5856_v32, %v5387_v61  ;;  %v10463_v32 = vld [vmem:[#allocation24_spill] sm:$0xff] }
 0x2e0   :  { %v7982_v27 = vpop.permute.xlu2 %583  ;;  %v2300_v33 = vadd.f32 %v10463_v32, %v2050_v11 }
 0x2e1   :  { %10458 = vst [vmem:[#allocation35_spill] sm:$0xff] %v7946_v16  ;;  %1701 = vmatmul.bf16.gmra.mxu0 %v7952_v49  ;;  %v7959_v60 = vpop.f32.mrf.mxu2  ;;  %v1034_v16 = vsel %vm954_vm2, %v929_v57, %v7895_v46  ;;  %3508 = vmatpush.bf16.msrb.mxu3 %v5388_v6  ;;  %v5323_v46 = vld [vmem:[%s10171_s3 + $0x30] sm:$0xf]  ;;  %v5840_v57 = vld [vmem:[%s10171_s3 + $0x34] sm:$0xf0] }
 0x2e2   :  { %v1913_v9 = vpop.f32.mrf.mxu1  ;;  %v1131_v53 = vsel %vm1051_vm4, %v1034_v16, %v686_v20  ;;  %v5324_v20 = vor.u32 %v5840_v57, %v5323_v46 }
 0x2e3   :  { %v8004_v6 = vsel %vm1148_vm5, %v1131_v53, %v7903_v52 }
 0x2e4   :  { %3419 = vmatpush.bf16.msrb.mxu1 %v5324_v20 }
 0x2e6   :  { %v1664_v36 = vpop.f32.mrf.mxu0 }
 0x2e7   :  { %v7968_v34 = vadd.f32 %v1913_v9, %v1664_v36  ;;  %v7984_v9 = vpop.f32.mrf.mxu3  ;;  %v7987_v25 = vpop.permute.xlu1 %795 }
 0x2e8   :  { %10461 = vst [vmem:[#allocation125_spill] sm:$0xff] %v7984_v9  ;;  %v8011_v4 = vpop.permute.xlu2 %479 }
 0x2e9   :  { %10460 = vst [vmem:[#allocation124_spill] sm:$0xff] %v7968_v34  ;;  %v7978_v47 = vpop.f32.mrf.mxu2  ;;  %v10464_v34 = vld [vmem:[#allocation32_spill] sm:$0xff] }
 0x2ea   :  { %v1916_v36 = vpop.f32.mrf.mxu1 }
 0x2ed   :  { %5240 = vmatmul.msk.bf16.gmra.mxu1 %vm1399_vm3, %v7903_v52  ;;  %v10465_v52 = vmax.f32 %v7067_v48, %v7213_v22 }
 0x2ee   :  { %v1667_v18 = vpop.f32.mrf.mxu0  ;;  %2099 = vmatmul.bf16.gmra.mxu2 %v7225_v5  ;;  %5290 = vmatmul.msk.bf16.gmra.mxu3 %vm1399_vm3, %v7987_v25  ;;  %v5986_v5 = vld [vmem:[%s10169_s0 + $0x140] sm:$0xff] }
 0x2ef   :  { %v7998_v61 = vadd.f32 %v1916_v36, %v1667_v18  ;;  %v8013_v46 = vpop.f32.mrf.mxu3  ;;  %v932_v11 = vsel %vm809_vm1, %v5986_v5, %v7921_v14  ;;  %v10466_v14 = vld [vmem:[#allocation26_spill] sm:$0xff] }
 0x2f0   :  { %v2302_v5 = vadd.f32 %v10466_v14, %v7934_v3  ;;  %v8040_v13 = vpop.permute.xlu2 %797 }
 0x2f1   :  { %10462 = vst [vmem:[#allocation126_spill] sm:$0xff] %v7998_v61  ;;  %1706 = vmatmul.bf16.gmra.mxu0 %v8004_v6  ;;  %v2060_v16 = vpop.f32.mrf.mxu2 }
 0x2f2   :  { %v2310_v18 = vadd.f32 %v10464_v34, %v2060_v16  ;;  %v1918_v36 = vpop.f32.mrf.mxu1  ;;  %v5892_v34 = vld [vmem:[%s10171_s3 + $0x1d4] sm:$0xf0]  ;;  %v1036_v16 = vsel %vm954_vm2, %v932_v11, %v7938_v19 }
 0x2f3   :  { %v1133_v61 = vsel %vm1051_vm4, %v1036_v16, %v688_v51  ;;  %v10470_v16 = vld [vmem:[#allocation36_spill] sm:$0xff] }
 0x2f4   :  { %v2516_v9 = vmax.f32 %v2300_v33, %v2310_v18  ;;  %v5531_v33 = vld [vmem:[%s10171_s3 + $0x1d0] sm:$0xf]  ;;  %v10467_v18 = vld [vmem:[#allocation33_spill] sm:$0xff]  ;;  %v8057_v11 = vsel %vm1148_vm5, %v1133_v61, %v7941_v12 }
 0x2f6   :  { %v2603_v53 = vmax.f32 %v10465_v52, %v2516_v9  ;;  %v1669_v57 = vpop.f32.mrf.mxu0  ;;  %v5532_v9 = vor.u32 %v5892_v34, %v5531_v33  ;;  %v10468_v33 = vmax.f32 %v7098_v59, %v7250_v7  ;;  %v10469_v7 = vld [vmem:[#allocation27_spill] sm:$0xff] }
 0x2f7   :  { %v8023_v20 = vadd.f32 %v1918_v36, %v1669_v57  ;;  %v8048_v3 = vpop.f32.mrf.mxu3 }
 0x2f8   :  { %v2655_v32 = vadd.f32 %v7886_v29, %v2603_v53  ;;  %3684 = vmatpush.bf16.msra.mxu2 %v5532_v9 }
 0x2f9   :  { %v2062_v22 = vpop.f32.mrf.mxu2 }
 0x2fa   :  { %v2312_v36 = vadd.f32 %v10467_v18, %v2062_v22  ;;  %v1921_v52 = vpop.f32.mrf.mxu1  ;;  %v2703_v48 = vmax.f32 %v2655_v32, 0.0  ;;  %v2305_v22 = vadd.f32 %v10469_v7, %v7959_v60  ;;  %v10473_v7 = vld [vmem:[#allocation37_spill] sm:$0xff] }
 0x2fc   :  { %v2518_v57 = vmax.f32 %v2302_v5, %v2312_v36 }
 0x2fd   :  { %5241 = vmatmul.msk.bf16.gmra.mxu1 %vm1399_vm3, %v7941_v12  ;;  %v10471_v12 = vmax.f32 %v7139_v58, %v7281_v8 }
 0x2fe   :  { %v2604_v34 = vmax.f32 %v10468_v33, %v2518_v57  ;;  %v1672_v19 = vpop.f32.mrf.mxu0  ;;  %2104 = vmatmul.bf16.gmra.mxu2 %v7288_v17  ;;  %5291 = vmatmul.msk.bf16.gmra.mxu3 %vm1399_vm3, %v8040_v13  ;;  %v2751_v17 = vpack.c.bf16 %v2703_v48, %v2703_v48  ;;  %v5987_v33 = vld [vmem:[%s10169_s0 + $0x148] sm:$0xff] }
 0x2ff   :  { %v8050_v53 = vadd.f32 %v1921_v52, %v1672_v19  ;;  %v935_v60 = vsel %vm809_vm1, %v5987_v33, %v7961_v40 }
 0x300   :  { %v2656_v51 = vadd.f32 %v7886_v29, %v2604_v34  ;;  %v2831_v36 = vunpack.c.l.b16 %v2751_v17  ;;  %v8075_v34 = vpop.f32.mrf.mxu3 }
 0x301   :  { %1711 = vmatmul.bf16.gmra.mxu0 %v8057_v11  ;;  %v2065_v59 = vpop.f32.mrf.mxu2 }
 0x302   :  { %v2704_v9 = vmax.f32 %v2656_v51, 0.0  ;;  %v2315_v14 = vadd.f32 %v10470_v16, %v2065_v59  ;;  %v8063_v5 = vpop.f32.mrf.mxu1  ;;  %v1038_v51 = vsel %vm954_vm2, %v935_v60, %v7982_v27  ;;  %v10472_v59 = vld [vmem:[#allocation29_spill] sm:$0xff]  ;;  %v10476_v27 = vld [vmem:[#allocation30_spill] sm:$0xff] }
 0x303   :  { %v2307_v58 = vadd.f32 %v10472_v59, %v7978_v47 }
 0x304   :  { %v2752_v32 = vpack.c.bf16 %v2704_v9, %v2704_v9  ;;  %v2520_v18 = vmax.f32 %v2305_v22, %v2315_v14  ;;  %v690_v9 = vpop.permute.xlu0 %689 }
 0x305   :  { %v1135_v40 = vsel %vm1051_vm4, %v1038_v51, %v690_v9 }
 0x306   :  { %v2832_v52 = vunpack.c.l.b16 %v2752_v32  ;;  %v2605_v61 = vmax.f32 %v10471_v12, %v2520_v18  ;;  %v1674_v57 = vpop.f32.mrf.mxu0  ;;  %v10474_v32 = vmax.f32 %v7180_v62, %v7308_v42  ;;  %v8097_v12 = vsel %vm1148_vm5, %v1135_v40, %v7987_v25 }
 0x308   :  { %v8073_v48 = vpack.c.b16 %v2832_v52, %v2831_v36  ;;  %v2657_v8 = vadd.f32 %v7886_v29, %v2605_v61  ;;  %v8100_v33 = vpop.f32.mrf.mxu3 }
 0x309   :  { %v2067_v19 = vpop.f32.mrf.mxu2 }
 0x30a   :  { %v2317_v22 = vadd.f32 %v10473_v7, %v2067_v19  ;;  %v1926_v17 = vpop.f32.mrf.mxu1  ;;  %v2705_v14 = vmax.f32 %v2657_v8, 0.0 }
 0x30c   :  { %v2522_v16 = vmax.f32 %v2307_v58, %v2317_v22  ;;  %v2753_v42 = vpack.c.bf16 %v2705_v14, %v2705_v14  ;;  %v5988_v58 = vld [vmem:[%s10169_s0 + $0x150] sm:$0xff]  ;;  %v586_v7 = vpop.permute.xlu0 %585 }
 0x30d   :  { %5242 = vmatmul.msk.bf16.gmra.mxu1 %vm1399_vm3, %v7987_v25  ;;  %v938_v25 = vsel %vm809_vm1, %v5988_v58, %v8011_v4  ;;  %v10478_v4 = vld [vmem:[#allocation34_spill] sm:$0xff] }
 0x30e   :  { %v2606_v18 = vmax.f32 %v10474_v32, %v2522_v16  ;;  %v1677_v36 = vpop.f32.mrf.mxu0  ;;  %2109 = vmatmul.bf16.gmra.mxu2 %v7340_v45  ;;  %5292 = vmatmul.msk.bf16.gmra.mxu3 %vm1399_vm3, %v10476_v27  ;;  %v2833_v19 = vunpack.c.l.b16 %v2753_v42  ;;  %v692_v16 = vpop.permute.xlu1 %691 }
 0x30f   :  { %v8090_v47 = vadd.f32 %v1926_v17, %v1677_v36  ;;  %v1040_v17 = vsel %vm954_vm2, %v938_v25, %v586_v7 }
 0x310   :  { %v2658_v52 = vadd.f32 %v7886_v29, %v2606_v18  ;;  %v1137_v40 = vsel %vm1051_vm4, %v1040_v17, %v692_v16  ;;  %v8111_v14 = vpop.f32.mrf.mxu3 }
 0x311   :  { %10475 = vst [vmem:[#allocation24_spill] sm:$0xff] %v8090_v47  ;;  %1716 = vmatmul.bf16.gmra.mxu0 %v8097_v12  ;;  %v2070_v62 = vpop.f32.mrf.mxu2  ;;  %v8122_v36 = vsel %vm1148_vm5, %v1137_v40, %v8040_v13  ;;  %v694_v40 = vpop.permute.xlu2 %693 }
 0x312   :  { %v2706_v61 = vmax.f32 %v2658_v52, 0.0  ;;  %v1928_v60 = vpop.f32.mrf.mxu1  ;;  %10477 = vst [vmem:[#allocation32_spill] sm:$0xff] %v8111_v14  ;;  %v5990_v14 = vld [vmem:[%s10169_s0 + $0x160] sm:$0xff] }
 0x314   :  { %v2754_v45 = vpack.c.bf16 %v2706_v61, %v2706_v61 }
 0x316   :  { %v2834_v51 = vunpack.c.l.b16 %v2754_v45  ;;  %v1679_v59 = vpop.f32.mrf.mxu0  ;;  %v482_v45 = vpop.permute.xlu0 %481 }
 0x317   :  { %v588_v58 = vpop.permute.xlu1 %587  ;;  %v8169_v47 = vadd.f32 %v1928_v60, %v1679_v59  ;;  %v10485_v60 = vld [vmem:[#allocation40_spill] sm:$0xff] }
 0x318   :  { %v8107_v8 = vpack.c.b16 %v2834_v51, %v2833_v19  ;;  %v8133_v25 = vpop.f32.mrf.mxu3 }
 0x319   :  { %v2072_v22 = vpop.f32.mrf.mxu2  ;;  %10479 = vst [vmem:[#allocation26_spill] sm:$0xff] %v8133_v25  ;;  %v10484_v25 = vmax.f32 %v7329_v50, %v7408_v24  ;;  %v5854_v50 = vld [vmem:[%s10171_s3 + $0xa4] sm:$0xf0]  ;;  %v10489_v24 = vld [vmem:[#allocation41_spill] sm:$0xff] }
 0x31a   :  { %v1931_v9 = vpop.f32.mrf.mxu1  ;;  %v2322_v59 = vadd.f32 %v10485_v60, %v2072_v22 }
 0x31d   :  { %5243 = vmatmul.msk.bf16.gmra.mxu1 %vm1399_vm3, %v8040_v13  ;;  %v8136_v13 = vadd.f32 %v8063_v5, %v1674_v57  ;;  %v10481_v5 = vld [vmem:[#allocation38_spill] sm:$0xff] }
 0x31e   :  { %v1682_v32 = vpop.f32.mrf.mxu0  ;;  %2114 = vmatmul.bf16.gmra.mxu2 %v7376_v30  ;;  %5293 = vmatmul.msk.bf16.gmra.mxu3 %vm1399_vm3, %v10478_v4  ;;  %v5989_v30 = vld [vmem:[%s10169_s0 + $0x158] sm:$0xff] }
 0x31f   :  { %v8116_v18 = vadd.f32 %v1931_v9, %v1682_v32  ;;  %v941_v51 = vsel %vm809_vm1, %v5989_v30, %v482_v45 }
 0x320   :  { %v1042_v16 = vsel %vm954_vm2, %v941_v51, %v588_v58  ;;  %v10482_v58 = vld [vmem:[#allocation39_spill] sm:$0xff] }
 0x321   :  { %1721 = vmatmul.bf16.gmra.mxu0 %v8122_v36  ;;  %v8127_v42 = vpop.f32.mrf.mxu2  ;;  %v1139_v52 = vsel %vm1051_vm4, %v1042_v16, %v694_v40  ;;  %v2320_v16 = vadd.f32 %v10482_v58, %v2070_v62  ;;  %v696_v58 = vpop.permute.xlu2 %695 }
 0x322   :  { %v1933_v61 = vpop.f32.mrf.mxu1  ;;  %v8153_v57 = vsel %vm1148_vm5, %v1139_v52, %v10476_v27 }
 0x326   :  { %v1684_v19 = vpop.f32.mrf.mxu0 }
 0x327   :  { %v8138_v7 = vadd.f32 %v1933_v61, %v1684_v19  ;;  %v8155_v61 = vpop.f32.mrf.mxu3 }
 0x329   :  { %v8142_v9 = vpop.f32.mrf.mxu2 }
 0x32a   :  { %v1936_v32 = vpop.f32.mrf.mxu1 }
 0x32e   :  { %v1687_v45 = vpop.f32.mrf.mxu0  ;;  %2119 = vmatmul.bf16.gmra.mxu2 %v7415_v28  ;;  %5294 = vmatmul.msk.bf16.gmra.mxu3 %vm1399_vm3, %v10481_v5  ;;  %v10483_v28 = vld [vmem:[#allocation45_spill] sm:$0xff] }
 0x32f   :  { %v8147_v30 = vadd.f32 %v1936_v32, %v1687_v45  ;;  %v484_v45 = vpop.permute.xlu0 %483 }
 0x330   :  { %v944_v19 = vsel %vm809_vm1, %v5990_v14, %v484_v45  ;;  %v5838_v45 = vld [vmem:[%s10171_s3 + $0x24] sm:$0xf0] }
 0x331   :  { %10480 = vst [vmem:[#allocation33_spill] sm:$0xff] %v8147_v30  ;;  %1726 = vmatmul.bf16.gmra.mxu0 %v8153_v57  ;;  %v2080_v51 = vpop.f32.mrf.mxu2  ;;  %v590_v30 = vpop.permute.xlu1 %589 }
 0x332   :  { %v2330_v40 = vadd.f32 %v10483_v28, %v2080_v51  ;;  %v1938_v32 = vpop.f32.mrf.mxu1  ;;  %v5379_v51 = vld [vmem:[%s10171_s3 + $0xa0] sm:$0xf]  ;;  %v1044_v14 = vsel %vm954_vm2, %v944_v19, %v590_v30 }
 0x333   :  { %v10486_v28 = vld [vmem:[#allocation46_spill] sm:$0xff]  ;;  %v1141_v22 = vsel %vm1051_vm4, %v1044_v14, %v696_v58 }
 0x334   :  { %v2524_v17 = vmax.f32 %v2320_v16, %v2330_v40 }
 0x336   :  { %v2607_v27 = vmax.f32 %v10484_v25, %v2524_v17  ;;  %v1689_v52 = vpop.f32.mrf.mxu0  ;;  %v5380_v17 = vor.u32 %v5854_v50, %v5379_v51  ;;  %v10487_v50 = vmax.f32 %v7351_v15, %v7433_v63  ;;  %v10490_v15 = vld [vmem:[#allocation42_spill] sm:$0xff] }
 0x337   :  { %v8171_v62 = vadd.f32 %v1938_v32, %v1689_v52  ;;  %v5315_v32 = vld [vmem:[%s10171_s3 + $0x20] sm:$0xf]  ;;  %v8191_v52 = vpop.f32.mrf.mxu3  ;;  %v2325_v63 = vadd.f32 %v10490_v15, %v8127_v42  ;;  %v5991_v42 = vld [vmem:[%s10169_s0 + $0x168] sm:$0xff] }
 0x338   :  { %v2659_v16 = vadd.f32 %v7886_v29, %v2607_v27  ;;  %3509 = vmatpush.bf16.msrb.mxu3 %v5380_v17  ;;  %v5316_v30 = vor.u32 %v5838_v45, %v5315_v32  ;;  %v486_v45 = vpop.permute.xlu0 %485 }
 0x339   :  { %v2082_v25 = vpop.f32.mrf.mxu2 }
 0x33a   :  { %v2332_v40 = vadd.f32 %v10486_v28, %v2082_v25  ;;  %v1941_v51 = vpop.f32.mrf.mxu1  ;;  %3420 = vmatpush.bf16.msrb.mxu1 %v5316_v30  ;;  %v2707_v27 = vmax.f32 %v2659_v16, 0.0 }
 0x33c   :  { %v2526_v19 = vmax.f32 %v2322_v59, %v2332_v40  ;;  %v8205_v59 = vsel %vm1148_vm5, %v1141_v22, %v10478_v4  ;;  %v2755_v58 = vpack.c.bf16 %v2707_v27, %v2707_v27  ;;  %v10492_v22 = vmax.f32 %v7369_v43, %v7451_v39 }
 0x33d   :  { %v947_v27 = vsel %vm809_vm1, %v5991_v42, %v486_v45  ;;  %v10495_v45 = vmax.f32 %v7389_v55, %v7469_v0 }
 0x33e   :  { %v2608_v25 = vmax.f32 %v10487_v50, %v2526_v19  ;;  %v1692_v60 = vpop.f32.mrf.mxu0  ;;  %2124 = vmatmul.bf16.gmra.mxu2 %v7457_v10  ;;  %5295 = vmatmul.msk.bf16.gmra.mxu3 %vm1399_vm3, %v10489_v24  ;;  %v10491_v10 = vld [vmem:[#allocation47_spill] sm:$0xff]  ;;  %v2835_v50 = vunpack.c.l.b16 %v2755_v58 }
 0x33f   :  { %v8198_v28 = vadd.f32 %v1941_v51, %v1692_v60  ;;  %v8213_v19 = vpop.f32.mrf.mxu3  ;;  %v10494_v58 = vld [vmem:[#allocation43_spill] sm:$0xff] }
 0x340   :  { %v2660_v17 = vadd.f32 %v7886_v29, %v2608_v25 }
 0x341   :  { %10488 = vst [vmem:[#allocation27_spill] sm:$0xff] %v8198_v28  ;;  %1731 = vmatmul.bf16.gmra.mxu0 %v8205_v59  ;;  %v2085_v14 = vpop.f32.mrf.mxu2  ;;  %v10502_v28 = vld [vmem:[#allocation65_spill] sm:$0xff] }
 0x342   :  { %v2708_v16 = vmax.f32 %v2660_v17, 0.0  ;;  %v2335_v40 = vadd.f32 %v10491_v10, %v2085_v14  ;;  %v8211_v32 = vpop.f32.mrf.mxu1  ;;  %v592_v17 = vpop.permute.xlu1 %591  ;;  %v2327_v10 = vadd.f32 %v10494_v58, %v8142_v9  ;;  %v10497_v9 = vld [vmem:[#allocation44_spill] sm:$0xff] }
 0x344   :  { %v2756_v51 = vpack.c.bf16 %v2708_v16, %v2708_v16  ;;  %v2528_v30 = vmax.f32 %v2325_v63, %v2335_v40  ;;  %v1046_v63 = vsel %vm954_vm2, %v947_v27, %v592_v17  ;;  %v698_v16 = vpop.permute.xlu2 %697 }
 0x346   :  { %v2836_v4 = vunpack.c.l.b16 %v2756_v51  ;;  %v2609_v25 = vmax.f32 %v10492_v22, %v2528_v30  ;;  %v1694_v60 = vpop.f32.mrf.mxu0  ;;  %v1143_v30 = vsel %vm1051_vm4, %v1046_v63, %v698_v16 }
 0x347   :  { %v8234_v42 = vpop.f32.mrf.mxu3 }
 0x348   :  { %v8222_v14 = vpack.c.b16 %v2836_v4, %v2835_v50  ;;  %v2661_v43 = vadd.f32 %v7886_v29, %v2609_v25  ;;  %v8243_v25 = vsel %vm1148_vm5, %v1143_v30, %v10481_v5 }
 0x349   :  { %v2087_v15 = vpop.f32.mrf.mxu2 }
 0x34a   :  { %10493 = vst [vmem:[#allocation36_spill] sm:$0xff] %v8222_v14  ;;  %v2337_v39 = vadd.f32 %v7391_v23, %v2087_v15  ;;  %v1946_v40 = vpop.f32.mrf.mxu1  ;;  %v2709_v22 = vmax.f32 %v2661_v43, 0.0  ;;  %v5992_v43 = vld [vmem:[%s10169_s0 + $0x170] sm:$0xff] }
 0x34c   :  { %v2530_v51 = vmax.f32 %v2327_v10, %v2337_v39  ;;  %v2757_v0 = vpack.c.bf16 %v2709_v22, %v2709_v22  ;;  %v700_v22 = vpop.permute.xlu2 %699 }
 0x34e   :  { %v2610_v50 = vmax.f32 %v10495_v45, %v2530_v51  ;;  %v1697_v4 = vpop.f32.mrf.mxu0  ;;  %2129 = vmatmul.bf16.gmra.mxu2 %v7491_v31  ;;  %5296 = vmatmul.msk.bf16.gmra.mxu3 %vm1399_vm3, %v10497_v9  ;;  %v488_v31 = vpop.permute.xlu0 %487  ;;  %v2837_v16 = vunpack.c.l.b16 %v2757_v0  ;;  %v5890_v0 = vld [vmem:[%s10171_s3 + $0x1c4] sm:$0xf0] }
 0x34f   :  { %v8236_v27 = vadd.f32 %v1946_v40, %v1697_v4  ;;  %v950_v39 = vsel %vm809_vm1, %v5992_v43, %v488_v31  ;;  %v594_v40 = vpop.permute.xlu1 %593 }
 0x350   :  { %v2662_v23 = vadd.f32 %v7886_v29, %v2610_v50  ;;  %v1048_v30 = vsel %vm954_vm2, %v950_v39, %v594_v40  ;;  %v5993_v40 = vld [vmem:[%s10169_s0 + $0x178] sm:$0xff] }
 0x351   :  { %10496 = vst [vmem:[#allocation29_spill] sm:$0xff] %v8236_v27  ;;  %1736 = vmatmul.bf16.gmra.mxu0 %v8243_v25  ;;  %v2090_v55 = vpop.f32.mrf.mxu2  ;;  %v1145_v50 = vsel %vm1051_vm4, %v1048_v30, %v700_v22 }
 0x352   :  { %v2710_v17 = vmax.f32 %v2662_v23, 0.0  ;;  %v1948_v15 = vpop.f32.mrf.mxu1  ;;  %v5523_v23 = vld [vmem:[%s10171_s3 + $0x1c0] sm:$0xf] }
 0x353   :  { %v5524_v31 = vor.u32 %v5890_v0, %v5523_v23 }
 0x354   :  { %v2758_v63 = vpack.c.bf16 %v2710_v17, %v2710_v17  ;;  %v702_v0 = vpop.permute.xlu2 %701 }
 0x355   :  { %3685 = vmatpush.bf16.msra.mxu2 %v5524_v31 }
 0x356   :  { %v2838_v58 = vunpack.c.l.b16 %v2758_v63  ;;  %v1699_v10 = vpop.f32.mrf.mxu0  ;;  %v8265_v63 = vsel %vm1148_vm5, %v1145_v50, %v10489_v24  ;;  %v490_v43 = vpop.permute.xlu0 %489  ;;  %v8275_v24 = vadd.f32 %v8211_v32, %v1694_v60  ;;  %v10507_v50 = vld [vmem:[#allocation52_spill] sm:$0xff] }
 0x357   :  { %v953_v30 = vsel %vm809_vm1, %v5993_v40, %v490_v43  ;;  %v596_v22 = vpop.permute.xlu1 %595 }
 0x358   :  { %v8250_v5 = vpack.c.b16 %v2838_v58, %v2837_v16  ;;  %10500 = vst [vmem:[#allocation34_spill] sm:$0xff] %v8275_v24  ;;  %v1050_v23 = vsel %vm954_vm2, %v953_v30, %v596_v22  ;;  %v10506_v30 = vld [vmem:[#allocation54_spill] sm:$0xff]  ;;  %v8298_v24 = vadd.f32 %v1948_v15, %v1699_v10 }
 0x359   :  { %v2092_v51 = vpop.f32.mrf.mxu2  ;;  %v1147_v16 = vsel %vm1051_vm4, %v1050_v23, %v702_v0 }
 0x35a   :  { %10498 = vst [vmem:[#allocation37_spill] sm:$0xff] %v8250_v5  ;;  %v1951_v45 = vpop.f32.mrf.mxu1  ;;  %v8288_v32 = vsel %vm1148_vm5, %v1147_v16, %v10497_v9 }
 0x35b   :  { %10504 = vst [vmem:[#allocation45_spill] sm:$0xff] %v8288_v32 }
 0x35c   :  { %10510 = vst [vmem:[#allocation40_spill] sm:$0xff] %v8298_v24 }
 0x35e   :  { %v1702_v4 = vpop.f32.mrf.mxu0  ;;  %2134 = vmatmul.bf16.gmra.mxu2 %v7514_v37 }
 0x35f   :  { %v8261_v17 = vadd.f32 %v1951_v45, %v1702_v4 }
 0x361   :  { %10499 = vst [vmem:[#allocation30_spill] sm:$0xff] %v8261_v17  ;;  %1741 = vmatmul.bf16.gmra.mxu0 %v8265_v63  ;;  %v2095_v37 = vpop.f32.mrf.mxu2 }
 0x362   :  { %v1953_v58 = vpop.f32.mrf.mxu1 }
 0x366   :  { %v1704_v39 = vpop.f32.mrf.mxu0 }
 0x367   :  { %v8277_v45 = vadd.f32 %v1953_v58, %v1704_v39  ;;  %v10505_v39 = vld [vmem:[#allocation48_spill] sm:$0xff] }
 0x368   :  { %v2340_v40 = vadd.f32 %v10505_v39, %v2090_v55 }
 0x369   :  { %10501 = vst [vmem:[#allocation38_spill] sm:$0xff] %v8277_v45  ;;  %v2097_v4 = vpop.f32.mrf.mxu2 }
 0x36a   :  { %v1956_v31 = vpop.f32.mrf.mxu1 }
 0x36e   :  { %v1707_v17 = vpop.f32.mrf.mxu0  ;;  %2139 = vmatmul.bf16.gmra.mxu2 %v10502_v28  ;;  %v10508_v28 = vld [vmem:[#allocation64_spill] sm:$0xff] }
 0x36f   :  { %v8284_v43 = vadd.f32 %v1956_v31, %v1707_v17  ;;  %v10509_v17 = vmax.f32 %v10507_v50, %v10508_v28  ;;  %v10514_v50 = vld [vmem:[#allocation55_spill] sm:$0xff] }
 0x371   :  { %10503 = vst [vmem:[#allocation39_spill] sm:$0xff] %v8284_v43  ;;  %1746 = vmatmul.bf16.gmra.mxu0 %v8288_v32  ;;  %v2100_v58 = vpop.f32.mrf.mxu2  ;;  %v10512_v43 = vld [vmem:[#allocation49_spill] sm:$0xff] }
 0x372   :  { %v2350_v22 = vadd.f32 %v10506_v30, %v2100_v58  ;;  %v1958_v23 = vpop.f32.mrf.mxu1  ;;  %v2342_v27 = vadd.f32 %v10512_v43, %v2092_v51  ;;  %v10513_v58 = vld [vmem:[#allocation57_spill] sm:$0xff]  ;;  %v10519_v51 = vld [vmem:[#allocation3_spill] sm:$0xff]  ;;  %v10520_v43 = vld [vmem:[#allocation50_spill] sm:$0xff] }
 0x374   :  { %v2532_v0 = vmax.f32 %v2340_v40, %v2350_v22 }
 0x376   :  { %v2611_v31 = vmax.f32 %v10509_v17, %v2532_v0  ;;  %v1709_v45 = vpop.f32.mrf.mxu0  ;;  %v10515_v0 = vld [vmem:[#allocation68_spill] sm:$0xff] }
 0x377   :  { %v8300_v9 = vadd.f32 %v1958_v23, %v1709_v45  ;;  %v10516_v28 = vmax.f32 %v10514_v50, %v10515_v0  ;;  %v10517_v45 = vld [vmem:[#allocation72_spill] sm:$0xff] }
 0x378   :  { %v2663_v55 = vadd.f32 %v7886_v29, %v2611_v31 }
 0x379   :  { %10511 = vst [vmem:[#allocation46_spill] sm:$0xff] %v8300_v9  ;;  %v2102_v60 = vpop.f32.mrf.mxu2 }
 0x37a   :  { %v2352_v39 = vadd.f32 %v10513_v58, %v2102_v60  ;;  %v1961_v40 = vpop.f32.mrf.mxu1  ;;  %v2711_v22 = vmax.f32 %v2663_v55, 0.0  ;;  %v2345_v60 = vadd.f32 %v10520_v43, %v2095_v37  ;;  %v10521_v55 = vld [vmem:[#allocation60_spill] sm:$0xff]  ;;  %v10525_v37 = vld [vmem:[#allocation51_spill] sm:$0xff] }
 0x37c   :  { %v2534_v30 = vmax.f32 %v2342_v27, %v2352_v39  ;;  %v2759_v31 = vpack.c.bf16 %v2711_v22, %v2711_v22  ;;  %v2347_v22 = vadd.f32 %v10525_v37, %v2097_v4  ;;  %v5880_v37 = vld [vmem:[%s10171_s3 + $0x174] sm:$0xf0] }
 0x37e   :  { %v2612_v15 = vmax.f32 %v10516_v28, %v2534_v30  ;;  %v1712_v10 = vpop.f32.mrf.mxu0  ;;  %2144 = vmatmul.bf16.gmra.mxu2 %v10517_v45  ;;  %v2839_v0 = vunpack.c.l.b16 %v2759_v31  ;;  %v5852_v31 = vld [vmem:[%s10171_s3 + $0x94] sm:$0xf0] }
 0x37f   :  { %v8311_v23 = vadd.f32 %v1961_v40, %v1712_v10  ;;  %v10522_v40 = vld [vmem:[#allocation58_spill] sm:$0xff]  ;;  %v10523_v10 = vld [vmem:[#allocation71_spill] sm:$0xff] }
 0x380   :  { %v2664_v17 = vadd.f32 %v7886_v29, %v2612_v15  ;;  %v10524_v45 = vmax.f32 %v10522_v40, %v10523_v10  ;;  %v10530_v10 = vld [vmem:[#allocation78_spill] sm:$0xff] }
 0x381   :  { %10518 = vst [vmem:[#allocation41_spill] sm:$0xff] %v8311_v23  ;;  %v2105_v16 = vpop.f32.mrf.mxu2  ;;  %5249 = vmatmul.msk.bf16.vlgmr.msrb.gmra.mxu0 %vm1399_vm3, %v10519_v51 }
 0x382   :  { %v2712_v27 = vmax.f32 %v2664_v17, 0.0  ;;  %v2355_v58 = vadd.f32 %v10521_v55, %v2105_v16  ;;  %v8318_v39 = vpop.f32.mrf.mxu1  ;;  %v10526_v16 = vld [vmem:[#allocation63_spill] sm:$0xff] }
 0x384   :  { %v2760_v30 = vpack.c.bf16 %v2712_v27, %v2712_v27  ;;  %v2536_v50 = vmax.f32 %v2345_v60, %v2355_v58  ;;  %v5371_v60 = vld [vmem:[%s10171_s3 + $0x90] sm:$0xf] }
 0x385   :  { %v5372_v55 = vor.u32 %v5852_v31, %v5371_v60 }
 0x386   :  { %v2840_v28 = vunpack.c.l.b16 %v2760_v30  ;;  %v2613_v15 = vmax.f32 %v10524_v45, %v2536_v50  ;;  %v8323_v9 = vpop.f32.mrf.mxu0  ;;  %v10527_v50 = vld [vmem:[#allocation61_spill] sm:$0xff] }
 0x387   :  { %3510 = vmatpush.bf16.msrb.mxu3 %v5372_v55 }
 0x388   :  { %v8325_v24 = vpack.c.b16 %v2840_v28, %v2839_v0  ;;  %v2665_v17 = vadd.f32 %v7886_v29, %v2613_v15  ;;  %v10528_v0 = vld [vmem:[#allocation75_spill] sm:$0xff] }
 0x389   :  { %v2107_v51 = vpop.f32.mrf.mxu2  ;;  %v10529_v4 = vmax.f32 %v10527_v50, %v10528_v0  ;;  %v5475_v0 = vld [vmem:[%s10171_s3 + $0x160] sm:$0xf] }
 0x38a   :  { %v2357_v43 = vadd.f32 %v10526_v16, %v2107_v51  ;;  %v1966_v27 = vpop.f32.mrf.mxu1  ;;  %v2713_v30 = vmax.f32 %v2665_v17, 0.0  ;;  %v5483_v51 = vld [vmem:[%s10171_s3 + $0x170] sm:$0xf] }
 0x38b   :  { %v10532_v17 = vld [vmem:[#allocation4_spill] sm:$0xff]  ;;  %v5484_v60 = vor.u32 %v5880_v37, %v5483_v51  ;;  %v5876_v51 = vld [vmem:[%s10171_s3 + $0x154] sm:$0xf0] }
 0x38c   :  { %v2538_v58 = vmax.f32 %v2347_v22, %v2357_v43  ;;  %v5307_v16 = vld [vmem:[%s10171_s3 + $0x10] sm:$0xf]  ;;  %v5836_v43 = vld [vmem:[%s10171_s3 + $0x14] sm:$0xf0]  ;;  %v2761_v31 = vpack.c.bf16 %v2713_v30, %v2713_v30 }
 0x38d   :  { %v5308_v55 = vor.u32 %v5836_v43, %v5307_v16  ;;  %3593 = vmatpush.bf16.msra.mxu0 %v5484_v60  ;;  %v5459_v60 = vld [vmem:[%s10171_s3 + $0x140] sm:$0xf] }
 0x38e   :  { %v2614_v28 = vmax.f32 %v10529_v4, %v2538_v58  ;;  %v1717_v40 = vpop.f32.mrf.mxu0  ;;  %2149 = vmatmul.bf16.gmra.mxu2 %v10530_v10  ;;  %v5878_v4 = vld [vmem:[%s10171_s3 + $0x164] sm:$0xf0] }
 0x38f   :  { %v8340_v45 = vadd.f32 %v1966_v27, %v1717_v40  ;;  %3421 = vmatpush.bf16.msrb.mxu1 %v5308_v55  ;;  %v2841_v40 = vunpack.c.l.b16 %v2761_v31  ;;  %v5874_v31 = vld [vmem:[%s10171_s3 + $0x144] sm:$0xf0] }
 0x390   :  { %v2666_v15 = vadd.f32 %v7886_v29, %v2614_v28  ;;  %v5476_v28 = vor.u32 %v5878_v4, %v5475_v0  ;;  %v5451_v4 = vld [vmem:[%s10171_s3 + $0x130] sm:$0xf] }
 0x391   :  { %10531 = vst [vmem:[#allocation42_spill] sm:$0xff] %v8340_v45  ;;  %v8349_v22 = vpop.f32.mrf.mxu2  ;;  %5250 = vmatmul.msk.bf16.gmra.mxu0 %vm1399_vm3, %v10532_v17 }
 0x392   :  { %v2714_v27 = vmax.f32 %v2666_v15, 0.0  ;;  %v1968_v58 = vpop.f32.mrf.mxu1  ;;  %3594 = vmatpush.bf16.msra.mxu0 %v5476_v28  ;;  %v5467_v15 = vld [vmem:[%s10171_s3 + $0x150] sm:$0xf]  ;;  %v5872_v28 = vld [vmem:[%s10171_s3 + $0x134] sm:$0xf0] }
 0x393   :  { %v5468_v16 = vor.u32 %v5876_v51, %v5467_v15  ;;  %v10536_v15 = vld [vmem:[#allocation2_spill] sm:$0xff]  ;;  %v5452_v51 = vor.u32 %v5872_v28, %v5451_v4  ;;  %v5435_v4 = vld [vmem:[%s10171_s3 + $0x110] sm:$0xf]  ;;  %v5868_v28 = vld [vmem:[%s10171_s3 + $0x114] sm:$0xf0] }
 0x394   :  { %v2762_v50 = vpack.c.bf16 %v2714_v27, %v2714_v27  ;;  %v5460_v27 = vor.u32 %v5874_v31, %v5459_v60 }
 0x396   :  { %v2842_v10 = vunpack.c.l.b16 %v2762_v50  ;;  %v1719_v17 = vpop.f32.mrf.mxu0  ;;  %3595 = vmatpush.bf16.msra.mxu0 %v5468_v16  ;;  %v10534_v50 = vld [vmem:[#allocation83_spill] sm:$0xff]  ;;  %v5443_v16 = vld [vmem:[%s10171_s3 + $0x120] sm:$0xf] }
 0x398   :  { %v8365_v30 = vpack.c.b16 %v2842_v10, %v2841_v40 }
 0x399   :  { %v2112_v37 = vpop.f32.mrf.mxu2 }
 0x39a   :  { %10533 = vst [vmem:[#allocation47_spill] sm:$0xff] %v8365_v30  ;;  %v1971_v43 = vpop.f32.mrf.mxu1  ;;  %3596 = vmatpush.bf16.msra.mxu0 %v5460_v27 }
 0x39e   :  { %v1722_v55 = vpop.f32.mrf.mxu0  ;;  %2154 = vmatmul.bf16.gmra.mxu2 %v10534_v50  ;;  %3597 = vmatpush.bf16.msra.mxu0 %v5452_v51 }
 0x39f   :  { %v8380_v0 = vadd.f32 %v1971_v43, %v1722_v55  ;;  %v5870_v43 = vld [vmem:[%s10171_s3 + $0x124] sm:$0xf0]  ;;  %v8400_v55 = vadd.f32 %v8318_v39, %v8323_v9  ;;  %v5427_v9 = vld [vmem:[%s10171_s3 + $0x100] sm:$0xf] }
 0x3a0   :  { %v5444_v60 = vor.u32 %v5870_v43, %v5443_v16  ;;  %v5436_v16 = vor.u32 %v5868_v28, %v5435_v4  ;;  %v5866_v39 = vld [vmem:[%s10171_s3 + $0x104] sm:$0xf0] }
 0x3a1   :  { %10535 = vst [vmem:[#allocation43_spill] sm:$0xff] %v8380_v0  ;;  %v2115_v10 = vpop.f32.mrf.mxu2  ;;  %5251 = vmatmul.msk.bf16.gmra.mxu0 %vm1399_vm3, %v10536_v15  ;;  %v5428_v43 = vor.u32 %v5866_v39, %v5427_v9  ;;  %v10542_v15 = vld [vmem:[#allocation67_spill] sm:$0xff] }
 0x3a2   :  { %v1973_v31 = vpop.f32.mrf.mxu1  ;;  %10537 = vst [vmem:[#allocation44_spill] sm:$0xff] %v8400_v55  ;;  %3598 = vmatpush.bf16.msra.mxu0 %v5444_v60  ;;  %v2360_v40 = vadd.f32 %v10542_v15, %v8349_v22  ;;  %v10544_v39 = vld [vmem:[#allocation7_spill] sm:$0xff]  ;;  %v5888_v22 = vld [vmem:[%s10171_s3 + $0x1b4] sm:$0xf0] }
 0x3a3   :  { %v10545_v0 = vld [vmem:[#allocation87_spill] sm:$0xff] }
 0x3a6   :  { %v1724_v27 = vpop.f32.mrf.mxu0  ;;  %3599 = vmatpush.bf16.msra.mxu0 %v5436_v16  ;;  %v10541_v16 = vld [vmem:[#allocation5_spill] sm:$0xff] }
 0x3a7   :  { %v8402_v50 = vadd.f32 %v1973_v31, %v1724_v27  ;;  %v10539_v31 = vld [vmem:[#allocation53_spill] sm:$0xff] }
 0x3a9   :  { %10538 = vst [vmem:[#allocation65_spill] sm:$0xff] %v8402_v50  ;;  %v2117_v51 = vpop.f32.mrf.mxu2  ;;  %v10543_v50 = vld [vmem:[#allocation80_spill] sm:$0xff] }
 0x3aa   :  { %3600 = vmatpush.bf16.msra.mxu0 %v5428_v43  ;;  %v10548_v43 = vld [vmem:[#allocation56_spill] sm:$0xff] }
 0x3ae   :  { %v1727_v60 = vpop.f32.mrf.mxu0  ;;  %2159 = vmatmul.bf16.gmra.mxu2 %v7674_v2  ;;  %v10546_v2 = vmax.f32 %v10544_v39, %v10545_v0 }
 0x3af   :  { %v8420_v27 = vadd.f32 %v10539_v31, %v1727_v60  ;;  %v8432_v31 = vadd.f32 %v1968_v58, %v1719_v17  ;;  %v10551_v17 = vld [vmem:[#allocation82_spill] sm:$0xff] }
 0x3b1   :  { %10540 = vst [vmem:[#allocation48_spill] sm:$0xff] %v8420_v27  ;;  %v2120_v28 = vpop.f32.mrf.mxu2  ;;  %5252 = vmatmul.msk.bf16.gmra.mxu0 %vm1399_vm3, %v10541_v16  ;;  %v5515_v16 = vld [vmem:[%s10171_s3 + $0x1b0] sm:$0xf] }
 0x3b2   :  { %v2370_v55 = vadd.f32 %v10543_v50, %v2120_v28  ;;  %10547 = vst [vmem:[#allocation54_spill] sm:$0xff] %v8432_v31  ;;  %v5516_v0 = vor.u32 %v5888_v22, %v5515_v16  ;;  %v10550_v50 = vld [vmem:[#allocation70_spill] sm:$0xff]  ;;  %v10560_v31 = vld [vmem:[#allocation77_spill] sm:$0xff] }
 0x3b3   :  { %v2362_v15 = vadd.f32 %v10550_v50, %v2112_v37  ;;  %v10553_v16 = vld [vmem:[#allocation6_spill] sm:$0xff] }
 0x3b4   :  { %v2540_v9 = vmax.f32 %v2360_v40, %v2370_v55  ;;  %3686 = vmatpush.bf16.msra.mxu2 %v5516_v0  ;;  %v10554_v37 = vld [vmem:[#allocation74_spill] sm:$0xff]  ;;  %v10555_v0 = vld [vmem:[#allocation85_spill] sm:$0xff] }
 0x3b6   :  { %v2615_v23 = vmax.f32 %v10546_v2, %v2540_v9  ;;  %v1729_v60 = vpop.f32.mrf.mxu0  ;;  %v10552_v2 = vmax.f32 %v7633_v1, %v7685_v44  ;;  %v10556_v44 = vld [vmem:[#allocation9_spill] sm:$0xff] }
 0x3b7   :  { %v8435_v32 = vadd.f32 %v10548_v43, %v1729_v60 }
 0x3b8   :  { %v2667_v58 = vadd.f32 %v7886_v29, %v2615_v23  ;;  %v2365_v23 = vadd.f32 %v10554_v37, %v2115_v10 }
 0x3b9   :  { %10549 = vst [vmem:[#allocation52_spill] sm:$0xff] %v8435_v32  ;;  %v2122_v55 = vpop.f32.mrf.mxu2 }
 0x3ba   :  { %v2372_v28 = vadd.f32 %v10551_v17, %v2122_v55  ;;  %v2715_v39 = vmax.f32 %v2667_v58, 0.0 }
 0x3bc   :  { %v2542_v9 = vmax.f32 %v2362_v15, %v2372_v28  ;;  %v2763_v22 = vpack.c.bf16 %v2715_v39, %v2715_v39  ;;  %v10557_v28 = vld [vmem:[#allocation91_spill] sm:$0xff]  ;;  %v10561_v39 = vld [vmem:[#allocation12_spill] sm:$0xff] }
 0x3be   :  { %v2616_v60 = vmax.f32 %v10552_v2, %v2542_v9  ;;  %v1732_v43 = vpop.f32.mrf.mxu0  ;;  %2164 = vmatmul.bf16.gmra.mxu2 %v7704_v26  ;;  %v2843_v17 = vunpack.c.l.b16 %v2763_v22  ;;  %v10558_v9 = vmax.f32 %v10556_v44, %v10557_v28 }
 0x3c0   :  { %v2668_v40 = vadd.f32 %v7886_v29, %v2616_v60 }
 0x3c1   :  { %v2125_v4 = vpop.f32.mrf.mxu2  ;;  %5253 = vmatmul.msk.bf16.gmra.mxu0 %vm1399_vm3, %v10553_v16  ;;  %v2367_v16 = vadd.f32 %v10560_v31, %v2117_v51 }
 0x3c2   :  { %v2716_v55 = vmax.f32 %v2668_v40, 0.0  ;;  %v2375_v50 = vadd.f32 %v10555_v0, %v2125_v4 }
 0x3c4   :  { %v2764_v15 = vpack.c.bf16 %v2716_v55, %v2716_v55  ;;  %v2544_v58 = vmax.f32 %v2365_v23, %v2375_v50  ;;  %v10562_v23 = vld [vmem:[#allocation94_spill] sm:$0xff] }
 0x3c5   :  { %v10563_v22 = vmax.f32 %v7660_v38, %v10562_v23  ;;  %v10564_v50 = vld [vmem:[#allocation98_spill] sm:$0xff]  ;;  %v10565_v38 = vld [vmem:[#allocation103_spill] sm:$0xff] }
 0x3c6   :  { %v2844_v1 = vunpack.c.l.b16 %v2764_v15  ;;  %v2617_v26 = vmax.f32 %v10558_v9, %v2544_v58  ;;  %v1734_v2 = vpop.f32.mrf.mxu0  ;;  %v10570_v23 = vld [vmem:[#allocation62_spill] sm:$0xff] }
 0x3c8   :  { %v8460_v60 = vpack.c.b16 %v2844_v1, %v2843_v17  ;;  %v2669_v10 = vadd.f32 %v7886_v29, %v2617_v26 }
 0x3c9   :  { %v2127_v32 = vpop.f32.mrf.mxu2 }
 0x3ca   :  { %10559 = vst [vmem:[#allocation64_spill] sm:$0xff] %v8460_v60  ;;  %v2377_v40 = vadd.f32 %v10561_v39, %v2127_v32  ;;  %v2717_v4 = vmax.f32 %v2669_v10, 0.0  ;;  %v10568_v39 = vld [vmem:[#allocation73_spill] sm:$0xff] }
 0x3cc   :  { %v2546_v37 = vmax.f32 %v2367_v16, %v2377_v40  ;;  %v2765_v17 = vpack.c.bf16 %v2717_v4, %v2717_v4  ;;  %v10566_v16 = vld [vmem:[#allocation59_spill] sm:$0xff]  ;;  %v10579_v40 = vld [vmem:[#allocation89_spill] sm:$0xff] }
 0x3cd   :  { %v8475_v10 = vadd.f32 %v10566_v16, %v1732_v43  ;;  %v10577_v16 = vld [vmem:[#allocation79_spill] sm:$0xff] }
 0x3ce   :  { %v2618_v55 = vmax.f32 %v10563_v22, %v2546_v37  ;;  %v1737_v0 = vpop.f32.mrf.mxu0  ;;  %2169 = vmatmul.bf16.gmra.mxu2 %v10564_v50  ;;  %v2845_v1 = vunpack.c.l.b16 %v2765_v17  ;;  %v8484_v22 = vadd.f32 %v10570_v23, %v1734_v2  ;;  %v8491_v17 = vpop.f32.mrf.mxu3  ;;  %v5850_v2 = vld [vmem:[%s10171_s3 + $0x84] sm:$0xf0] }
 0x3cf   :  { %10567 = vst [vmem:[#allocation49_spill] sm:$0xff] %v8475_v10  ;;  %v5834_v23 = vld [vmem:[%s10171_s3 + $0x4] sm:$0xf0] }
 0x3d0   :  { %v2670_v15 = vadd.f32 %v7886_v29, %v2618_v55  ;;  %10571 = vst [vmem:[#allocation55_spill] sm:$0xff] %v8484_v22  ;;  %v10572_v55 = vld [vmem:[#allocation76_spill] sm:$0xff] }
 0x3d1   :  { %v2130_v58 = vpop.f32.mrf.mxu2  ;;  %3601 = vmatmul.bf16.vlgmr.msra.gmra.mxu0 %v8073_v48 }
 0x3d2   :  { %v2718_v51 = vmax.f32 %v2670_v15, 0.0 }
 0x3d4   :  { %v2766_v31 = vpack.c.bf16 %v2718_v51, %v2718_v51 }
 0x3d6   :  { %v2846_v44 = vunpack.c.l.b16 %v2766_v31  ;;  %v1739_v32 = vpop.f32.mrf.mxu0  ;;  %v10574_v31 = vld [vmem:[#allocation109_spill] sm:$0xff] }
 0x3d8   :  { %v8471_v28 = vpack.c.b16 %v2846_v44, %v2845_v1  ;;  %v5363_v1 = vld [vmem:[%s10171_s3 + $0x80] sm:$0xf] }
 0x3d9   :  { %v2132_v9 = vpop.f32.mrf.mxu2  ;;  %v5299_v44 = vld [vmem:[%s10171_s3] sm:$0xf] }
 0x3de   :  { %v1742_v26 = vpop.f32.mrf.mxu0  ;;  %2174 = vmatmul.bf16.gmra.mxu2 %v10565_v38 }
 0x3df   :  { %v8478_v29 = vadd.f32 %v10568_v39, %v1742_v26  ;;  %v10575_v26 = vld [vmem:[#allocation66_spill] sm:$0xff] }
 0x3e0   :  { %v8504_v38 = vadd.f32 %v10575_v26, %v1737_v0  ;;  %v10580_v0 = vld [vmem:[#allocation104_spill] sm:$0xff] }
 0x3e1   :  { %10569 = vst [vmem:[#allocation57_spill] sm:$0xff] %v8478_v29  ;;  %v2135_v37 = vpop.f32.mrf.mxu2  ;;  %3606 = vmatmul.bf16.gmra.mxu0 %v8107_v8 }
 0x3e2   :  { %10576 = vst [vmem:[#allocation72_spill] sm:$0xff] %v8504_v38 }
 0x3e6   :  { %v1744_v4 = vpop.f32.mrf.mxu0 }
 0x3e7   :  { %v8487_v50 = vadd.f32 %v10572_v55, %v1744_v4  ;;  %v5364_v4 = vor.u32 %v5850_v2, %v5363_v1  ;;  %v5300_v55 = vor.u32 %v5834_v23, %v5299_v44  ;;  %v10581_v1 = vld [vmem:[#allocation97_spill] sm:$0xff]  ;;  %v10582_v2 = vld [vmem:[#allocation108_spill] sm:$0xff] }
 0x3e8   :  { %v10583_v22 = vmax.f32 %v10581_v1, %v10582_v2  ;;  %v10584_v23 = vld [vmem:[#allocation69_spill] sm:$0xff]  ;;  %v10592_v2 = vld [vmem:[#allocation114_spill] sm:$0xff] }
 0x3e9   :  { %10573 = vst [vmem:[#allocation68_spill] sm:$0xff] %v8487_v50  ;;  %v2137_v15 = vpop.f32.mrf.mxu2  ;;  %3511 = vmatpush.bf16.msrb.mxu3 %v5364_v4  ;;  %v2380_v50 = vadd.f32 %v10579_v40, %v2130_v58  ;;  %3422 = vmatpush.bf16.msrb.mxu1 %v5300_v55  ;;  %v8523_v10 = vadd.f32 %v10584_v23, %v1739_v32  ;;  %v10589_v55 = vld [vmem:[#allocation107_spill] sm:$0xff]  ;;  %v10594_v58 = vld [vmem:[#allocation96_spill] sm:$0xff] }
 0x3eb   :  { %10585 = vst [vmem:[#allocation50_spill] sm:$0xff] %v8523_v10 }
 0x3ee   :  { %v1747_v51 = vpop.f32.mrf.mxu0  ;;  %2179 = vmatmul.bf16.gmra.mxu2 %v10574_v31  ;;  %v10586_v31 = vld [vmem:[#allocation81_spill] sm:$0xff] }
 0x3ef   :  { %v8507_v39 = vadd.f32 %v10577_v16, %v1747_v51  ;;  %v8517_v16 = vpop.f32.mrf.mxu3 }
 0x3f1   :  { %10578 = vst [vmem:[#allocation3_spill] sm:$0xff] %v8507_v39  ;;  %v2140_v43 = vpop.f32.mrf.mxu2  ;;  %3611 = vmatmul.bf16.gmra.mxu0 %v8222_v14 }
 0x3f2   :  { %v2390_v26 = vadd.f32 %v10580_v0, %v2140_v43  ;;  %v10588_v43 = vld [vmem:[#allocation93_spill] sm:$0xff] }
 0x3f3   :  { %v2382_v4 = vadd.f32 %v10588_v43, %v2132_v9 }
 0x3f4   :  { %v2548_v51 = vmax.f32 %v2380_v50, %v2390_v26  ;;  %v8534_v50 = vld [vmem:[%s10172_s2] ss:$0 sm:$0xff] }
 0x3f6   :  { %v2619_v29 = vmax.f32 %v10583_v22, %v2548_v51  ;;  %v1749_v44 = vpop.f32.mrf.mxu0 }
 0x3f7   :  { %v8526_v39 = vadd.f32 %v10586_v31, %v1749_v44  ;;  %v10590_v31 = vld [vmem:[#allocation111_spill] sm:$0xff]  ;;  %v8542_v23 = vpop.f32.mrf.mxu3 }
 0x3f8   :  { %v2671_v22 = vadd.f32 %v8534_v50, %v2619_v29  ;;  %v10591_v51 = vmax.f32 %v7749_v54, %v10590_v31  ;;  %10593 = vst [vmem:[#allocation58_spill] sm:$0xff] %v8542_v23  ;;  %v2385_v29 = vadd.f32 %v10594_v58, %v2135_v37  ;;  %v10596_v31 = vld [vmem:[#allocation102_spill] sm:$0xff]  ;;  %v10600_v23 = vld [vmem:[#allocation100_spill] sm:$0xff] }
 0x3f9   :  { %10587 = vst [vmem:[#allocation60_spill] sm:$0xff] %v8526_v39  ;;  %v2142_v40 = vpop.f32.mrf.mxu2  ;;  %v2387_v37 = vadd.f32 %v10600_v23, %v2137_v15 }
 0x3fa   :  { %v2392_v0 = vadd.f32 %v10589_v55, %v2142_v40  ;;  %v2719_v26 = vmax.f32 %v2671_v22, 0.0 }
 0x3fc   :  { %v2550_v32 = vmax.f32 %v2382_v4, %v2392_v0  ;;  %v2767_v39 = vpack.c.bf16 %v2719_v26, %v2719_v26  ;;  %v10595_v4 = vld [vmem:[#allocation110_spill] sm:$0xff]  ;;  %v10601_v26 = vld [vmem:[#allocation112_spill] sm:$0xff] }
 0x3fe   :  { %v2620_v1 = vmax.f32 %v10591_v51, %v2550_v32  ;;  %2184 = vmatmul.bf16.gmra.mxu2 %v10592_v2  ;;  %v2259_v44 = vpop.f32.mrf.mxu0  ;;  %v2847_v54 = vunpack.c.l.b16 %v2767_v39  ;;  %v10597_v51 = vld [vmem:[#allocation113_spill] sm:$0xff]  ;;  %v10602_v39 = vmax.f32 %v7792_v21, %v7850_v56 }
 0x3ff   :  { %v10598_v2 = vmax.f32 %v10596_v31, %v10597_v51  ;;  %v8553_v45 = vpop.f32.mrf.mxu3 }
 0x400   :  { %v2672_v9 = vadd.f32 %v8534_v50, %v2620_v1  ;;  %10599 = vst [vmem:[#allocation71_spill] sm:$0xff] %v8553_v45 }
 0x401   :  { %v2145_v43 = vpop.f32.mrf.mxu2  ;;  %3616 = vmatmul.bf16.gmra.mxu0 %v8250_v5 }
 0x402   :  { %v2720_v40 = vmax.f32 %v2672_v9, 0.0  ;;  %v2395_v22 = vadd.f32 %v10595_v4, %v2145_v43  ;;  %v10603_v4 = vld [vmem:[#allocation119_spill] sm:$0xff] }
 0x404   :  { %v2768_v55 = vpack.c.bf16 %v2720_v40, %v2720_v40  ;;  %v2552_v0 = vmax.f32 %v2385_v29, %v2395_v22 }
 0x406   :  { %v2848_v32 = vunpack.c.l.b16 %v2768_v55  ;;  %v2621_v10 = vmax.f32 %v10598_v2, %v2552_v0  ;;  %v2261_v38 = vpop.f32.mrf.mxu0 }
 0x407   :  { %v8564_v23 = vpop.f32.mrf.mxu3 }
 0x408   :  { %v8551_v27 = vpack.c.b16 %v2848_v32, %v2847_v54  ;;  %v2673_v58 = vadd.f32 %v8534_v50, %v2621_v10 }
 0x409   :  { %v2147_v1 = vpop.f32.mrf.mxu2 }
 0x40a   :  { %v2397_v9 = vadd.f32 %v10601_v26, %v2147_v1  ;;  %v2721_v29 = vmax.f32 %v2673_v58, 0.0  ;;  %v5886_v58 = vld [vmem:[%s10171_s3 + $0x1a4] sm:$0xf0]  ;;  %v10605_v26 = vld [vmem:[#allocation84_spill] sm:$0xff] }
 0x40c   :  { %v2554_v43 = vmax.f32 %v2387_v37, %v2397_v9  ;;  %v2769_v54 = vpack.c.bf16 %v2721_v29, %v2721_v29  ;;  %v5507_v37 = vld [vmem:[%s10171_s3 + $0x1a0] sm:$0xf]  ;;  %v2260_v9 = vadd.f32 %v2259_v44, %v10605_v26 }
 0x40e   :  { %v2622_v40 = vmax.f32 %v10602_v39, %v2554_v43  ;;  %2189 = vmatmul.bf16.gmra.mxu2 %v10603_v4  ;;  %v2264_v22 = vpop.f32.mrf.mxu0  ;;  %v2849_v32 = vunpack.c.l.b16 %v2769_v54  ;;  %v10606_v43 = vld [vmem:[#allocation92_spill] sm:$0xff]  ;;  %v5508_v39 = vor.u32 %v5886_v58, %v5507_v37 }
 0x40f   :  { %v8568_v56 = vpop.f32.mrf.mxu3 }
 0x410   :  { %v2674_v55 = vadd.f32 %v8534_v50, %v2622_v40  ;;  %10604 = vst [vmem:[#allocation51_spill] sm:$0xff] %v8568_v56  ;;  %3687 = vmatpush.bf16.msra.mxu2 %v5508_v39  ;;  %v10611_v56 = vld [vmem:[#allocation95_spill] sm:$0xff] }
 0x411   :  { %v2150_v0 = vpop.f32.mrf.mxu2  ;;  %3621 = vmatmul.bf16.gmra.mxu0 %v8325_v24 }
 0x412   :  { %v2722_v15 = vmax.f32 %v2674_v55, 0.0  ;;  %v10608_v55 = vld [vmem:[#allocation14_spill] sm:$0xff] }
 0x414   :  { %v2770_v10 = vpack.c.bf16 %v2722_v15, %v2722_v15 }
 0x416   :  { %v2850_v31 = vunpack.c.l.b16 %v2770_v10  ;;  %v2266_v51 = vpop.f32.mrf.mxu0 }
 0x417   :  { %v8588_v26 = vpop.f32.mrf.mxu3 }
 0x418   :  { %v8566_v2 = vpack.c.b16 %v2850_v31, %v2849_v32  ;;  %v10610_v32 = vld [vmem:[#allocation86_spill] sm:$0xff]  ;;  %10612 = vst [vmem:[#allocation63_spill] sm:$0xff] %v8588_v26  ;;  %v10622_v26 = vld [vmem:[#allocation16_spill] sm:$0xff] }
 0x419   :  { %v2152_v21 = vpop.f32.mrf.mxu2  ;;  %v2262_v31 = vadd.f32 %v2261_v38, %v10610_v32  ;;  %v10616_v38 = vld [vmem:[#allocation88_spill] sm:$0xff] }
 0x41e   :  { %2194 = vmatmul.bf16.gmra.mxu2 %v7918_v41  ;;  %v2269_v1 = vpop.f32.mrf.mxu0  ;;  %v10607_v41 = vld [vmem:[#allocation8_spill] sm:$0xff] }
 0x41f   :  { %v2270_v29 = vadd.f32 %v2269_v1, %v10606_v43  ;;  %v10609_v54 = vmax.f32 %v10607_v41, %v10608_v55  ;;  %v10614_v43 = vld [vmem:[#allocation15_spill] sm:$0xff]  ;;  %v2265_v55 = vadd.f32 %v2264_v22, %v10616_v38 }
 0x421   :  { %v2500_v40 = vmax.f32 %v2260_v9, %v2270_v29  ;;  %v8579_v4 = vpop.f32.mrf.mxu2  ;;  %3626 = vmatmul.bf16.gmra.mxu0 %v8365_v30  ;;  %v10613_v9 = vld [vmem:[#allocation10_spill] sm:$0xff]  ;;  %v10621_v30 = vld [vmem:[#allocation11_spill] sm:$0xff] }
 0x422   :  { %v10615_v29 = vmax.f32 %v10613_v9, %v10614_v43  ;;  %v10619_v9 = vld [vmem:[#allocation116_spill] sm:$0xff]  ;;  %v10620_v43 = vld [vmem:[#allocation123_spill] sm:$0xff]  ;;  %v10623_v22 = vmax.f32 %v10621_v30, %v10622_v26  ;;  %v5357_v26 = vld [vmem:[%s10171_s3 + $0x78] sm:$0xf0] }
 0x423   :  { %v2595_v15 = vmax.f32 %v10609_v54, %v2500_v40  ;;  %v5847_v30 = vld [vmem:[%s10171_s3 + $0x74] sm:$0xf] }
 0x425   :  { %v2647_v45 = vadd.f32 %v8534_v50, %v2595_v15 }
 0x426   :  { %v2271_v10 = vpop.f32.mrf.mxu0 }
 0x427   :  { %v2272_v44 = vadd.f32 %v2271_v10, %v10611_v56  ;;  %v2695_v58 = vmax.f32 %v2647_v45, 0.0  ;;  %v10617_v56 = vld [vmem:[#allocation99_spill] sm:$0xff]  ;;  %v8600_v45 = vpop.f32.mrf.mxu3 }
 0x428   :  { %10618 = vst [vmem:[#allocation61_spill] sm:$0xff] %v8600_v45 }
 0x429   :  { %v2502_v1 = vmax.f32 %v2262_v31, %v2272_v44  ;;  %v8590_v37 = vpop.f32.mrf.mxu2  ;;  %v2743_v54 = vpack.c.bf16 %v2695_v58, %v2695_v58 }
 0x42b   :  { %v2596_v39 = vmax.f32 %v10615_v29, %v2502_v1  ;;  %v2400_v1 = vadd.f32 %v10619_v9, %v2150_v0  ;;  %v10628_v9 = vld [vmem:[#allocation101_spill] sm:$0xff] }
 0x42d   :  { %v2648_v41 = vadd.f32 %v8534_v50, %v2596_v39  ;;  %v2823_v39 = vunpack.c.l.b16 %v2743_v54 }
 0x42e   :  { %2199 = vmatmul.bf16.gmra.mxu2 %v7952_v49  ;;  %v2274_v40 = vpop.f32.mrf.mxu0 }
 0x42f   :  { %v2696_v15 = vmax.f32 %v2648_v41, 0.0  ;;  %v2275_v10 = vadd.f32 %v2274_v40, %v10617_v56  ;;  %v10624_v40 = vld [vmem:[#allocation118_spill] sm:$0xff] }
 0x431   :  { %v2744_v32 = vpack.c.bf16 %v2696_v15, %v2696_v15  ;;  %v2504_v31 = vmax.f32 %v2265_v55, %v2275_v10  ;;  %v2160_v44 = vpop.f32.mrf.mxu2  ;;  %3631 = vmatmul.bf16.gmra.mxu0 %v8460_v60  ;;  %v10625_v55 = vld [vmem:[#allocation35_spill] sm:$0xff]  ;;  %v10627_v60 = vld [vmem:[#allocation90_spill] sm:$0xff] }
 0x432   :  { %v2410_v29 = vadd.f32 %v10620_v43, %v2160_v44  ;;  %v10626_v15 = vmax.f32 %v10624_v40, %v10625_v55  ;;  %v2267_v45 = vadd.f32 %v2266_v51, %v10627_v60  ;;  %v10630_v51 = vld [vmem:[#allocation125_spill] sm:$0xff] }
 0x433   :  { %v2824_v49 = vunpack.c.l.b16 %v2744_v32  ;;  %v2597_v58 = vmax.f32 %v10623_v22, %v2504_v31  ;;  %v5360_v31 = vor.u32 %v5847_v30, %v5357_v26  ;;  %v10631_v22 = vld [vmem:[#allocation13_spill] sm:$0xff] }
 0x434   :  { %v2556_v41 = vmax.f32 %v2400_v1, %v2410_v29  ;;  %v10629_v1 = vld [vmem:[#allocation120_spill] sm:$0xff] }
 0x435   :  { %v8607_v38 = vpack.c.b16 %v2824_v49, %v2823_v39  ;;  %v2649_v0 = vadd.f32 %v8534_v50, %v2597_v58  ;;  %v2402_v43 = vadd.f32 %v10629_v1, %v2152_v21  ;;  %v5611_v39 = vld [vmem:[%s10171_s3 + $0x270] sm:$0xf]  ;;  %v5912_v49 = vld [vmem:[%s10171_s3 + $0x274] sm:$0xf0]  ;;  %3860 = vmatpush.bf16.msra.mxu3 %v5360_v31  ;;  %v8634_v21 = vpop.f32.mrf.mxu3  ;;  %v10637_v1 = vld [vmem:[#allocation115_spill] sm:$0xff] }
 0x436   :  { %v2623_v56 = vmax.f32 %v10626_v15, %v2556_v41  ;;  %v2276_v10 = vpop.f32.mrf.mxu0  ;;  %v10632_v58 = vld [vmem:[#allocation17_spill] sm:$0xff]  ;;  %v5612_v55 = vor.u32 %v5912_v49, %v5611_v39 }
 0x437   :  { %v2277_v44 = vadd.f32 %v2276_v10, %v10628_v9  ;;  %3423 = vmatmul.bf16.vlgmr.msrb.gmra.mxu1 %v8607_v38  ;;  %v10633_v41 = vmax.f32 %v10631_v22, %v10632_v58  ;;  %v2697_v40 = vmax.f32 %v2649_v0, 0.0  ;;  %v10634_v9 = vld [vmem:[#allocation121_spill] sm:$0xff]  ;;  %v10640_v58 = vld [vmem:[#allocation122_spill] sm:$0xff] }
 0x438   :  { %v2675_v60 = vadd.f32 %v8534_v50, %v2623_v56  ;;  %3771 = vmatpush.bf16.msra.mxu1 %v5612_v55  ;;  %v10639_v0 = vld [vmem:[#allocation105_spill] sm:$0xff] }
 0x439   :  { %v2506_v54 = vmax.f32 %v2267_v45, %v2277_v44  ;;  %v2162_v32 = vpop.f32.mrf.mxu2  ;;  %v10635_v44 = vld [vmem:[#allocation124_spill] sm:$0xff]  ;;  %v2745_v49 = vpack.c.bf16 %v2697_v40, %v2697_v40 }
 0x43a   :  { %v2412_v29 = vadd.f32 %v10630_v51, %v2162_v32  ;;  %v2723_v10 = vmax.f32 %v2675_v60, 0.0  ;;  %v10636_v30 = vmax.f32 %v10634_v9, %v10635_v44  ;;  %v10638_v51 = vld [vmem:[#allocation19_spill] sm:$0xff] }
 0x43b   :  { %v2598_v45 = vmax.f32 %v10633_v41, %v2506_v54  ;;  %v2290_v54 = vadd.f32 %v10638_v51, %v10637_v1  ;;  %v2405_v41 = vadd.f32 %v10640_v58, %v8579_v4  ;;  %v10642_v9 = vld [vmem:[#allocation23_spill] sm:$0xff]  ;;  %v10645_v4 = vld [vmem:[#allocation126_spill] sm:$0xff] }
 0x43c   :  { %v2558_v15 = vmax.f32 %v2402_v43, %v2412_v29 }
 0x43d   :  { %v2650_v56 = vadd.f32 %v8534_v50, %v2598_v45  ;;  %v2771_v45 = vpack.c.bf16 %v2723_v10, %v2723_v10  ;;  %v8654_v51 = vpop.f32.mrf.mxu3 }
 0x43e   :  { %v2624_v26 = vmax.f32 %v10636_v30, %v2558_v15  ;;  %2204 = vmatmul.bf16.gmra.mxu2 %v8004_v6  ;;  %v2279_v32 = vpop.f32.mrf.mxu0  ;;  %v10641_v15 = vld [vmem:[#allocation18_spill] sm:$0xff] }
 0x43f   :  { %v2280_v31 = vadd.f32 %v2279_v32, %v10639_v0  ;;  %v2698_v39 = vmax.f32 %v2650_v56, 0.0  ;;  %v10643_v44 = vmax.f32 %v10641_v15, %v10642_v9  ;;  %v2825_v56 = vunpack.c.l.b16 %v2745_v49  ;;  %v10649_v49 = vld [vmem:[#allocation106_spill] sm:$0xff] }
 0x440   :  { %v2676_v43 = vadd.f32 %v8534_v50, %v2624_v26 }
 0x441   :  { %v2508_v29 = vmax.f32 %v2280_v31, %v2290_v54  ;;  %v2165_v22 = vpop.f32.mrf.mxu2  ;;  %3636 = vmatmul.bf16.gmra.mxu0 %v8471_v28  ;;  %v2746_v60 = vpack.c.bf16 %v2698_v39, %v2698_v39  ;;  %v2851_v54 = vunpack.c.l.b16 %v2771_v45  ;;  %v10644_v31 = vld [vmem:[#allocation22_spill] sm:$0xff]  ;;  %v10651_v45 = vld [vmem:[#allocation28_spill] sm:$0xff] }
 0x442   :  { %v2724_v6 = vmax.f32 %v2676_v43, 0.0  ;;  %v2415_v55 = vadd.f32 %v8013_v46, %v2165_v22  ;;  %v10646_v10 = vmax.f32 %v10644_v31, %v10645_v4  ;;  %v10647_v46 = vld [vmem:[#allocation117_spill] sm:$0xff]  ;;  %v2407_v15 = vadd.f32 %v10651_v45, %v8590_v37 }
 0x443   :  { %v2599_v30 = vmax.f32 %v10643_v44, %v2508_v29  ;;  %v2826_v40 = vunpack.c.l.b16 %v2746_v60  ;;  %v10648_v22 = vld [vmem:[#allocation21_spill] sm:$0xff] }
 0x444   :  { %v2772_v32 = vpack.c.bf16 %v2724_v6, %v2724_v6  ;;  %v2560_v26 = vmax.f32 %v2405_v41, %v2415_v55  ;;  %v2292_v58 = vadd.f32 %v10648_v22, %v10647_v46 }
 0x445   :  { %v8652_v1 = vpack.c.b16 %v2826_v40, %v2825_v56  ;;  %v2651_v29 = vadd.f32 %v8534_v50, %v2599_v30  ;;  %v10652_v40 = vld [vmem:[#allocation20_spill] sm:$0xff] }
 0x446   :  { %v2852_v0 = vunpack.c.l.b16 %v2772_v32  ;;  %v2625_v39 = vmax.f32 %v10646_v10, %v2560_v26  ;;  %v2281_v43 = vpop.f32.mrf.mxu0  ;;  %v10653_v32 = vld [vmem:[#allocation25_spill] sm:$0xff] }
 0x447   :  { %v2282_v60 = vadd.f32 %v2281_v43, %v10649_v49  ;;  %3428 = vmatmul.bf16.gmra.mxu1 %v8652_v1  ;;  %v2699_v56 = vmax.f32 %v2651_v29, 0.0  ;;  %v10654_v26 = vmax.f32 %v10652_v40, %v10653_v32 }
 0x448   :  { %v8664_v41 = vpack.c.b16 %v2852_v0, %v2851_v54  ;;  %v2677_v9 = vadd.f32 %v8534_v50, %v2625_v39  ;;  %v10655_v54 = vmax.f32 %v7930_v35, %v8023_v20  ;;  %v8678_v39 = vpop.f32.mrf.mxu3 }
 0x449   :  { %v2510_v6 = vmax.f32 %v2282_v60, %v2292_v58  ;;  %v2167_v55 = vpop.f32.mrf.mxu2  ;;  %v2747_v37 = vpack.c.bf16 %v2699_v56, %v2699_v56  ;;  %v5349_v56 = vld [vmem:[%s10171_s3 + $0x68] sm:$0xf0] }
 0x44a   :  { %10650 = vst [vmem:[#allocation75_spill] sm:$0xff] %v8664_v41  ;;  %v2417_v44 = vadd.f32 %v8048_v3, %v2167_v55  ;;  %v2725_v10 = vmax.f32 %v2677_v9, 0.0 }
 0x44b   :  { %v2600_v30 = vmax.f32 %v10654_v26, %v2510_v6  ;;  %v2827_v49 = vunpack.c.l.b16 %v2747_v37 }
 0x44c   :  { %v2562_v31 = vmax.f32 %v2407_v15, %v2417_v44  ;;  %v2773_v58 = vpack.c.bf16 %v2725_v10, %v2725_v10  ;;  %v5845_v44 = vld [vmem:[%s10171_s3 + $0x64] sm:$0xf] }
 0x44d   :  { %v2652_v4 = vadd.f32 %v8534_v50, %v2600_v30  ;;  %v5352_v40 = vor.u32 %v5845_v44, %v5349_v56 }
 0x44e   :  { %v2626_v0 = vmax.f32 %v10655_v54, %v2562_v31  ;;  %2209 = vmatmul.bf16.gmra.mxu2 %v8057_v11  ;;  %v2853_v35 = vunpack.c.l.b16 %v2773_v58  ;;  %v8684_v11 = vpop.f32.mrf.mxu0  ;;  %v10658_v31 = vld [vmem:[#allocation31_spill] sm:$0xff] }
 0x44f   :  { %v2700_v43 = vmax.f32 %v2652_v4, 0.0  ;;  %3861 = vmatpush.bf16.msra.mxu3 %v5352_v40  ;;  %v5910_v4 = vld [vmem:[%s10171_s3 + $0x264] sm:$0xf0]  ;;  %v5595_v40 = vld [vmem:[%s10171_s3 + $0x250] sm:$0xf] }
 0x450   :  { %v2678_v3 = vadd.f32 %v8534_v50, %v2626_v0  ;;  %v8690_v9 = vpop.f32.mrf.mxu3 }
 0x451   :  { %v2748_v46 = vpack.c.bf16 %v2700_v43, %v2700_v43  ;;  %v2170_v22 = vpop.f32.mrf.mxu2  ;;  %3641 = vmatmul.bf16.gmra.mxu0 %v8551_v27 }
 0x452   :  { %v2726_v29 = vmax.f32 %v2678_v3, 0.0  ;;  %v2420_v3 = vadd.f32 %v8075_v34, %v2170_v22  ;;  %v5884_v34 = vld [vmem:[%s10171_s3 + $0x194] sm:$0xf0]  ;;  %v5341_v22 = vld [vmem:[%s10171_s3 + $0x58] sm:$0xf0] }
 0x453   :  { %v2828_v60 = vunpack.c.l.b16 %v2748_v46 }
 0x454   :  { %v2774_v6 = vpack.c.bf16 %v2726_v29, %v2726_v29 }
 0x455   :  { %v8682_v55 = vpack.c.b16 %v2828_v60, %v2827_v49  ;;  %v10659_v49 = vmax.f32 %v8050_v53, %v8116_v18 }
 0x456   :  { %v2854_v20 = vunpack.c.l.b16 %v2774_v6  ;;  %v8699_v32 = vpop.f32.mrf.mxu0 }
 0x457   :  { %10656 = vst [vmem:[#allocation78_spill] sm:$0xff] %v8682_v55  ;;  %3433 = vmatmul.bf16.gmra.mxu1 %v8682_v55  ;;  %3512 = vmatmul.bf16.vlgmr.msrb.gmra.mxu3 %v8682_v55 }
 0x458   :  { %v8688_v45 = vpack.c.b16 %v2854_v20, %v2853_v35  ;;  %v8702_v30 = vpop.f32.mrf.mxu3 }
 0x459   :  { %v2172_v15 = vpop.f32.mrf.mxu2 }
 0x45a   :  { %10657 = vst [vmem:[#allocation4_spill] sm:$0xff] %v8688_v45  ;;  %v2422_v35 = vadd.f32 %v8100_v33, %v2172_v15 }
 0x45e   :  { %2214 = vmatmul.bf16.gmra.mxu2 %v8097_v12  ;;  %v5603_v12 = vld [vmem:[%s10171_s3 + $0x260] sm:$0xf]  ;;  %v8712_v0 = vpop.f32.mrf.mxu0 }
 0x45f   :  { %v5604_v54 = vor.u32 %v5910_v4, %v5603_v12  ;;  %v5908_v12 = vld [vmem:[%s10171_s3 + $0x254] sm:$0xf0] }
 0x460   :  { %v8714_v37 = vpop.f32.mrf.mxu3  ;;  %v5596_v4 = vor.u32 %v5908_v12, %v5595_v40  ;;  %v10667_v40 = vld [vmem:[#allocation26_spill] sm:$0xff] }
 0x461   :  { %v2175_v26 = vpop.f32.mrf.mxu2  ;;  %3646 = vmatmul.bf16.gmra.mxu0 %v8566_v2  ;;  %3772 = vmatpush.bf16.msra.mxu1 %v5604_v54 }
 0x465   :  { %3773 = vmatpush.bf16.msra.mxu1 %v5596_v4 }
 0x466   :  { %v8720_v58 = vpop.f32.mrf.mxu0 }
 0x467   :  { %3438 = vmatmul.bf16.gmra.mxu1 %v10658_v31  ;;  %3517 = vmatmul.bf16.gmra.mxu3 %v10658_v31 }
 0x468   :  { %v8727_v6 = vpop.f32.mrf.mxu3 }
 0x469   :  { %v2177_v10 = vpop.f32.mrf.mxu2 }
 0x46a   :  { %v2427_v12 = vadd.f32 %v10667_v40, %v2177_v10 }
 0x46e   :  { %2219 = vmatmul.bf16.gmra.mxu2 %v8122_v36  ;;  %v5499_v36 = vld [vmem:[%s10171_s3 + $0x190] sm:$0xf] }
 0x46f   :  { %v5500_v18 = vor.u32 %v5884_v34, %v5499_v36 }
 0x471   :  { %v2180_v43 = vpop.f32.mrf.mxu2  ;;  %3651 = vmatmul.bf16.gmra.mxu0 %v8664_v41  ;;  %3688 = vmatpush.bf16.msra.mxu2 %v5500_v18 }
 0x472   :  { %v2430_v46 = vadd.f32 %v8155_v61, %v2180_v43  ;;  %v5843_v61 = vld [vmem:[%s10171_s3 + $0x54] sm:$0xf]  ;;  %v8750_v43 = vpop.f32.mrf.mxu0 }
 0x473   :  { %v5344_v56 = vor.u32 %v5843_v61, %v5341_v22 }
 0x474   :  { %v2564_v29 = vmax.f32 %v2420_v3, %v2430_v46 }
 0x475   :  { %3862 = vmatpush.bf16.msra.mxu3 %v5344_v56 }
 0x476   :  { %v2627_v60 = vmax.f32 %v10659_v49, %v2564_v29  ;;  %v8758_v29 = vpop.f32.mrf.mxu3  ;;  %v10661_v49 = vld [vmem:[#allocation32_spill] sm:$0xff] }
 0x477   :  { %3443 = vmatmul.bf16.gmra.mxu1 %v8073_v48  ;;  %3522 = vmatmul.bf16.gmra.mxu3 %v8073_v48 }
 0x478   :  { %v2679_v20 = vadd.f32 %v8534_v50, %v2627_v60  ;;  %v2425_v60 = vadd.f32 %v10661_v49, %v2175_v26 }
 0x479   :  { %v2182_v53 = vpop.f32.mrf.mxu2 }
 0x47a   :  { %v2432_v44 = vadd.f32 %v8191_v52, %v2182_v53  ;;  %v2727_v33 = vmax.f32 %v2679_v20, 0.0  ;;  %v10660_v52 = vmax.f32 %v8136_v13, %v8138_v7  ;;  %v10662_v7 = vld [vmem:[#allocation24_spill] sm:$0xff] }
 0x47c   :  { %v2566_v54 = vmax.f32 %v2422_v35, %v2432_v44  ;;  %v2775_v36 = vpack.c.bf16 %v2727_v33, %v2727_v33  ;;  %v10663_v35 = vld [vmem:[#allocation33_spill] sm:$0xff]  ;;  %v8767_v44 = vpop.f32.mrf.mxu0 }
 0x47d   :  { %10665 = vst [vmem:[#allocation83_spill] sm:$0xff] %v8767_v44 }
 0x47e   :  { %v2628_v15 = vmax.f32 %v10660_v52, %v2566_v54  ;;  %2224 = vmatmul.bf16.gmra.mxu2 %v8153_v57  ;;  %v2891_v22 = vunpack.c.l.b16 %v2775_v36  ;;  %v10664_v57 = vmax.f32 %v10662_v7, %v10663_v35  ;;  %v8774_v54 = vpop.f32.mrf.mxu3 }
 0x480   :  { %v2680_v3 = vadd.f32 %v8534_v50, %v2628_v15  ;;  %v10668_v15 = vmax.f32 %v8169_v47, %v8171_v62 }
 0x481   :  { %v2185_v46 = vpop.f32.mrf.mxu2  ;;  %3656 = vmatmul.bf16.gmra.mxu0 %v8688_v45 }
 0x482   :  { %v2728_v34 = vmax.f32 %v2680_v3, 0.0  ;;  %v2435_v61 = vadd.f32 %v8213_v19, %v2185_v46 }
 0x484   :  { %v2776_v53 = vpack.c.bf16 %v2728_v34, %v2728_v34  ;;  %v2568_v18 = vmax.f32 %v2425_v60, %v2435_v61  ;;  %v8782_v10 = vpop.f32.mrf.mxu0 }
 0x485   :  { %10669 = vst [vmem:[#allocation53_spill] sm:$0xff] %v8782_v10 }
 0x486   :  { %v2892_v13 = vunpack.c.l.b16 %v2776_v53  ;;  %v2629_v20 = vmax.f32 %v10664_v57, %v2568_v18  ;;  %v8784_v34 = vpop.f32.mrf.mxu3  ;;  %v5841_v18 = vld [vmem:[%s10171_s3 + $0x44] sm:$0xf] }
 0x487   :  { %3448 = vmatmul.bf16.gmra.mxu1 %v8107_v8  ;;  %3527 = vmatmul.bf16.gmra.mxu3 %v8107_v8 }
 0x488   :  { %v8769_v56 = vpack.c.b16 %v2892_v13, %v2891_v22  ;;  %v2681_v19 = vadd.f32 %v8534_v50, %v2629_v20  ;;  %v5333_v22 = vld [vmem:[%s10171_s3 + $0x48] sm:$0xf0]  ;;  %v5906_v20 = vld [vmem:[%s10171_s3 + $0x244] sm:$0xf0] }
 0x489   :  { %v2187_v26 = vpop.f32.mrf.mxu2  ;;  %v5336_v13 = vor.u32 %v5841_v18, %v5333_v22  ;;  %v5405_v18 = vld [vmem:[%s10171_s3 + $0xd8] sm:$0xf0] }
 0x48a   :  { %10666 = vst [vmem:[#allocation2_spill] sm:$0xff] %v8769_v56  ;;  %v2437_v4 = vadd.f32 %v8234_v42, %v2187_v26  ;;  %v2729_v52 = vmax.f32 %v2681_v19, 0.0  ;;  %v5882_v19 = vld [vmem:[%s10171_s3 + $0x184] sm:$0xf0] }
 0x48b   :  { %3863 = vmatpush.bf16.msra.mxu3 %v5336_v13 }
 0x48c   :  { %v2570_v33 = vmax.f32 %v2427_v12, %v2437_v4  ;;  %v2777_v60 = vpack.c.bf16 %v2729_v52, %v2729_v52  ;;  %v5491_v12 = vld [vmem:[%s10171_s3 + $0x180] sm:$0xf]  ;;  %v5863_v4 = vld [vmem:[%s10171_s3 + $0xf4] sm:$0xf] }
 0x48d   :  { %v5492_v52 = vor.u32 %v5882_v19, %v5491_v12  ;;  %v5857_v12 = vld [vmem:[%s10171_s3 + $0xc4] sm:$0xf]  ;;  %v5397_v19 = vld [vmem:[%s10171_s3 + $0xc8] sm:$0xf0] }
 0x48e   :  { %v2630_v3 = vmax.f32 %v10668_v15, %v2570_v33  ;;  %2229 = vmatmul.bf16.gmra.mxu2 %v8205_v59  ;;  %v2893_v61 = vunpack.c.l.b16 %v2777_v60  ;;  %v8790_v59 = vpop.f32.mrf.mxu0  ;;  %v8799_v7 = vpop.f32.mrf.mxu3  ;;  %v5421_v15 = vld [vmem:[%s10171_s3 + $0xf8] sm:$0xf0]  ;;  %v5413_v60 = vld [vmem:[%s10171_s3 + $0xe8] sm:$0xf0] }
 0x48f   :  { %10670 = vst [vmem:[#allocation5_spill] sm:$0xff] %v8790_v59  ;;  %3689 = vmatpush.bf16.msra.mxu2 %v5492_v52  ;;  %v10674_v52 = vld [vmem:[#allocation30_spill] sm:$0xff] }
 0x490   :  { %v2682_v46 = vadd.f32 %v8534_v50, %v2630_v3  ;;  %v5424_v3 = vor.u32 %v5863_v4, %v5421_v15  ;;  %v10673_v4 = vld [vmem:[#allocation27_spill] sm:$0xff]  ;;  %v5839_v15 = vld [vmem:[%s10171_s3 + $0x34] sm:$0xf] }
 0x491   :  { %v2190_v49 = vpop.f32.mrf.mxu2  ;;  %3661 = vmatmul.bf16.gmra.mxu0 %v8769_v56 }
 0x492   :  { %v2730_v36 = vmax.f32 %v2682_v46, 0.0  ;;  %3949 = vmatpush.bf16.msrb.mxu0 %v5424_v3  ;;  %v5861_v46 = vld [vmem:[%s10171_s3 + $0xe4] sm:$0xf]  ;;  %v2440_v22 = vadd.f32 %v8491_v17, %v2190_v49  ;;  %v10675_v17 = vmax.f32 %v10673_v4, %v10674_v52  ;;  %v5325_v3 = vld [vmem:[%s10171_s3 + $0x38] sm:$0xf0] }
 0x494   :  { %v2778_v42 = vpack.c.bf16 %v2730_v36, %v2730_v36  ;;  %v5416_v36 = vor.u32 %v5861_v46, %v5413_v60  ;;  %v5328_v60 = vor.u32 %v5839_v15, %v5325_v3  ;;  %v10678_v15 = vld [vmem:[#allocation34_spill] sm:$0xff] }
 0x495   :  { %v10679_v3 = vld [vmem:[#allocation38_spill] sm:$0xff] }
 0x496   :  { %v2894_v53 = vunpack.c.l.b16 %v2778_v42  ;;  %v8804_v57 = vpop.f32.mrf.mxu0  ;;  %v8825_v33 = vpop.f32.mrf.mxu3  ;;  %3950 = vmatpush.bf16.msrb.mxu0 %v5416_v36  ;;  %v5855_v36 = vld [vmem:[%s10171_s3 + $0xb4] sm:$0xf]  ;;  %3864 = vmatpush.bf16.msra.mxu3 %v5328_v60 }
 0x497   :  { %3453 = vmatmul.bf16.gmra.mxu1 %v8222_v14  ;;  %3532 = vmatmul.bf16.gmra.mxu3 %v8222_v14  ;;  %10671 = vst [vmem:[#allocation67_spill] sm:$0xff] %v8804_v57  ;;  %v10696_v57 = vld [vmem:[#allocation64_spill] sm:$0xff] }
 0x498   :  { %v8788_v47 = vpack.c.b16 %v2894_v53, %v2893_v61  ;;  %v5859_v53 = vld [vmem:[%s10171_s3 + $0xd4] sm:$0xf] }
 0x499   :  { %v2192_v62 = vpop.f32.mrf.mxu2 }
 0x49e   :  { %2234 = vmatmul.bf16.gmra.mxu2 %v8243_v25  ;;  %v5587_v25 = vld [vmem:[%s10171_s3 + $0x240] sm:$0xf]  ;;  %v8837_v42 = vpop.f32.mrf.mxu0 }
 0x49f   :  { %v5588_v40 = vor.u32 %v5906_v20, %v5587_v25  ;;  %10672 = vst [vmem:[#allocation80_spill] sm:$0xff] %v8837_v42  ;;  %v5408_v25 = vor.u32 %v5859_v53, %v5405_v18  ;;  %v8847_v20 = vpop.f32.mrf.mxu3  ;;  %v2442_v53 = vadd.f32 %v8517_v16, %v2192_v62  ;;  %v5853_v62 = vld [vmem:[%s10171_s3 + $0xa4] sm:$0xf] }
 0x4a1   :  { %v8801_v35 = vpop.f32.mrf.mxu2  ;;  %3666 = vmatmul.bf16.gmra.mxu0 %v8788_v47  ;;  %3774 = vmatpush.bf16.msra.mxu1 %v5588_v40 }
 0x4a2   :  { %3951 = vmatpush.bf16.msrb.mxu0 %v5408_v25 }
 0x4a6   :  { %v8875_v18 = vpop.f32.mrf.mxu0 }
 0x4a7   :  { %3458 = vmatmul.bf16.gmra.mxu1 %v8250_v5  ;;  %3537 = vmatmul.bf16.gmra.mxu3 %v8250_v5  ;;  %10676 = vst [vmem:[#allocation7_spill] sm:$0xff] %v8875_v18 }
 0x4a9   :  { %v8814_v26 = vpop.f32.mrf.mxu2 }
 0x4ae   :  { %2239 = vmatmul.bf16.gmra.mxu2 %v8265_v63 }
 0x4b1   :  { %v2200_v61 = vpop.f32.mrf.mxu2 }
 0x4b2   :  { %v2450_v13 = vadd.f32 %v8564_v23, %v2200_v61  ;;  %v5400_v23 = vor.u32 %v5857_v12, %v5397_v19  ;;  %v5389_v61 = vld [vmem:[%s10171_s3 + $0xb8] sm:$0xf0]  ;;  %v5579_v12 = vld [vmem:[%s10171_s3 + $0x230] sm:$0xf]  ;;  %v5904_v19 = vld [vmem:[%s10171_s3 + $0x234] sm:$0xf0] }
 0x4b3   :  { %v5580_v16 = vor.u32 %v5904_v19, %v5579_v12  ;;  %v5851_v12 = vld [vmem:[%s10171_s3 + $0x94] sm:$0xf] }
 0x4b4   :  { %v2572_v63 = vmax.f32 %v2440_v22, %v2450_v13  ;;  %v8849_v40 = vpop.f32.mrf.mxu1  ;;  %3952 = vmatpush.bf16.msrb.mxu0 %v5400_v23  ;;  %v10677_v13 = vld [vmem:[#allocation51_spill] sm:$0xff] }
 0x4b5   :  { %3775 = vmatpush.bf16.msra.mxu1 %v5580_v16 }
 0x4b6   :  { %v2631_v49 = vmax.f32 %v10675_v17, %v2572_v63  ;;  %v5392_v63 = vor.u32 %v5855_v36, %v5389_v61  ;;  %v5381_v17 = vld [vmem:[%s10171_s3 + $0xa8] sm:$0xf0]  ;;  %v10681_v36 = vld [vmem:[#allocation45_spill] sm:$0xff] }
 0x4b7   :  { %3463 = vmatmul.bf16.gmra.mxu1 %v8325_v24  ;;  %3542 = vmatmul.bf16.gmra.mxu3 %v8325_v24  ;;  %v5384_v61 = vor.u32 %v5853_v62, %v5381_v17  ;;  %v8909_v17 = vpop.f32.mrf.mxu0 }
 0x4b8   :  { %v2683_v22 = vadd.f32 %v8534_v50, %v2631_v49  ;;  %3953 = vmatpush.bf16.msrb.mxu0 %v5392_v63  ;;  %v8893_v49 = vpop.f32.mrf.mxu3  ;;  %10684 = vst [vmem:[#allocation87_spill] sm:$0xff] %v8909_v17 }
 0x4b9   :  { %v2202_v46 = vpop.f32.mrf.mxu2 }
 0x4ba   :  { %v2452_v25 = vadd.f32 %v10677_v13, %v2202_v46  ;;  %v2731_v23 = vmax.f32 %v2683_v22, 0.0  ;;  %v10680_v46 = vmax.f32 %v10678_v15, %v10679_v3  ;;  %v10682_v13 = vld [vmem:[#allocation58_spill] sm:$0xff]  ;;  %v5373_v22 = vld [vmem:[%s10171_s3 + $0x98] sm:$0xf0]  ;;  %v10683_v15 = vld [vmem:[#allocation63_spill] sm:$0xff] }
 0x4bb   :  { %v5376_v62 = vor.u32 %v5851_v12, %v5373_v22 }
 0x4bc   :  { %v2574_v4 = vmax.f32 %v2442_v53, %v2452_v25  ;;  %v8885_v52 = vpop.f32.mrf.mxu1  ;;  %v2445_v25 = vadd.f32 %v10682_v13, %v8801_v35  ;;  %3954 = vmatpush.bf16.msrb.mxu0 %v5384_v61  ;;  %v2779_v19 = vpack.c.bf16 %v2731_v23, %v2731_v23  ;;  %v10686_v13 = vld [vmem:[#allocation39_spill] sm:$0xff] }
 0x4be   :  { %v2632_v60 = vmax.f32 %v10680_v46, %v2574_v4  ;;  %2244 = vmatmul.bf16.gmra.mxu2 %v10681_v36  ;;  %v5365_v36 = vld [vmem:[%s10171_s3 + $0x88] sm:$0xf0]  ;;  %v2903_v61 = vunpack.c.l.b16 %v2779_v19 }
 0x4c0   :  { %v2684_v53 = vadd.f32 %v8534_v50, %v2632_v60  ;;  %3955 = vmatpush.bf16.msrb.mxu0 %v5376_v62  ;;  %v5849_v60 = vld [vmem:[%s10171_s3 + $0x84] sm:$0xf]  ;;  %v10690_v62 = vld [vmem:[#allocation71_spill] sm:$0xff] }
 0x4c1   :  { %v2205_v63 = vpop.f32.mrf.mxu2  ;;  %v5368_v22 = vor.u32 %v5849_v60, %v5365_v36  ;;  %v2447_v17 = vadd.f32 %v10690_v62, %v8814_v26  ;;  %v8931_v36 = vpop.f32.mrf.mxu0 }
 0x4c2   :  { %v2732_v4 = vmax.f32 %v2684_v53, 0.0  ;;  %v2455_v16 = vadd.f32 %v10683_v15, %v2205_v63  ;;  %v10685_v53 = vld [vmem:[#allocation29_spill] sm:$0xff]  ;;  %v10688_v15 = vld [vmem:[#allocation47_spill] sm:$0xff]  ;;  %10692 = vst [vmem:[#allocation70_spill] sm:$0xff] %v8931_v36 }
 0x4c3   :  { %v10687_v63 = vmax.f32 %v10685_v53, %v10686_v13  ;;  %v10693_v13 = vld [vmem:[#allocation40_spill] sm:$0xff] }
 0x4c4   :  { %v2780_v3 = vpack.c.bf16 %v2732_v4, %v2732_v4  ;;  %v2576_v46 = vmax.f32 %v2445_v25, %v2455_v16  ;;  %v3429_v35 = vpop.f32.mrf.mxu1  ;;  %v8922_v25 = vpop.f32.mrf.mxu3  ;;  %3956 = vmatpush.bf16.msrb.mxu0 %v5368_v22 }
 0x4c6   :  { %v2904_v23 = vunpack.c.l.b16 %v2780_v3  ;;  %v2633_v12 = vmax.f32 %v10687_v63, %v2576_v46  ;;  %v10691_v3 = vld [vmem:[#allocation61_spill] sm:$0xff]  ;;  %v10694_v63 = vld [vmem:[#allocation46_spill] sm:$0xff] }
 0x4c7   :  { %3468 = vmatmul.bf16.gmra.mxu1 %v10688_v15  ;;  %3547 = vmatmul.bf16.gmra.mxu3 %v10688_v15 }
 0x4c8   :  { %v8924_v4 = vpack.c.b16 %v2904_v23, %v2903_v61  ;;  %v2685_v19 = vadd.f32 %v8534_v50, %v2633_v12  ;;  %v10695_v61 = vmax.f32 %v10693_v13, %v10694_v63 }
 0x4c9   :  { %v2207_v16 = vpop.f32.mrf.mxu2 }
 0x4ca   :  { %10689 = vst [vmem:[#allocation56_spill] sm:$0xff] %v8924_v4  ;;  %v2457_v18 = vadd.f32 %v10691_v3, %v2207_v16  ;;  %3671 = vmatmul.bf16.gmra.mxu0 %v8924_v4  ;;  %v2733_v53 = vmax.f32 %v2685_v19, 0.0  ;;  %v8942_v19 = vpop.f32.mrf.mxu0 }
 0x4cb   :  { %10697 = vst [vmem:[#allocation82_spill] sm:$0xff] %v8942_v19  ;;  %v5902_v19 = vld [vmem:[%s10171_s3 + $0x224] sm:$0xf0] }
 0x4cc   :  { %v2578_v46 = vmax.f32 %v2447_v17, %v2457_v18  ;;  %v3431_v60 = vpop.f32.mrf.mxu1  ;;  %v8938_v62 = vpop.f32.mrf.mxu3  ;;  %v2781_v12 = vpack.c.bf16 %v2733_v53, %v2733_v53 }
 0x4ce   :  { %v2634_v23 = vmax.f32 %v10695_v61, %v2578_v46  ;;  %3690 = vmatmul.bf16.vlgmr.msra.gmra.mxu2 %v8222_v14  ;;  %v2905_v18 = vunpack.c.l.b16 %v2781_v12 }
 0x4d0   :  { %v2686_v22 = vadd.f32 %v8534_v50, %v2634_v23  ;;  %v5837_v23 = vld [vmem:[%s10171_s3 + $0x24] sm:$0xf] }
 0x4d1   :  { %v2210_v26 = vpop.f32.mrf.mxu2 }
 0x4d2   :  { %v2734_v16 = vmax.f32 %v2686_v22, 0.0  ;;  %v5317_v22 = vld [vmem:[%s10171_s3 + $0x28] sm:$0xf0] }
 0x4d3   :  { %v5320_v12 = vor.u32 %v5837_v23, %v5317_v22 }
 0x4d4   :  { %v2782_v3 = vpack.c.bf16 %v2734_v16, %v2734_v16  ;;  %v3434_v42 = vpop.f32.mrf.mxu1 }
 0x4d5   :  { %3865 = vmatpush.bf16.msra.mxu3 %v5320_v12 }
 0x4d6   :  { %v2906_v17 = vunpack.c.l.b16 %v2782_v3  ;;  %v8959_v3 = vpop.f32.mrf.mxu0 }
 0x4d7   :  { %3473 = vmatmul.bf16.gmra.mxu1 %v10696_v57  ;;  %3552 = vmatmul.bf16.gmra.mxu3 %v10696_v57  ;;  %10699 = vst [vmem:[#allocation74_spill] sm:$0xff] %v8959_v3 }
 0x4d8   :  { %v8944_v46 = vpack.c.b16 %v2906_v17, %v2905_v18 }
 0x4d9   :  { %v2212_v13 = vpop.f32.mrf.mxu2 }
 0x4da   :  { %10698 = vst [vmem:[#allocation6_spill] sm:$0xff] %v8944_v46  ;;  %v3513_v63 = vpop.f32.mrf.mxu3  ;;  %3676 = vmatmul.bf16.gmra.mxu0 %v8944_v46  ;;  %v2460_v46 = vadd.f32 %v8634_v21, %v2210_v26  ;;  %v5835_v21 = vld [vmem:[%s10171_s3 + $0x14] sm:$0xf] }
 0x4db   :  { %v8948_v61 = vadd.f32 %v3513_v63, %v8849_v40  ;;  %v5571_v63 = vld [vmem:[%s10171_s3 + $0x220] sm:$0xf] }
 0x4dc   :  { %v8950_v53 = vpop.f32.mrf.mxu1  ;;  %v5572_v23 = vor.u32 %v5902_v19, %v5571_v63 }
 0x4de   :  { %3695 = vmatmul.bf16.gmra.mxu2 %v8250_v5  ;;  %3776 = vmatpush.bf16.msra.mxu1 %v5572_v23 }
 0x4e1   :  { %v2215_v16 = vpop.f32.mrf.mxu2 }
 0x4e2   :  { %v3515_v18 = vpop.f32.mrf.mxu3 }
 0x4e3   :  { %v8962_v40 = vadd.f32 %v3515_v18, %v8885_v52  ;;  %v8977_v18 = vpop.f32.mrf.mxu0 }
 0x4e4   :  { %v8964_v17 = vpop.f32.mrf.mxu1  ;;  %10700 = vst [vmem:[#allocation85_spill] sm:$0xff] %v8977_v18 }
 0x4e7   :  { %3478 = vmatmul.bf16.gmra.mxu1 %v8471_v28  ;;  %3557 = vmatmul.bf16.gmra.mxu3 %v8471_v28 }
 0x4e9   :  { %v2217_v22 = vpop.f32.mrf.mxu2 }
 0x4ea   :  { %v3518_v12 = vpop.f32.mrf.mxu3  ;;  %3957 = vmatmul.bf16.vlgmr.msrb.gmra.mxu0 %v8682_v55 }
 0x4eb   :  { %v8975_v52 = vadd.f32 %v3518_v12, %v3429_v35  ;;  %v8988_v10 = vpop.f32.mrf.mxu0  ;;  %v10702_v35 = vld [vmem:[#allocation41_spill] sm:$0xff]  ;;  %v10703_v12 = vld [vmem:[#allocation43_spill] sm:$0xff] }
 0x4ec   :  { %v8979_v3 = vpop.f32.mrf.mxu1  ;;  %10701 = vst [vmem:[#allocation9_spill] sm:$0xff] %v8988_v10  ;;  %v10704_v18 = vmax.f32 %v10702_v35, %v10703_v12  ;;  %v5900_v35 = vld [vmem:[%s10171_s3 + $0x214] sm:$0xf0]  ;;  %v2465_v10 = vadd.f32 %v8678_v39, %v2215_v16 }
 0x4ee   :  { %3700 = vmatmul.bf16.gmra.mxu2 %v8325_v24 }
 0x4f1   :  { %v2220_v36 = vpop.f32.mrf.mxu2 }
 0x4f2   :  { %v2470_v4 = vadd.f32 %v8702_v30, %v2220_v36  ;;  %v3520_v59 = vpop.f32.mrf.mxu3  ;;  %v5309_v30 = vld [vmem:[%s10171_s3 + $0x18] sm:$0xf0] }
 0x4f3   :  { %v8984_v19 = vadd.f32 %v3520_v59, %v3431_v60  ;;  %v5312_v59 = vor.u32 %v5835_v21, %v5309_v30  ;;  %v2462_v60 = vadd.f32 %v8654_v51, %v2212_v13  ;;  %v10706_v21 = vld [vmem:[#allocation65_spill] sm:$0xff] }
 0x4f4   :  { %v2580_v63 = vmax.f32 %v2460_v46, %v2470_v4  ;;  %v8986_v23 = vpop.f32.mrf.mxu1 }
 0x4f5   :  { %3866 = vmatpush.bf16.msra.mxu3 %v5312_v59 }
 0x4f6   :  { %v2635_v44 = vmax.f32 %v10704_v18, %v2580_v63  ;;  %v5563_v63 = vld [vmem:[%s10171_s3 + $0x210] sm:$0xf] }
 0x4f7   :  { %3483 = vmatmul.bf16.gmra.mxu1 %v8551_v27  ;;  %3562 = vmatmul.bf16.gmra.mxu3 %v8551_v27 }
 0x4f8   :  { %v2687_v36 = vadd.f32 %v8534_v50, %v2635_v44  ;;  %v5564_v44 = vor.u32 %v5900_v35, %v5563_v63 }
 0x4f9   :  { %v2222_v4 = vpop.f32.mrf.mxu2 }
 0x4fa   :  { %v2472_v26 = vadd.f32 %v8714_v37, %v2222_v4  ;;  %v3523_v46 = vpop.f32.mrf.mxu3  ;;  %3962 = vmatmul.bf16.gmra.mxu0 %v10658_v31  ;;  %v2735_v13 = vmax.f32 %v2687_v36, 0.0  ;;  %v10705_v37 = vld [vmem:[#allocation44_spill] sm:$0xff]  ;;  %3777 = vmatpush.bf16.msra.mxu1 %v5564_v44 }
 0x4fb   :  { %v9005_v18 = vadd.f32 %v3523_v46, %v3434_v42  ;;  %v10707_v30 = vmax.f32 %v10705_v37, %v10706_v21  ;;  %v9019_v42 = vpop.f32.mrf.mxu0 }
 0x4fc   :  { %v2582_v12 = vmax.f32 %v2462_v60, %v2472_v26  ;;  %v9013_v51 = vpop.f32.mrf.mxu1  ;;  %10708 = vst [vmem:[#allocation91_spill] sm:$0xff] %v9019_v42  ;;  %v2783_v31 = vpack.c.bf16 %v2735_v13, %v2735_v13  ;;  %v10710_v42 = vld [vmem:[#allocation48_spill] sm:$0xff] }
 0x4fe   :  { %v2636_v4 = vmax.f32 %v10707_v30, %v2582_v12  ;;  %3705 = vmatmul.bf16.gmra.mxu2 %v10688_v15  ;;  %v2915_v21 = vunpack.c.l.b16 %v2783_v31  ;;  %v10709_v30 = vld [vmem:[#allocation42_spill] sm:$0xff] }
 0x4ff   :  { %v10711_v55 = vmax.f32 %v10709_v30, %v10710_v42 }
 0x500   :  { %v2688_v59 = vadd.f32 %v8534_v50, %v2636_v4 }
 0x501   :  { %v2225_v46 = vpop.f32.mrf.mxu2 }
 0x502   :  { %v2736_v60 = vmax.f32 %v2688_v59, 0.0  ;;  %v2475_v26 = vadd.f32 %v8727_v6, %v2225_v46  ;;  %v3525_v63 = vpop.f32.mrf.mxu3 }
 0x503   :  { %v9025_v36 = vadd.f32 %v3525_v63, %v8950_v53  ;;  %v9034_v16 = vpop.f32.mrf.mxu0  ;;  %v2467_v53 = vadd.f32 %v8690_v9, %v2217_v22 }
 0x504   :  { %v2784_v35 = vpack.c.bf16 %v2736_v60, %v2736_v60  ;;  %v2584_v12 = vmax.f32 %v2465_v10, %v2475_v26  ;;  %v3449_v37 = vpop.f32.mrf.mxu1  ;;  %10713 = vst [vmem:[#allocation12_spill] sm:$0xff] %v9034_v16  ;;  %v10714_v60 = vld [vmem:[#allocation54_spill] sm:$0xff]  ;;  %v10715_v26 = vld [vmem:[#allocation52_spill] sm:$0xff] }
 0x505   :  { %v10716_v63 = vmax.f32 %v10714_v60, %v10715_v26 }
 0x506   :  { %v2916_v44 = vunpack.c.l.b16 %v2784_v35  ;;  %v2637_v4 = vmax.f32 %v10711_v55, %v2584_v12 }
 0x507   :  { %3488 = vmatmul.bf16.gmra.mxu1 %v8566_v2  ;;  %3567 = vmatmul.bf16.gmra.mxu3 %v8566_v2 }
 0x508   :  { %v9032_v39 = vpack.c.b16 %v2916_v44, %v2915_v21  ;;  %v2689_v10 = vadd.f32 %v8534_v50, %v2637_v4  ;;  %v5898_v44 = vld [vmem:[%s10171_s3 + $0x204] sm:$0xf0] }
 0x509   :  { %v2227_v6 = vpop.f32.mrf.mxu2 }
 0x50a   :  { %10712 = vst [vmem:[#allocation77_spill] sm:$0xff] %v9032_v39  ;;  %v2477_v31 = vadd.f32 %v8758_v29, %v2227_v6  ;;  %v3528_v13 = vpop.f32.mrf.mxu3  ;;  %3967 = vmatmul.bf16.gmra.mxu0 %v8073_v48  ;;  %v2737_v46 = vmax.f32 %v2689_v10, 0.0 }
 0x50b   :  { %v9041_v55 = vadd.f32 %v3528_v13, %v8964_v17  ;;  %v5555_v17 = vld [vmem:[%s10171_s3 + $0x200] sm:$0xf]  ;;  %v9057_v6 = vpop.f32.mrf.mxu0  ;;  %v5833_v13 = vld [vmem:[%s10171_s3 + $0x4] sm:$0xf] }
 0x50c   :  { %v2586_v42 = vmax.f32 %v2467_v53, %v2477_v31  ;;  %v3451_v59 = vpop.f32.mrf.mxu1  ;;  %v2785_v12 = vpack.c.bf16 %v2737_v46, %v2737_v46  ;;  %v5556_v4 = vor.u32 %v5898_v44, %v5555_v17  ;;  %10717 = vst [vmem:[#allocation94_spill] sm:$0xff] %v9057_v6  ;;  %v10723_v6 = vld [vmem:[#allocation57_spill] sm:$0xff] }
 0x50e   :  { %v2638_v35 = vmax.f32 %v10716_v63, %v2586_v42  ;;  %3710 = vmatmul.bf16.gmra.mxu2 %v10696_v57  ;;  %3778 = vmatpush.bf16.msra.mxu1 %v5556_v4  ;;  %v2917_v10 = vunpack.c.l.b16 %v2785_v12 }
 0x510   :  { %v2690_v9 = vadd.f32 %v8534_v50, %v2638_v35 }
 0x511   :  { %v2230_v22 = vpop.f32.mrf.mxu2 }
 0x512   :  { %v2738_v29 = vmax.f32 %v2690_v9, 0.0  ;;  %v3530_v21 = vpop.f32.mrf.mxu3 }
 0x513   :  { %v9055_v30 = vadd.f32 %v3530_v21, %v8979_v3  ;;  %v5301_v3 = vld [vmem:[%s10171_s3 + $0x8] sm:$0xf0]  ;;  %v9073_v9 = vpop.f32.mrf.mxu0 }
 0x514   :  { %v2786_v53 = vpack.c.bf16 %v2738_v29, %v2738_v29  ;;  %v3454_v50 = vpop.f32.mrf.mxu1  ;;  %v5304_v60 = vor.u32 %v5833_v13, %v5301_v3  ;;  %10719 = vst [vmem:[#allocation103_spill] sm:$0xff] %v9073_v9  ;;  %v2480_v13 = vadd.f32 %v8774_v54, %v2230_v22 }
 0x516   :  { %v2918_v31 = vunpack.c.l.b16 %v2786_v53  ;;  %3867 = vmatpush.bf16.msra.mxu3 %v5304_v60 }
 0x517   :  { %3493 = vmatmul.bf16.gmra.mxu1 %v8664_v41  ;;  %3572 = vmatmul.bf16.gmra.mxu3 %v8664_v41 }
 0x518   :  { %v9067_v42 = vpack.c.b16 %v2918_v31, %v2917_v10 }
 0x519   :  { %v2232_v46 = vpop.f32.mrf.mxu2 }
 0x51a   :  { %10718 = vst [vmem:[#allocation98_spill] sm:$0xff] %v9067_v42  ;;  %v3533_v26 = vpop.f32.mrf.mxu3  ;;  %3972 = vmatmul.bf16.gmra.mxu0 %v8107_v8 }
 0x51b   :  { %v9071_v63 = vadd.f32 %v3533_v26, %v8986_v23  ;;  %v9083_v44 = vpop.f32.mrf.mxu0 }
 0x51c   :  { %v3456_v35 = vpop.f32.mrf.mxu1  ;;  %10720 = vst [vmem:[#allocation59_spill] sm:$0xff] %v9083_v44 }
 0x51e   :  { %3715 = vmatmul.bf16.gmra.mxu2 %v8471_v28 }
 0x521   :  { %v2235_v12 = vpop.f32.mrf.mxu2 }
 0x522   :  { %v3535_v29 = vpop.f32.mrf.mxu3  ;;  %v2485_v16 = vadd.f32 %v8799_v7, %v2235_v12 }
 0x523   :  { %v9077_v21 = vadd.f32 %v3535_v29, %v9013_v51  ;;  %v9091_v31 = vpop.f32.mrf.mxu0  ;;  %v5879_v29 = vld [vmem:[%s10171_s3 + $0x174] sm:$0xf] }
 0x524   :  { %v9079_v17 = vpop.f32.mrf.mxu1  ;;  %10721 = vst [vmem:[#allocation73_spill] sm:$0xff] %v9091_v31  ;;  %v10722_v31 = vld [vmem:[#allocation49_spill] sm:$0xff] }
 0x525   :  { %v10724_v54 = vmax.f32 %v10722_v31, %v10723_v6  ;;  %v5995_v6 = vld [vmem:[%s10172_s2] ss:$0 sm:$0xff] }
 0x527   :  { %3498 = vmatmul.bf16.gmra.mxu1 %v8688_v45  ;;  %3577 = vmatmul.bf16.gmra.mxu3 %v8688_v45 }
 0x529   :  { %v2237_v23 = vpop.f32.mrf.mxu2 }
 0x52a   :  { %v3538_v4 = vpop.f32.mrf.mxu3  ;;  %3977 = vmatmul.bf16.gmra.mxu0 %v8222_v14 }
 0x52b   :  { %v9086_v53 = vadd.f32 %v3538_v4, %v3449_v37  ;;  %v5485_v37 = vld [vmem:[%s10171_s3 + $0x178] sm:$0xf0] }
 0x52c   :  { %v9088_v10 = vpop.f32.mrf.mxu1  ;;  %v5488_v9 = vor.u32 %v5879_v29, %v5485_v37  ;;  %v5895_v37 = vld [vmem:[%s10171_s3 + $0x1f4] sm:$0xf] }
 0x52e   :  { %3720 = vmatmul.bf16.gmra.mxu2 %v8551_v27 }
 0x52f   :  { %4038 = vmatpush.bf16.msrb.mxu2 %v5488_v9 }
 0x531   :  { %v2240_v51 = vpop.f32.mrf.mxu2 }
 0x532   :  { %v2490_v3 = vadd.f32 %v8847_v20, %v2240_v51  ;;  %v3540_v60 = vpop.f32.mrf.mxu3  ;;  %v5911_v20 = vld [vmem:[%s10171_s3 + $0x274] sm:$0xf] }
 0x533   :  { %v9095_v26 = vadd.f32 %v3540_v60, %v3451_v59  ;;  %v5613_v59 = vld [vmem:[%s10171_s3 + $0x278] sm:$0xf0] }
 0x534   :  { %v2588_v4 = vmax.f32 %v2480_v13, %v2490_v3  ;;  %v9103_v44 = vpop.f32.mrf.mxu1  ;;  %v5616_v51 = vor.u32 %v5911_v20, %v5613_v59  ;;  %v2482_v3 = vadd.f32 %v8784_v34, %v2232_v46  ;;  %v5549_v34 = vld [vmem:[%s10171_s3 + $0x1f8] sm:$0xf0]  ;;  %v9130_v46 = vpop.f32.mrf.mxu0  ;;  %v10727_v20 = vld [vmem:[#allocation68_spill] sm:$0xff] }
 0x535   :  { %10725 = vst [vmem:[#allocation62_spill] sm:$0xff] %v9130_v46 }
 0x536   :  { %v2639_v22 = vmax.f32 %v10724_v54, %v2588_v4  ;;  %4216 = vmatpush.bf16.msrb.mxu3 %v5616_v51 }
 0x537   :  { %3582 = vmatmul.bf16.gmra.mxu3 %v8769_v56  ;;  %3779 = vmatmul.bf16.vlgmr.msra.gmra.mxu1 %v8325_v24 }
 0x538   :  { %v2691_v9 = vadd.f32 %v5995_v6, %v2639_v22  ;;  %v10726_v22 = vld [vmem:[#allocation55_spill] sm:$0xff] }
 0x539   :  { %v2242_v13 = vpop.f32.mrf.mxu2  ;;  %v10728_v59 = vmax.f32 %v10726_v22, %v10727_v20  ;;  %v10729_v20 = vld [vmem:[#allocation72_spill] sm:$0xff] }
 0x53a   :  { %v2492_v31 = vadd.f32 %v8893_v49, %v2242_v13  ;;  %v3543_v60 = vpop.f32.mrf.mxu3  ;;  %3982 = vmatmul.bf16.gmra.mxu0 %v8250_v5  ;;  %v5552_v49 = vor.u32 %v5895_v37, %v5549_v34 }
 0x53b   :  { %v9122_v29 = vadd.f32 %v3543_v60, %v3454_v50  ;;  %v2739_v50 = vmax.f32 %v2691_v9, 0.0 }
 0x53c   :  { %v2590_v4 = vmax.f32 %v2482_v3, %v2492_v31  ;;  %v9132_v54 = vpop.f32.mrf.mxu1  ;;  %4127 = vmatpush.bf16.msrb.mxu1 %v5552_v49  ;;  %v10730_v49 = vld [vmem:[#allocation3_spill] sm:$0xff] }
 0x53d   :  { %v2787_v3 = vpack.c.bf16 %v2739_v50, %v2739_v50  ;;  %v10731_v9 = vmax.f32 %v10729_v20, %v10730_v49 }
 0x53e   :  { %v2640_v51 = vmax.f32 %v10728_v59, %v2590_v4  ;;  %3725 = vmatmul.bf16.gmra.mxu2 %v8566_v2  ;;  %v9144_v4 = vpop.f32.mrf.mxu0 }
 0x540   :  { %v2692_v13 = vadd.f32 %v5995_v6, %v2640_v51  ;;  %v2927_v51 = vunpack.c.l.b16 %v2787_v3 }
 0x541   :  { %v2245_v60 = vpop.f32.mrf.mxu2 }
 0x542   :  { %v2495_v5 = vadd.f32 %v8922_v25, %v2245_v60  ;;  %v3545_v42 = vpop.f32.mrf.mxu3  ;;  %v2740_v46 = vmax.f32 %v2692_v13, 0.0  ;;  %v10732_v13 = vld [vmem:[#allocation50_spill] sm:$0xff]  ;;  %v10733_v60 = vld [vmem:[#allocation60_spill] sm:$0xff] }
 0x543   :  { %v9140_v31 = vadd.f32 %v3545_v42, %v3456_v35  ;;  %v10734_v3 = vmax.f32 %v10732_v13, %v10733_v60 }
 0x544   :  { %v2592_v37 = vmax.f32 %v2485_v16, %v2495_v5  ;;  %v9142_v34 = vpop.f32.mrf.mxu1  ;;  %v2788_v22 = vpack.c.bf16 %v2740_v46, %v2740_v46  ;;  %v2487_v5 = vadd.f32 %v8825_v33, %v2237_v23 }
 0x546   :  { %v2641_v59 = vmax.f32 %v10731_v9, %v2592_v37  ;;  %v2928_v14 = vunpack.c.l.b16 %v2788_v22  ;;  %v9165_v33 = vpop.f32.mrf.mxu0 }
 0x547   :  { %3587 = vmatmul.bf16.gmra.mxu3 %v8788_v47  ;;  %3784 = vmatmul.bf16.gmra.mxu1 %v10688_v15 }
 0x548   :  { %v9151_v7 = vpack.c.b16 %v2928_v14, %v2927_v51  ;;  %v2693_v16 = vadd.f32 %v5995_v6, %v2641_v59  ;;  %v5877_v51 = vld [vmem:[%s10171_s3 + $0x164] sm:$0xf] }
 0x549   :  { %v2247_v25 = vpop.f32.mrf.mxu2 }
 0x54a   :  { %v2497_v42 = vadd.f32 %v8938_v62, %v2247_v25  ;;  %v3548_v35 = vpop.f32.mrf.mxu3  ;;  %3987 = vmatmul.bf16.gmra.mxu0 %v8325_v24  ;;  %v2741_v37 = vmax.f32 %v2693_v16, 0.0  ;;  %v3603_v62 = vadd.f32 %v8684_v11, %v8948_v61  ;;  %v5477_v25 = vld [vmem:[%s10171_s3 + $0x168] sm:$0xf0] }
 0x54b   :  { %v9157_v12 = vadd.f32 %v3548_v35, %v9079_v17  ;;  %v5480_v11 = vor.u32 %v5877_v51, %v5477_v25  ;;  %v3605_v35 = vadd.f32 %v8699_v32, %v8962_v40  ;;  %v5541_v32 = vld [vmem:[%s10171_s3 + $0x1e8] sm:$0xf0] }
 0x54c   :  { %v2594_v46 = vmax.f32 %v2487_v5, %v2497_v42  ;;  %v9159_v50 = vpop.f32.mrf.mxu1  ;;  %v2789_v9 = vpack.c.bf16 %v2741_v37, %v2741_v37  ;;  %v5605_v42 = vld [vmem:[%s10171_s3 + $0x268] sm:$0xf0] }
 0x54d   :  { %4039 = vmatpush.bf16.msrb.mxu2 %v5480_v11  ;;  %v3610_v11 = vadd.f32 %v8720_v58, %v8984_v19 }
 0x54e   :  { %v2642_v14 = vmax.f32 %v10734_v3, %v2594_v46  ;;  %3730 = vmatmul.bf16.gmra.mxu2 %v8664_v41  ;;  %v9194_v3 = vpop.f32.mrf.mxu0 }
 0x550   :  { %v2694_v23 = vadd.f32 %v5995_v6, %v2642_v14  ;;  %v2929_v6 = vunpack.c.l.b16 %v2789_v9 }
 0x551   :  { %v3691_v22 = vpop.f32.mrf.mxu2 }
 0x552   :  { %v9169_v20 = vadd.f32 %v3691_v22, %v3603_v62  ;;  %v3550_v17 = vpop.f32.mrf.mxu3  ;;  %v2742_v49 = vmax.f32 %v2694_v23, 0.0  ;;  %v5893_v62 = vld [vmem:[%s10171_s3 + $0x1e4] sm:$0xf]  ;;  %v3608_v22 = vadd.f32 %v8712_v0, %v8975_v52 }
 0x553   :  { %v9172_v59 = vadd.f32 %v3550_v17, %v9088_v10  ;;  %v5909_v10 = vld [vmem:[%s10171_s3 + $0x264] sm:$0xf]  ;;  %v5544_v23 = vor.u32 %v5893_v62, %v5541_v32  ;;  %v10740_v62 = vld [vmem:[#allocation83_spill] sm:$0xff] }
 0x554   :  { %v9180_v5 = vpop.f32.mrf.mxu1  ;;  %v2790_v61 = vpack.c.bf16 %v2742_v49, %v2742_v49  ;;  %v5608_v46 = vor.u32 %v5909_v10, %v5605_v42  ;;  %v3615_v32 = vadd.f32 %v10740_v62, %v9025_v36  ;;  %v10744_v62 = vld [vmem:[#allocation5_spill] sm:$0xff] }
 0x555   :  { %4128 = vmatpush.bf16.msrb.mxu1 %v5544_v23 }
 0x556   :  { %v2930_v16 = vunpack.c.l.b16 %v2790_v61  ;;  %4217 = vmatpush.bf16.msrb.mxu3 %v5608_v46  ;;  %v9216_v51 = vpop.f32.mrf.mxu0 }
 0x557   :  { %3789 = vmatmul.bf16.gmra.mxu1 %v10696_v57  ;;  %3868 = vmatmul.bf16.vlgmr.msra.gmra.mxu3 %v8607_v38  ;;  %10736 = vst [vmem:[#allocation109_spill] sm:$0xff] %v9216_v51 }
 0x558   :  { %v9192_v13 = vpack.c.b16 %v2930_v16, %v2929_v6 }
 0x559   :  { %v3693_v60 = vpop.f32.mrf.mxu2 }
 0x55a   :  { %10735 = vst [vmem:[#allocation76_spill] sm:$0xff] %v9192_v13  ;;  %v9196_v14 = vadd.f32 %v3693_v60, %v3605_v35  ;;  %v3553_v38 = vpop.f32.mrf.mxu3  ;;  %3992 = vmatmul.bf16.gmra.mxu0 %v10688_v15  ;;  %v5469_v35 = vld [vmem:[%s10171_s3 + $0x158] sm:$0xf0] }
 0x55b   :  { %v9200_v37 = vadd.f32 %v3553_v38, %v9103_v44 }
 0x55c   :  { %v3476_v40 = vpop.f32.mrf.mxu1 }
 0x55e   :  { %3735 = vmatmul.bf16.gmra.mxu2 %v8688_v45 }
 0x561   :  { %v3696_v17 = vpop.f32.mrf.mxu2 }
 0x562   :  { %v9211_v49 = vadd.f32 %v3696_v17, %v3608_v22  ;;  %v3555_v44 = vpop.f32.mrf.mxu3 }
 0x563   :  { %v9214_v9 = vadd.f32 %v3555_v44, %v9132_v54  ;;  %v9228_v54 = vpop.f32.mrf.mxu0 }
 0x564   :  { %v3479_v25 = vpop.f32.mrf.mxu1  ;;  %10737 = vst [vmem:[#allocation66_spill] sm:$0xff] %v9228_v54 }
 0x567   :  { %3794 = vmatmul.bf16.gmra.mxu1 %v8471_v28  ;;  %3873 = vmatmul.bf16.gmra.mxu3 %v8652_v1  ;;  %v3613_v1 = vadd.f32 %v8750_v43, %v9005_v18  ;;  %v10739_v43 = vld [vmem:[#allocation78_spill] sm:$0xff]  ;;  %v5907_v18 = vld [vmem:[%s10171_s3 + $0x254] sm:$0xf] }
 0x569   :  { %v3698_v61 = vpop.f32.mrf.mxu2 }
 0x56a   :  { %v9222_v6 = vadd.f32 %v3698_v61, %v3610_v11  ;;  %v3558_v0 = vpop.f32.mrf.mxu3  ;;  %3997 = vmatmul.bf16.gmra.mxu0 %v10696_v57  ;;  %v5891_v61 = vld [vmem:[%s10171_s3 + $0x1d4] sm:$0xf] }
 0x56b   :  { %v9226_v52 = vadd.f32 %v3558_v0, %v9142_v34  ;;  %v5875_v34 = vld [vmem:[%s10171_s3 + $0x154] sm:$0xf]  ;;  %v9244_v38 = vpop.f32.mrf.mxu0  ;;  %v5533_v0 = vld [vmem:[%s10171_s3 + $0x1d8] sm:$0xf0] }
 0x56c   :  { %v3481_v16 = vpop.f32.mrf.mxu1  ;;  %v5472_v60 = vor.u32 %v5875_v34, %v5469_v35  ;;  %10738 = vst [vmem:[#allocation79_spill] sm:$0xff] %v9244_v38 }
 0x56e   :  { %3740 = vmatmul.bf16.gmra.mxu2 %v8769_v56 }
 0x56f   :  { %4040 = vmatpush.bf16.msrb.mxu2 %v5472_v60 }
 0x571   :  { %v3701_v10 = vpop.f32.mrf.mxu2 }
 0x572   :  { %v9233_v42 = vadd.f32 %v3701_v10, %v3613_v1  ;;  %v3560_v58 = vpop.f32.mrf.mxu3  ;;  %v5536_v1 = vor.u32 %v5891_v61, %v5533_v0  ;;  %v10746_v0 = vld [vmem:[#allocation56_spill] sm:$0xff] }
 0x573   :  { %v9236_v19 = vadd.f32 %v3560_v58, %v9159_v50  ;;  %v5597_v50 = vld [vmem:[%s10171_s3 + $0x258] sm:$0xf0]  ;;  %v9271_v10 = vpop.f32.mrf.mxu0 }
 0x574   :  { %v3484_v46 = vpop.f32.mrf.mxu1  ;;  %v5600_v23 = vor.u32 %v5907_v18, %v5597_v50  ;;  %4129 = vmatpush.bf16.msrb.mxu1 %v5536_v1  ;;  %10741 = vst [vmem:[#allocation89_spill] sm:$0xff] %v9271_v10  ;;  %v10742_v58 = vld [vmem:[#allocation53_spill] sm:$0xff]  ;;  %v10743_v50 = vld [vmem:[#allocation31_spill] sm:$0xff] }
 0x575   :  { %v10747_v1 = vld [vmem:[#allocation67_spill] sm:$0xff] }
 0x576   :  { %4218 = vmatpush.bf16.msrb.mxu3 %v5600_v23 }
 0x577   :  { %3799 = vmatmul.bf16.gmra.mxu1 %v8551_v27  ;;  %3878 = vmatmul.bf16.gmra.mxu3 %v10739_v43 }
 0x579   :  { %v3703_v22 = vpop.f32.mrf.mxu2 }
 0x57a   :  { %v9256_v17 = vadd.f32 %v3703_v22, %v3615_v32  ;;  %v3563_v44 = vpop.f32.mrf.mxu3  ;;  %4002 = vmatmul.bf16.gmra.mxu0 %v8471_v28  ;;  %v3620_v32 = vadd.f32 %v10744_v62, %v9055_v30 }
 0x57b   :  { %v9260_v11 = vadd.f32 %v3563_v44, %v9180_v5  ;;  %v3618_v5 = vadd.f32 %v10742_v58, %v9041_v55  ;;  %v9285_v22 = vpop.f32.mrf.mxu0  ;;  %v3623_v58 = vadd.f32 %v10747_v1, %v9071_v63  ;;  %v5905_v63 = vld [vmem:[%s10171_s3 + $0x244] sm:$0xf] }
 0x57c   :  { %v9268_v36 = vpop.f32.mrf.mxu1  ;;  %10745 = vst [vmem:[#allocation104_spill] sm:$0xff] %v9285_v22 }
 0x57e   :  { %3745 = vmatmul.bf16.gmra.mxu2 %v8788_v47 }
 0x581   :  { %v3706_v34 = vpop.f32.mrf.mxu2 }
 0x582   :  { %v9275_v35 = vadd.f32 %v3706_v34, %v3618_v5  ;;  %v3565_v60 = vpop.f32.mrf.mxu3 }
 0x583   :  { %v9277_v43 = vadd.f32 %v3565_v60, %v3476_v40  ;;  %v9307_v62 = vpop.f32.mrf.mxu0 }
 0x584   :  { %v9279_v18 = vpop.f32.mrf.mxu1  ;;  %10748 = vst [vmem:[#allocation97_spill] sm:$0xff] %v9307_v62  ;;  %v5525_v62 = vld [vmem:[%s10171_s3 + $0x1c8] sm:$0xf0] }
 0x587   :  { %3804 = vmatmul.bf16.gmra.mxu1 %v8566_v2  ;;  %3883 = vmatmul.bf16.gmra.mxu3 %v10743_v50  ;;  %v5873_v50 = vld [vmem:[%s10171_s3 + $0x144] sm:$0xf] }
 0x589   :  { %v3708_v23 = vpop.f32.mrf.mxu2 }
 0x58a   :  { %v9287_v44 = vadd.f32 %v3708_v23, %v3620_v32  ;;  %v3568_v55 = vpop.f32.mrf.mxu3  ;;  %4007 = vmatmul.bf16.gmra.mxu0 %v8551_v27 }
 0x58b   :  { %v9290_v61 = vadd.f32 %v3568_v55, %v3479_v25  ;;  %v5461_v25 = vld [vmem:[%s10171_s3 + $0x148] sm:$0xf0]  ;;  %v10749_v55 = vld [vmem:[#allocation80_spill] sm:$0xff] }
 0x58c   :  { %v9292_v40 = vpop.f32.mrf.mxu1  ;;  %v5464_v23 = vor.u32 %v5873_v50, %v5461_v25  ;;  %v3625_v1 = vadd.f32 %v10749_v55, %v9077_v21  ;;  %v10751_v55 = vld [vmem:[#allocation6_spill] sm:$0xff] }
 0x58e   :  { %3750 = vmatmul.bf16.gmra.mxu2 %v10746_v0 }
 0x58f   :  { %4041 = vmatpush.bf16.msrb.mxu2 %v5464_v23  ;;  %v5889_v23 = vld [vmem:[%s10171_s3 + $0x1c4] sm:$0xf] }
 0x590   :  { %v5528_v21 = vor.u32 %v5889_v23, %v5525_v62  ;;  %v5869_v62 = vld [vmem:[%s10171_s3 + $0x124] sm:$0xf]  ;;  %v5445_v23 = vld [vmem:[%s10171_s3 + $0x128] sm:$0xf0] }
 0x591   :  { %v3711_v5 = vpop.f32.mrf.mxu2  ;;  %v5448_v38 = vor.u32 %v5869_v62, %v5445_v23 }
 0x592   :  { %v9297_v34 = vadd.f32 %v3711_v5, %v3623_v58  ;;  %v3570_v30 = vpop.f32.mrf.mxu3  ;;  %4130 = vmatpush.bf16.msrb.mxu1 %v5528_v21 }
 0x593   :  { %v9299_v60 = vadd.f32 %v3570_v30, %v3481_v16  ;;  %v5589_v16 = vld [vmem:[%s10171_s3 + $0x248] sm:$0xf0] }
 0x594   :  { %v9309_v32 = vpop.f32.mrf.mxu1  ;;  %v5592_v58 = vor.u32 %v5905_v63, %v5589_v16  ;;  %v5871_v63 = vld [vmem:[%s10171_s3 + $0x134] sm:$0xf]  ;;  %v9340_v16 = vpop.f32.mrf.mxu0 }
 0x595   :  { %10750 = vst [vmem:[#allocation108_spill] sm:$0xff] %v9340_v16 }
 0x596   :  { %4219 = vmatpush.bf16.msrb.mxu3 %v5592_v58  ;;  %v10752_v58 = vld [vmem:[#allocation7_spill] sm:$0xff] }
 0x597   :  { %3809 = vmatmul.bf16.gmra.mxu1 %v8664_v41  ;;  %3888 = vmatmul.bf16.gmra.mxu3 %v8073_v48 }
 0x599   :  { %v3713_v5 = vpop.f32.mrf.mxu2 }
 0x59a   :  { %v9321_v30 = vadd.f32 %v3713_v5, %v3625_v1  ;;  %v3573_v50 = vpop.f32.mrf.mxu3  ;;  %4012 = vmatmul.bf16.gmra.mxu0 %v8566_v2  ;;  %v3628_v5 = vadd.f32 %v10752_v58, %v9086_v53  ;;  %v5867_v53 = vld [vmem:[%s10171_s3 + $0x114] sm:$0xf] }
 0x59b   :  { %v9324_v25 = vadd.f32 %v3573_v50, %v3484_v46  ;;  %v5453_v46 = vld [vmem:[%s10171_s3 + $0x138] sm:$0xf0] }
 0x59c   :  { %v9332_v22 = vpop.f32.mrf.mxu1  ;;  %v5456_v1 = vor.u32 %v5871_v63, %v5453_v46  ;;  %v5437_v46 = vld [vmem:[%s10171_s3 + $0x118] sm:$0xf0]  ;;  %v9366_v58 = vpop.f32.mrf.mxu0 }
 0x59d   :  { %10753 = vst [vmem:[#allocation69_spill] sm:$0xff] %v9366_v58 }
 0x59e   :  { %3755 = vmatmul.bf16.gmra.mxu2 %v10751_v55 }
 0x59f   :  { %4042 = vmatpush.bf16.msrb.mxu2 %v5456_v1  ;;  %v5440_v1 = vor.u32 %v5867_v53, %v5437_v46 }
 0x5a1   :  { %v3716_v50 = vpop.f32.mrf.mxu2 }
 0x5a2   :  { %v9351_v10 = vadd.f32 %v3716_v50, %v3628_v5  ;;  %v3575_v16 = vpop.f32.mrf.mxu3  ;;  %v5865_v5 = vld [vmem:[%s10171_s3 + $0x104] sm:$0xf]  ;;  %v5429_v50 = vld [vmem:[%s10171_s3 + $0x108] sm:$0xf0] }
 0x5a3   :  { %v9354_v21 = vadd.f32 %v3575_v16, %v9268_v36  ;;  %4043 = vmatpush.bf16.msrb.mxu2 %v5448_v38  ;;  %v10754_v36 = vld [vmem:[#allocation87_spill] sm:$0xff]  ;;  %v5432_v53 = vor.u32 %v5865_v5, %v5429_v50  ;;  %v10758_v50 = vld [vmem:[#allocation36_spill] sm:$0xff] }
 0x5a4   :  { %v9356_v63 = vpop.f32.mrf.mxu1  ;;  %v3630_v16 = vadd.f32 %v10754_v36, %v9095_v26  ;;  %v9385_v54 = vpop.f32.mrf.mxu0 }
 0x5a5   :  { %10756 = vst [vmem:[#allocation81_spill] sm:$0xff] %v9385_v54  ;;  %v5517_v54 = vld [vmem:[%s10171_s3 + $0x1b8] sm:$0xf0] }
 0x5a7   :  { %3814 = vmatmul.bf16.gmra.mxu1 %v8688_v45  ;;  %3893 = vmatmul.bf16.gmra.mxu3 %v8107_v8 }
 0x5a8   :  { %4044 = vmatpush.bf16.msrb.mxu2 %v5440_v1  ;;  %v10755_v1 = vld [vmem:[#allocation70_spill] sm:$0xff] }
 0x5a9   :  { %v3718_v38 = vpop.f32.mrf.mxu2  ;;  %v3633_v36 = vadd.f32 %v10755_v1, %v9122_v29  ;;  %v5903_v29 = vld [vmem:[%s10171_s3 + $0x234] sm:$0xf] }
 0x5aa   :  { %v9376_v62 = vadd.f32 %v3718_v38, %v3630_v16  ;;  %v3578_v23 = vpop.f32.mrf.mxu3  ;;  %4017 = vmatmul.bf16.gmra.mxu0 %v8664_v41 }
 0x5ab   :  { %v9380_v46 = vadd.f32 %v3578_v23, %v9279_v18  ;;  %v10759_v23 = vld [vmem:[#allocation82_spill] sm:$0xff] }
 0x5ac   :  { %v3501_v26 = vpop.f32.mrf.mxu1  ;;  %4045 = vmatpush.bf16.msrb.mxu2 %v5432_v53 }
 0x5ae   :  { %3760 = vmatmul.bf16.gmra.mxu2 %v9032_v39 }
 0x5b1   :  { %v3721_v58 = vpop.f32.mrf.mxu2 }
 0x5b2   :  { %v9387_v51 = vadd.f32 %v3721_v58, %v3633_v36  ;;  %v3580_v16 = vpop.f32.mrf.mxu3  ;;  %v5581_v58 = vld [vmem:[%s10171_s3 + $0x238] sm:$0xf0] }
 0x5b3   :  { %v9390_v38 = vadd.f32 %v3580_v16, %v9292_v40  ;;  %v3635_v40 = vadd.f32 %v10759_v23, %v9140_v31  ;;  %v5584_v53 = vor.u32 %v5903_v29, %v5581_v58  ;;  %v9417_v31 = vpop.f32.mrf.mxu0 }
 0x5b4   :  { %v3780_v5 = vpop.f32.mrf.mxu1  ;;  %10761 = vst [vmem:[#allocation111_spill] sm:$0xff] %v9417_v31 }
 0x5b5   :  { %v9393_v18 = vadd.f32 %v3780_v5, %v9169_v20  ;;  %4220 = vmatpush.bf16.msrb.mxu3 %v5584_v53  ;;  %v5887_v5 = vld [vmem:[%s10171_s3 + $0x1b4] sm:$0xf] }
 0x5b6   :  { %v5520_v58 = vor.u32 %v5887_v5, %v5517_v54  ;;  %v10765_v5 = vld [vmem:[#allocation85_spill] sm:$0xff] }
 0x5b7   :  { %10757 = vst [vmem:[#allocation93_spill] sm:$0xff] %v9393_v18  ;;  %3819 = vmatmul.bf16.gmra.mxu1 %v8769_v56  ;;  %3898 = vmatmul.bf16.gmra.mxu3 %v10758_v50 }
 0x5b8   :  { %4131 = vmatpush.bf16.msrb.mxu1 %v5520_v58 }
 0x5b9   :  { %v3723_v1 = vpop.f32.mrf.mxu2 }
 0x5ba   :  { %v9405_v36 = vadd.f32 %v3723_v1, %v3635_v40  ;;  %v3583_v20 = vpop.f32.mrf.mxu3  ;;  %4022 = vmatmul.bf16.gmra.mxu0 %v8688_v45  ;;  %v10762_v40 = vld [vmem:[#allocation98_spill] sm:$0xff] }
 0x5bb   :  { %v9409_v16 = vadd.f32 %v3583_v20, %v9309_v32  ;;  %v10763_v32 = vld [vmem:[#allocation74_spill] sm:$0xff]  ;;  %v9433_v54 = vpop.f32.mrf.mxu0 }
 0x5bc   :  { %v3782_v29 = vpop.f32.mrf.mxu1  ;;  %v3638_v53 = vadd.f32 %v10763_v32, %v9157_v12  ;;  %v3640_v12 = vadd.f32 %v10765_v5, %v9172_v59 }
 0x5bd   :  { %10760 = vst [vmem:[#allocation107_spill] sm:$0xff] %v9409_v16  ;;  %v9420_v23 = vadd.f32 %v3782_v29, %v9196_v14  ;;  %v10764_v14 = vld [vmem:[#allocation37_spill] sm:$0xff] }
 0x5be   :  { %3765 = vmatmul.bf16.gmra.mxu2 %v10762_v40 }
 0x5c1   :  { %v3726_v1 = vpop.f32.mrf.mxu2 }
 0x5c2   :  { %v9425_v20 = vadd.f32 %v3726_v1, %v3638_v53  ;;  %v3585_v45 = vpop.f32.mrf.mxu3  ;;  %v10767_v53 = vld [vmem:[#allocation9_spill] sm:$0xff] }
 0x5c3   :  { %v9428_v41 = vadd.f32 %v3585_v45, %v9332_v22  ;;  %v3643_v59 = vadd.f32 %v10767_v53, %v9200_v37  ;;  %v5573_v37 = vld [vmem:[%s10171_s3 + $0x228] sm:$0xf0] }
 0x5c4   :  { %v3785_v16 = vpop.f32.mrf.mxu1 }
 0x5c5   :  { %v9431_v31 = vadd.f32 %v3785_v16, %v9211_v49  ;;  %v9449_v16 = vpop.f32.mrf.mxu0 }
 0x5c7   :  { %3824 = vmatmul.bf16.gmra.mxu1 %v8788_v47  ;;  %3903 = vmatmul.bf16.gmra.mxu3 %v10764_v14 }
 0x5c9   :  { %v3728_v29 = vpop.f32.mrf.mxu2 }
 0x5ca   :  { %v9439_v58 = vadd.f32 %v3728_v29, %v3640_v12  ;;  %v3588_v32 = vpop.f32.mrf.mxu3  ;;  %4027 = vmatmul.bf16.gmra.mxu0 %v8769_v56 }
 0x5cb   :  { %v9443_v45 = vadd.f32 %v3588_v32, %v9356_v63 }
 0x5cc   :  { %v3787_v49 = vpop.f32.mrf.mxu1 }
 0x5cd   :  { %v9446_v22 = vadd.f32 %v3787_v49, %v9222_v6  ;;  %v9472_v49 = vpop.f32.mrf.mxu0 }
 0x5ce   :  { %4046 = vmatmul.bf16.vlgmr.msrb.gmra.mxu2 %v8073_v48  ;;  %v5901_v48 = vld [vmem:[%s10171_s3 + $0x224] sm:$0xf] }
 0x5cf   :  { %10766 = vst [vmem:[#allocation114_spill] sm:$0xff] %v9446_v22 }
 0x5d1   :  { %v3731_v1 = vpop.f32.mrf.mxu2 }
 0x5d2   :  { %v9453_v5 = vadd.f32 %v3731_v1, %v3643_v59  ;;  %v3590_v12 = vpop.f32.mrf.mxu3  ;;  %v5885_v1 = vld [vmem:[%s10171_s3 + $0x1a4] sm:$0xf] }
 0x5d3   :  { %v9455_v29 = vadd.f32 %v3590_v12, %v3501_v26  ;;  %v10769_v26 = vld [vmem:[#allocation91_spill] sm:$0xff] }
 0x5d4   :  { %v3790_v56 = vpop.f32.mrf.mxu1  ;;  %v3645_v32 = vadd.f32 %v10769_v26, %v9214_v9  ;;  %v5509_v12 = vld [vmem:[%s10171_s3 + $0x1a8] sm:$0xf0] }
 0x5d5   :  { %v9458_v63 = vadd.f32 %v3790_v56, %v9233_v42  ;;  %v5576_v56 = vor.u32 %v5901_v48, %v5573_v37  ;;  %v5512_v48 = vor.u32 %v5885_v1, %v5509_v12 }
 0x5d7   :  { %10768 = vst [vmem:[#allocation96_spill] sm:$0xff] %v9458_v63  ;;  %3829 = vmatmul.bf16.gmra.mxu1 %v10746_v0  ;;  %3908 = vmatmul.bf16.gmra.mxu3 %v8325_v24 }
 0x5d8   :  { %4221 = vmatpush.bf16.msrb.mxu3 %v5576_v56  ;;  %4132 = vmatpush.bf16.msrb.mxu1 %v5512_v48 }
 0x5d9   :  { %v3733_v42 = vpop.f32.mrf.mxu2 }
 0x5da   :  { %v9474_v53 = vadd.f32 %v3733_v42, %v3645_v32  ;;  %v9476_v59 = vpop.f32.mrf.mxu3  ;;  %4032 = vmatmul.bf16.gmra.mxu0 %v8788_v47  ;;  %v10770_v32 = vld [vmem:[#allocation12_spill] sm:$0xff] }
 0x5db   :  { %v3648_v56 = vadd.f32 %v10770_v32, %v9226_v52 }
 0x5dc   :  { %v3792_v9 = vpop.f32.mrf.mxu1 }
 0x5dd   :  { %v9486_v37 = vadd.f32 %v3792_v9, %v9256_v17 }
 0x5de   :  { %4051 = vmatmul.bf16.gmra.mxu2 %v8107_v8  ;;  %v10771_v8 = vld [vmem:[#allocation94_spill] sm:$0xff] }
 0x5df   :  { %v3650_v12 = vadd.f32 %v10771_v8, %v9236_v19 }
 0x5e1   :  { %v3736_v42 = vpop.f32.mrf.mxu2 }
 0x5e2   :  { %v9493_v6 = vadd.f32 %v3736_v42, %v3648_v56  ;;  %v9495_v63 = vpop.f32.mrf.mxu3 }
 0x5e4   :  { %v3795_v18 = vpop.f32.mrf.mxu1 }
 0x5e5   :  { %v9498_v1 = vadd.f32 %v3795_v18, %v9275_v35  ;;  %v10773_v18 = vld [vmem:[#allocation103_spill] sm:$0xff]  ;;  %v5501_v35 = vld [vmem:[%s10171_s3 + $0x198] sm:$0xf0] }
 0x5e6   :  { %v3653_v42 = vadd.f32 %v10773_v18, %v9260_v11  ;;  %v5565_v11 = vld [vmem:[%s10171_s3 + $0x218] sm:$0xf0] }
 0x5e7   :  { %3834 = vmatmul.bf16.gmra.mxu1 %v10751_v55  ;;  %3913 = vmatmul.bf16.gmra.mxu3 %v10688_v15 }
 0x5e9   :  { %v3738_v52 = vpop.f32.mrf.mxu2 }
 0x5ea   :  { %v9506_v9 = vadd.f32 %v3738_v52, %v3650_v12  ;;  %v9508_v48 = vpop.f32.mrf.mxu3 }
 0x5ec   :  { %v3797_v32 = vpop.f32.mrf.mxu1 }
 0x5ed   :  { %v9511_v56 = vadd.f32 %v3797_v32, %v9287_v44  ;;  %v5899_v44 = vld [vmem:[%s10171_s3 + $0x214] sm:$0xf] }
 0x5ee   :  { %4056 = vmatmul.bf16.gmra.mxu2 %v10758_v50  ;;  %v5568_v32 = vor.u32 %v5899_v44, %v5565_v11 }
 0x5ef   :  { %10772 = vst [vmem:[#allocation110_spill] sm:$0xff] %v9511_v56 }
 0x5f0   :  { %4222 = vmatpush.bf16.msrb.mxu3 %v5568_v32 }
 0x5f1   :  { %v3741_v17 = vpop.f32.mrf.mxu2 }
 0x5f2   :  { %v9518_v26 = vadd.f32 %v3741_v17, %v3653_v42  ;;  %v9520_v19 = vpop.f32.mrf.mxu3  ;;  %v10774_v17 = vld [vmem:[#allocation59_spill] sm:$0xff] }
 0x5f3   :  { %v3655_v52 = vadd.f32 %v10774_v17, %v9277_v43  ;;  %v10775_v43 = vld [vmem:[#allocation73_spill] sm:$0xff] }
 0x5f4   :  { %v3800_v8 = vpop.f32.mrf.mxu1  ;;  %v3658_v44 = vadd.f32 %v10775_v43, %v9290_v61 }
 0x5f5   :  { %v9523_v12 = vadd.f32 %v3800_v8, %v9297_v34  ;;  %v5883_v8 = vld [vmem:[%s10171_s3 + $0x194] sm:$0xf] }
 0x5f6   :  { %v5504_v56 = vor.u32 %v5883_v8, %v5501_v35 }
 0x5f7   :  { %3839 = vmatmul.bf16.gmra.mxu1 %v9032_v39  ;;  %3918 = vmatmul.bf16.gmra.mxu3 %v10696_v57 }
 0x5f8   :  { %4133 = vmatpush.bf16.msrb.mxu1 %v5504_v56 }
 0x5f9   :  { %v3743_v18 = vpop.f32.mrf.mxu2 }
 0x5fa   :  { %v9535_v42 = vadd.f32 %v3743_v18, %v3655_v52  ;;  %v9537_v34 = vpop.f32.mrf.mxu3 }
 0x5fc   :  { %v3802_v39 = vpop.f32.mrf.mxu1 }
 0x5fd   :  { %v9546_v22 = vadd.f32 %v3802_v39, %v9321_v30  ;;  %v10777_v39 = vld [vmem:[#allocation62_spill] sm:$0xff] }
 0x5fe   :  { %4061 = vmatmul.bf16.gmra.mxu2 %v10764_v14  ;;  %v3660_v30 = vadd.f32 %v10777_v39, %v9299_v60  ;;  %v5881_v60 = vld [vmem:[%s10171_s3 + $0x184] sm:$0xf]  ;;  %v5493_v39 = vld [vmem:[%s10171_s3 + $0x188] sm:$0xf0] }
 0x601   :  { %v3746_v11 = vpop.f32.mrf.mxu2 }
 0x602   :  { %v9551_v17 = vadd.f32 %v3746_v11, %v3658_v44  ;;  %v9553_v52 = vpop.f32.mrf.mxu3 }
 0x604   :  { %v3805_v32 = vpop.f32.mrf.mxu1 }
 0x605   :  { %v9556_v18 = vadd.f32 %v3805_v32, %v9351_v10  ;;  %v3663_v10 = vadd.f32 %v9144_v4, %v9324_v25  ;;  %v5897_v25 = vld [vmem:[%s10171_s3 + $0x204] sm:$0xf] }
 0x607   :  { %10776 = vst [vmem:[#allocation102_spill] sm:$0xff] %v9556_v18  ;;  %3844 = vmatmul.bf16.gmra.mxu1 %v10762_v40  ;;  %3923 = vmatmul.bf16.gmra.mxu3 %v8471_v28 }
 0x609   :  { %v3748_v56 = vpop.f32.mrf.mxu2 }
 0x60a   :  { %v9562_v35 = vadd.f32 %v3748_v56, %v3660_v30  ;;  %v9564_v61 = vpop.f32.mrf.mxu3 }
 0x60c   :  { %v3807_v8 = vpop.f32.mrf.mxu1 }
 0x60d   :  { %v9567_v43 = vadd.f32 %v3807_v8, %v9376_v62  ;;  %v5496_v62 = vor.u32 %v5881_v60, %v5493_v39  ;;  %v5557_v8 = vld [vmem:[%s10171_s3 + $0x208] sm:$0xf0] }
 0x60e   :  { %4066 = vmatmul.bf16.gmra.mxu2 %v8325_v24 }
 0x60f   :  { %10778 = vst [vmem:[#allocation113_spill] sm:$0xff] %v9567_v43  ;;  %4134 = vmatpush.bf16.msrb.mxu1 %v5496_v62 }
 0x611   :  { %v3751_v44 = vpop.f32.mrf.mxu2 }
 0x612   :  { %v9572_v11 = vadd.f32 %v3751_v44, %v3663_v10  ;;  %v9574_v32 = vpop.f32.mrf.mxu3  ;;  %v5560_v10 = vor.u32 %v5897_v25, %v5557_v8 }
 0x614   :  { %v3810_v30 = vpop.f32.mrf.mxu1  ;;  %4223 = vmatpush.bf16.msrb.mxu3 %v5560_v10  ;;  %v10781_v10 = vld [vmem:[#allocation109_spill] sm:$0xff] }
 0x615   :  { %v9583_v56 = vadd.f32 %v3810_v30, %v9387_v51  ;;  %v3665_v51 = vadd.f32 %v9165_v33, %v9354_v21 }
 0x617   :  { %10779 = vst [vmem:[#allocation100_spill] sm:$0xff] %v9583_v56  ;;  %3849 = vmatmul.bf16.gmra.mxu1 %v9151_v7  ;;  %3928 = vmatmul.bf16.gmra.mxu3 %v8551_v27  ;;  %v3668_v56 = vadd.f32 %v9194_v3, %v9380_v46 }
 0x619   :  { %v3753_v44 = vpop.f32.mrf.mxu2 }
 0x61a   :  { %v9597_v60 = vadd.f32 %v3753_v44, %v3665_v51  ;;  %v9599_v39 = vpop.f32.mrf.mxu3  ;;  %v3670_v44 = vadd.f32 %v10781_v10, %v9390_v38 }
 0x61c   :  { %v3812_v62 = vpop.f32.mrf.mxu1 }
 0x61d   :  { %v9602_v30 = vadd.f32 %v3812_v62, %v9405_v36  ;;  %v10784_v36 = vld [vmem:[#allocation66_spill] sm:$0xff] }
 0x61e   :  { %4071 = vmatmul.bf16.gmra.mxu2 %v10688_v15 }
 0x621   :  { %v3756_v33 = vpop.f32.mrf.mxu2 }
 0x622   :  { %v9609_v21 = vadd.f32 %v3756_v33, %v3668_v56  ;;  %v9611_v25 = vpop.f32.mrf.mxu3 }
 0x624   :  { %v3815_v8 = vpop.f32.mrf.mxu1 }
 0x625   :  { %v9614_v51 = vadd.f32 %v3815_v8, %v9425_v20  ;;  %v10783_v8 = vld [vmem:[#allocation107_spill] sm:$0xff] }
 0x626   :  { %v3673_v4 = vadd.f32 %v10784_v36, %v10783_v8 }
 0x627   :  { %10780 = vst [vmem:[#allocation112_spill] sm:$0xff] %v9614_v51  ;;  %3854 = vmatmul.bf16.gmra.mxu1 %v9192_v13  ;;  %3933 = vmatmul.bf16.gmra.mxu3 %v8566_v2 }
 0x629   :  { %v3758_v3 = vpop.f32.mrf.mxu2 }
 0x62a   :  { %v9622_v46 = vadd.f32 %v3758_v3, %v3670_v44  ;;  %v9624_v56 = vpop.f32.mrf.mxu3  ;;  %v10786_v3 = vld [vmem:[#allocation75_spill] sm:$0xff] }
 0x62c   :  { %v3817_v62 = vpop.f32.mrf.mxu1 }
 0x62d   :  { %v9627_v33 = vadd.f32 %v3817_v62, %v9439_v58  ;;  %v10787_v58 = vld [vmem:[#allocation79_spill] sm:$0xff] }
 0x62e   :  { %4076 = vmatmul.bf16.gmra.mxu2 %v10696_v57  ;;  %v3675_v62 = vadd.f32 %v10787_v58, %v9428_v41  ;;  %v10791_v58 = vld [vmem:[#allocation4_spill] sm:$0xff] }
 0x62f   :  { %10782 = vst [vmem:[#allocation119_spill] sm:$0xff] %v9627_v33 }
 0x631   :  { %v3761_v51 = vpop.f32.mrf.mxu2 }
 0x632   :  { %v9634_v18 = vadd.f32 %v3761_v51, %v3673_v4  ;;  %v9636_v38 = vpop.f32.mrf.mxu3 }
 0x633   :  { %10785 = vst [vmem:[#allocation84_spill] sm:$0xff] %v9636_v38 }
 0x634   :  { %v3820_v10 = vpop.f32.mrf.mxu1 }
 0x635   :  { %v9639_v44 = vadd.f32 %v3820_v10, %v9453_v5  ;;  %v10789_v5 = vld [vmem:[#allocation89_spill] sm:$0xff] }
 0x636   :  { %v3678_v8 = vadd.f32 %v10789_v5, %v9443_v45 }
 0x637   :  { %3938 = vmatmul.bf16.gmra.mxu3 %v10786_v3  ;;  %4135 = vmatmul.bf16.vlgmr.msrb.gmra.mxu1 %v10758_v50 }
 0x639   :  { %v3763_v20 = vpop.f32.mrf.mxu2 }
 0x63a   :  { %v9645_v33 = vadd.f32 %v3763_v20, %v3675_v62  ;;  %v9647_v36 = vpop.f32.mrf.mxu3 }
 0x63c   :  { %v3822_v4 = vpop.f32.mrf.mxu1 }
 0x63d   :  { %v9650_v51 = vadd.f32 %v3822_v4, %v9474_v53  ;;  %v10792_v53 = vld [vmem:[#allocation104_spill] sm:$0xff] }
 0x63e   :  { %4081 = vmatmul.bf16.gmra.mxu2 %v8471_v28  ;;  %v3680_v62 = vadd.f32 %v10792_v53, %v9455_v29 }
 0x63f   :  { %10788 = vst [vmem:[#allocation92_spill] sm:$0xff] %v9650_v51  ;;  %v9882_v51 = vld [vmem:[%s10174_s4] ss:$0 sm:$0xff] }
 0x641   :  { %v3766_v10 = vpop.f32.mrf.mxu2 }
 0x642   :  { %v9655_v43 = vadd.f32 %v3766_v10, %v3678_v8  ;;  %v9657_v50 = vpop.f32.mrf.mxu3 }
 0x644   :  { %v3825_v41 = vpop.f32.mrf.mxu1 }
 0x645   :  { %v9660_v20 = vadd.f32 %v3825_v41, %v9493_v6  ;;  %v10794_v6 = vld [vmem:[#allocation97_spill] sm:$0xff] }
 0x646   :  { %v3959_v10 = vadd.f32 %v10794_v6, %v9476_v59 }
 0x647   :  { %10790 = vst [vmem:[#allocation8_spill] sm:$0xff] %v9660_v20  ;;  %3943 = vmatmul.bf16.gmra.mxu3 %v10791_v58  ;;  %4140 = vmatmul.bf16.gmra.mxu1 %v10764_v14 }
 0x649   :  { %v3768_v4 = vpop.f32.mrf.mxu2 }
 0x64a   :  { %v9666_v38 = vadd.f32 %v3768_v4, %v3680_v62  ;;  %v9668_v45 = vpop.f32.mrf.mxu3 }
 0x64c   :  { %v3827_v5 = vpop.f32.mrf.mxu1 }
 0x64d   :  { %v9671_v8 = vadd.f32 %v3827_v5, %v9506_v9  ;;  %v10796_v9 = vld [vmem:[#allocation108_spill] sm:$0xff] }
 0x64e   :  { %4086 = vmatmul.bf16.gmra.mxu2 %v8551_v27  ;;  %v3961_v4 = vadd.f32 %v10796_v9, %v9495_v63 }
 0x64f   :  { %10793 = vst [vmem:[#allocation14_spill] sm:$0xff] %v9671_v8 }
 0x651   :  { %v4047_v41 = vpop.f32.mrf.mxu2 }
 0x652   :  { %v9676_v13 = vadd.f32 %v4047_v41, %v3959_v10  ;;  %v9678_v14 = vpop.f32.mrf.mxu3 }
 0x654   :  { %v3830_v29 = vpop.f32.mrf.mxu1 }
 0x655   :  { %v9681_v53 = vadd.f32 %v3830_v29, %v9518_v26  ;;  %v10798_v29 = vld [vmem:[#allocation69_spill] sm:$0xff] }
 0x657   :  { %10795 = vst [vmem:[#allocation86_spill] sm:$0xff] %v9681_v53  ;;  %4145 = vmatmul.bf16.gmra.mxu1 %v8325_v24  ;;  %4224 = vmatmul.bf16.vlgmr.msrb.gmra.mxu3 %v8325_v24  ;;  %v3964_v24 = vadd.f32 %v10798_v29, %v9508_v48 }
 0x659   :  { %v4049_v59 = vpop.f32.mrf.mxu2 }
 0x65a   :  { %v9689_v5 = vadd.f32 %v4049_v59, %v3961_v4  ;;  %v9691_v6 = vpop.f32.mrf.mxu3  ;;  %v10800_v59 = vld [vmem:[#allocation81_spill] sm:$0xff] }
 0x65c   :  { %v3832_v10 = vpop.f32.mrf.mxu1 }
 0x65d   :  { %v9694_v41 = vadd.f32 %v3832_v10, %v9535_v42  ;;  %v3966_v10 = vadd.f32 %v10800_v59, %v9520_v19  ;;  %v5920_v59 = vld [vmem:[%s10173_s5 + $0x38] sm:$0xff] }
 0x65e   :  { %4091 = vmatmul.bf16.gmra.mxu2 %v8566_v2 }
 0x65f   :  { %10797 = vst [vmem:[#allocation95_spill] sm:$0xff] %v9694_v41  ;;  %4713 = vmatpush.bf16.msra.mxu2 %v5920_v59 }
 0x661   :  { %v4052_v62 = vpop.f32.mrf.mxu2 }
 0x662   :  { %v9701_v53 = vadd.f32 %v4052_v62, %v3964_v24  ;;  %v9703_v63 = vpop.f32.mrf.mxu3 }
 0x664   :  { %v3835_v9 = vpop.f32.mrf.mxu1 }
 0x665   :  { %v9706_v4 = vadd.f32 %v3835_v9, %v9551_v17  ;;  %v10802_v9 = vld [vmem:[#allocation111_spill] sm:$0xff] }
 0x667   :  { %10799 = vst [vmem:[#allocation10_spill] sm:$0xff] %v9706_v4  ;;  %4150 = vmatmul.bf16.gmra.mxu1 %v10688_v15  ;;  %4229 = vmatmul.bf16.gmra.mxu3 %v10688_v15  ;;  %v3969_v15 = vadd.f32 %v10802_v9, %v9537_v34  ;;  %v3971_v34 = vadd.f32 %v9433_v54, %v9553_v52 }
 0x669   :  { %v4054_v48 = vpop.f32.mrf.mxu2 }
 0x66a   :  { %v9714_v29 = vadd.f32 %v4054_v48, %v3966_v10  ;;  %v9716_v62 = vpop.f32.mrf.mxu3 }
 0x66c   :  { %v3837_v24 = vpop.f32.mrf.mxu1 }
 0x66d   :  { %v9719_v26 = vadd.f32 %v3837_v24, %v9562_v35 }
 0x66e   :  { %4096 = vmatmul.bf16.gmra.mxu2 %v10786_v3 }
 0x66f   :  { %10801 = vst [vmem:[#allocation15_spill] sm:$0xff] %v9719_v26 }
 0x671   :  { %v4057_v42 = vpop.f32.mrf.mxu2 }
 0x672   :  { %v9726_v4 = vadd.f32 %v4057_v42, %v3969_v15  ;;  %v9728_v19 = vpop.f32.mrf.mxu3 }
 0x673   :  { %10803 = vst [vmem:[#allocation88_spill] sm:$0xff] %v9728_v19 }
 0x674   :  { %v3840_v10 = vpop.f32.mrf.mxu1 }
 0x675   :  { %v9734_v35 = vadd.f32 %v3840_v10, %v9572_v11  ;;  %v3974_v11 = vadd.f32 %v9449_v16, %v9564_v61 }
 0x677   :  { %10804 = vst [vmem:[#allocation99_spill] sm:$0xff] %v9734_v35  ;;  %4155 = vmatmul.bf16.gmra.mxu1 %v10696_v57  ;;  %4234 = vmatmul.bf16.gmra.mxu3 %v10696_v57 }
 0x679   :  { %v4059_v42 = vpop.f32.mrf.mxu2 }
 0x67a   :  { %v9740_v48 = vadd.f32 %v4059_v42, %v3971_v34  ;;  %v9742_v24 = vpop.f32.mrf.mxu3 }
 0x67c   :  { %v3842_v9 = vpop.f32.mrf.mxu1 }
 0x67d   :  { %v9745_v15 = vadd.f32 %v3842_v9, %v9597_v60  ;;  %v3976_v60 = vadd.f32 %v9472_v49, %v9574_v32 }
 0x67e   :  { %4101 = vmatmul.bf16.gmra.mxu2 %v10791_v58 }
 0x67f   :  { %10805 = vst [vmem:[#allocation116_spill] sm:$0xff] %v9745_v15  ;;  %v5914_v15 = vld [vmem:[%s10173_s5 + $0x8] sm:$0xff] }
 0x681   :  { %v4062_v59 = vpop.f32.mrf.mxu2 }
 0x682   :  { %v9750_v10 = vadd.f32 %v4062_v59, %v3974_v11  ;;  %v9752_v57 = vpop.f32.mrf.mxu3  ;;  %v10808_v11 = vld [vmem:[#allocation2_spill] sm:$0xff] }
 0x684   :  { %v3845_v54 = vpop.f32.mrf.mxu1 }
 0x685   :  { %v9755_v52 = vadd.f32 %v3845_v54, %v9609_v21 }
 0x687   :  { %10806 = vst [vmem:[#allocation123_spill] sm:$0xff] %v9755_v52  ;;  %4160 = vmatmul.bf16.gmra.mxu1 %v8471_v28  ;;  %4239 = vmatmul.bf16.gmra.mxu3 %v8471_v28  ;;  %v5919_v28 = vld [vmem:[%s10173_s5 + $0x30] sm:$0xff] }
 0x688   :  { %4714 = vmatpush.bf16.msra.mxu2 %v5919_v28 }
 0x689   :  { %v4064_v34 = vpop.f32.mrf.mxu2 }
 0x68a   :  { %v9761_v42 = vadd.f32 %v4064_v34, %v3976_v60  ;;  %v9763_v16 = vpop.f32.mrf.mxu3 }
 0x68c   :  { %v3847_v61 = vpop.f32.mrf.mxu1 }
 0x68d   :  { %v9766_v9 = vadd.f32 %v3847_v61, %v9622_v46 }
 0x68e   :  { %4106 = vmatmul.bf16.gmra.mxu2 %v10808_v11 }
 0x68f   :  { %10807 = vst [vmem:[#allocation11_spill] sm:$0xff] %v9766_v9 }
 0x692   :  { %v9769_v21 = vpop.f32.mrf.mxu3 }
 0x693   :  { %10809 = vst [vmem:[#allocation16_spill] sm:$0xff] %v9769_v21  ;;  %v10823_v21 = vld [vmem:[#allocation96_spill] sm:$0xff] }
 0x694   :  { %v3850_v59 = vpop.f32.mrf.mxu1 }
 0x695   :  { %v9775_v49 = vadd.f32 %v3850_v59, %v9634_v18 }
 0x697   :  { %10810 = vst [vmem:[#allocation118_spill] sm:$0xff] %v9775_v49  ;;  %4165 = vmatmul.bf16.gmra.mxu1 %v8551_v27  ;;  %4244 = vmatmul.bf16.gmra.mxu3 %v8551_v27 }
 0x69a   :  { %v9781_v46 = vpop.f32.mrf.mxu3 }
 0x69b   :  { %10811 = vst [vmem:[#allocation35_spill] sm:$0xff] %v9781_v46 }
 0x69c   :  { %v3852_v54 = vpop.f32.mrf.mxu1 }
 0x69d   :  { %v9784_v60 = vadd.f32 %v3852_v54, %v9645_v33 }
 0x69e   :  { %4111 = vmatmul.bf16.gmra.mxu2 %v8788_v47 }
 0x69f   :  { %10812 = vst [vmem:[#allocation90_spill] sm:$0xff] %v9784_v60  ;;  %v9842_v60 = vpop.f32.mrf.mxu0 }
 0x6a2   :  { %v9789_v34 = vpop.f32.mrf.mxu3 }
 0x6a3   :  { %10813 = vst [vmem:[#allocation101_spill] sm:$0xff] %v9789_v34 }
 0x6a4   :  { %v3855_v61 = vpop.f32.mrf.mxu1 }
 0x6a5   :  { %v9792_v28 = vadd.f32 %v3855_v61, %v9655_v43  ;;  %v5918_v61 = vld [vmem:[%s10173_s5 + $0x28] sm:$0xff] }
 0x6a6   :  { %4715 = vmatpush.bf16.msra.mxu2 %v5918_v61 }
 0x6a7   :  { %10814 = vst [vmem:[#allocation120_spill] sm:$0xff] %v9792_v28  ;;  %4170 = vmatmul.bf16.gmra.mxu1 %v8566_v2  ;;  %4249 = vmatmul.bf16.gmra.mxu3 %v8566_v2  ;;  %v5936_v2 = vld [vmem:[%s10173_s5 + $0xb8] sm:$0xff] }
 0x6a8   :  { %4751 = vmatpush.bf16.msra.mxu0 %v5936_v2  ;;  %v5917_v2 = vld [vmem:[%s10173_s5 + $0x20] sm:$0xff] }
 0x6aa   :  { %v9798_v33 = vpop.f32.mrf.mxu3  ;;  %4716 = vmatpush.bf16.msra.mxu2 %v5917_v2  ;;  %v9844_v2 = vpop.f32.mrf.mxu2 }
 0x6ab   :  { %10815 = vst [vmem:[#allocation125_spill] sm:$0xff] %v9798_v33  ;;  %v9854_v33 = vpop.f32.mrf.mxu0 }
 0x6ac   :  { %v3857_v59 = vpop.f32.mrf.mxu1 }
 0x6ad   :  { %v9801_v54 = vadd.f32 %v3857_v59, %v9666_v38 }
 0x6ae   :  { %4116 = vmatmul.bf16.gmra.mxu2 %v10746_v0 }
 0x6af   :  { %10816 = vst [vmem:[#allocation13_spill] sm:$0xff] %v9801_v54 }
 0x6b2   :  { %v9806_v43 = vpop.f32.mrf.mxu3  ;;  %v9859_v49 = vpop.f32.mrf.mxu2 }
 0x6b3   :  { %10817 = vst [vmem:[#allocation17_spill] sm:$0xff] %v9806_v43 }
 0x6b4   :  { %v4136_v27 = vpop.f32.mrf.mxu1 }
 0x6b7   :  { %4175 = vmatmul.bf16.gmra.mxu1 %v10786_v3  ;;  %4254 = vmatmul.bf16.gmra.mxu3 %v10786_v3 }
 0x6ba   :  { %v9816_v38 = vpop.f32.mrf.mxu3 }
 0x6bb   :  { %10818 = vst [vmem:[#allocation121_spill] sm:$0xff] %v9816_v38  ;;  %v9872_v38 = vpop.f32.mrf.mxu2 }
 0x6bc   :  { %v4138_v59 = vpop.f32.mrf.mxu1 }
 0x6be   :  { %4121 = vmatmul.bf16.gmra.mxu2 %v10751_v55 }
 0x6c2   :  { %v9819_v18 = vpop.f32.mrf.mxu3 }
 0x6c3   :  { %10819 = vst [vmem:[#allocation124_spill] sm:$0xff] %v9819_v18  ;;  %v4137_v18 = vadd.f32 %v4136_v27, %v9676_v13  ;;  %v4139_v13 = vadd.f32 %v4138_v59, %v9689_v5 }
 0x6c4   :  { %v9821_v32 = vpop.f32.mrf.mxu1 }
 0x6c5   :  { %v4142_v5 = vadd.f32 %v9821_v32, %v9701_v53  ;;  %v10826_v53 = vmax.f32 %v9431_v31, %v9498_v1  ;;  %v10827_v1 = vld [vmem:[#allocation114_spill] sm:$0xff] }
 0x6c7   :  { %4180 = vmatmul.bf16.gmra.mxu1 %v10791_v58  ;;  %4259 = vmatmul.bf16.gmra.mxu3 %v10791_v58  ;;  %v5935_v58 = vld [vmem:[%s10173_s5 + $0xb0] sm:$0xff] }
 0x6c8   :  { %4752 = vmatpush.bf16.msra.mxu0 %v5935_v58 }
 0x6ca   :  { %v9825_v61 = vpop.f32.mrf.mxu3 }
 0x6cb   :  { %10820 = vst [vmem:[#allocation115_spill] sm:$0xff] %v9825_v61 }
 0x6cc   :  { %v9827_v3 = vpop.f32.mrf.mxu1 }
 0x6cd   :  { %v4144_v32 = vadd.f32 %v9827_v3, %v9714_v29 }
 0x6d2   :  { %v9829_v17 = vpop.f32.mrf.mxu3 }
 0x6d3   :  { %10821 = vst [vmem:[#allocation19_spill] sm:$0xff] %v9829_v17  ;;  %v5916_v17 = vld [vmem:[%s10173_s5 + $0x18] sm:$0xff] }
 0x6d4   :  { %v4146_v54 = vpop.f32.mrf.mxu1  ;;  %4717 = vmatpush.bf16.msra.mxu2 %v5916_v17  ;;  %v5913_v17 = vld [vmem:[%s10173_s5] sm:$0xff] }
 0x6d5   :  { %v4147_v34 = vadd.f32 %v4146_v54, %v9726_v4 }
 0x6d7   :  { %4185 = vmatmul.bf16.gmra.mxu1 %v10808_v11  ;;  %4264 = vmatmul.bf16.gmra.mxu3 %v10808_v11  ;;  %v5915_v11 = vld [vmem:[%s10173_s5 + $0x10] sm:$0xff] }
 0x6d8   :  { %4718 = vmatpush.bf16.msra.mxu2 %v5915_v11  ;;  %v9868_v11 = vpop.f32.mrf.mxu0 }
 0x6da   :  { %v4225_v9 = vpop.f32.mrf.mxu3 }
 0x6db   :  { %v4226_v46 = vadd.f32 %v4225_v9, %v4137_v18 }
 0x6dc   :  { %v4148_v28 = vpop.f32.mrf.mxu1  ;;  %4719 = vmatpush.bf16.msra.mxu2 %v5914_v15  ;;  %v5934_v15 = vld [vmem:[%s10173_s5 + $0xa8] sm:$0xff] }
 0x6dd   :  { %4753 = vmatpush.bf16.msra.mxu0 %v5934_v15  ;;  %v4149_v4 = vadd.f32 %v4148_v28, %v9740_v48 }
 0x6e0   :  { %4720 = vmatpush.bf16.msra.mxu2 %v5913_v17  ;;  %v9886_v54 = vpop.f32.mrf.mxu0 }
 0x6e2   :  { %v4227_v52 = vpop.f32.mrf.mxu3 }
 0x6e3   :  { %v4228_v9 = vadd.f32 %v4227_v52, %v4139_v13 }
 0x6e4   :  { %v4151_v43 = vpop.f32.mrf.mxu1 }
 0x6e7   :  { %4190 = vmatmul.bf16.gmra.mxu1 %v8788_v47  ;;  %4269 = vmatmul.bf16.gmra.mxu3 %v8788_v47 }
 0x6ea   :  { %v4230_v58 = vpop.f32.mrf.mxu3 }
 0x6eb   :  { %v4231_v28 = vadd.f32 %v4230_v58, %v4142_v5 }
 0x6ec   :  { %v4153_v61 = vpop.f32.mrf.mxu1 }
 0x6f2   :  { %v4232_v47 = vpop.f32.mrf.mxu3 }
 0x6f4   :  { %v9861_v35 = vpop.f32.mrf.mxu1 }
 0x6f7   :  { %4195 = vmatmul.bf16.gmra.mxu1 %v10746_v0  ;;  %4274 = vmatmul.bf16.gmra.mxu3 %v10746_v0  ;;  %v10822_v0 = vld [vmem:[#allocation93_spill] sm:$0xff] }
 0x6f8   :  { %v10824_v19 = vmax.f32 %v10822_v0, %v10823_v21 }
 0x6fa   :  { %v4235_v17 = vpop.f32.mrf.mxu3 }
 0x6fb   :  { %v4236_v26 = vadd.f32 %v4235_v17, %v4147_v34  ;;  %v10825_v34 = vmax.f32 %v9420_v23, %v9486_v37  ;;  %v9904_v23 = vpop.f32.mrf.mxu0 }
 0x6fc   :  { %v9874_v8 = vpop.f32.mrf.mxu1 }
 0x6fd   :  { %v4306_v20 = vmax.f32 %v4226_v46, %v4236_v26  ;;  %v9889_v46 = vpop.f32.mrf.mxu2 }
 0x6ff   :  { %v4337_v41 = vmax.f32 %v10824_v19, %v4306_v20 }
 0x701   :  { %v4357_v18 = vadd.f32 %v9882_v51, %v4337_v41  ;;  %v4152_v41 = vadd.f32 %v4151_v43, %v9750_v10  ;;  %v4154_v43 = vadd.f32 %v4153_v61, %v9761_v42  ;;  %v10830_v42 = vld [vmem:[#allocation77_spill] sm:$0xff] }
 0x702   :  { %v4237_v27 = vpop.f32.mrf.mxu3 }
 0x703   :  { %v4238_v26 = vadd.f32 %v4237_v27, %v4149_v4  ;;  %v4373_v19 = vmax.f32 %v4357_v18, 0.0  ;;  %v3990_v31 = vpop.f32.mrf.mxu0 }
 0x704   :  { %v9891_v21 = vpop.f32.mrf.mxu1 }
 0x705   :  { %v4308_v20 = vmax.f32 %v4228_v9, %v4238_v26  ;;  %v4389_v59 = vpack.c.bf16 %v4373_v19, %v4373_v19  ;;  %v9906_v27 = vpop.f32.mrf.mxu2  ;;  %v4233_v26 = vadd.f32 %v4232_v47, %v4144_v32  ;;  %v5933_v47 = vld [vmem:[%s10173_s5 + $0xa0] sm:$0xff] }
 0x706   :  { %4754 = vmatpush.bf16.msra.mxu0 %v5933_v47  ;;  %v3989_v47 = vadd.f32 %v9904_v23, %v9647_v36  ;;  %v3991_v23 = vadd.f32 %v3990_v31, %v9657_v50 }
 0x707   :  { %v4338_v15 = vmax.f32 %v10825_v34, %v4308_v20  ;;  %4200 = vmatmul.bf16.gmra.mxu1 %v10751_v55  ;;  %4279 = vmatmul.bf16.gmra.mxu3 %v10751_v55  ;;  %v4409_v55 = vunpack.c.l.b16 %v4389_v59  ;;  %v5928_v34 = vld [vmem:[%s10173_s5 + $0x78] sm:$0xff] }
 0x708   :  { %4732 = vmatpush.bf16.msrb.mxu2 %v5928_v34 }
 0x709   :  { %v4358_v48 = vadd.f32 %v9882_v51, %v4338_v15 }
 0x70a   :  { %v4240_v52 = vpop.f32.mrf.mxu3 }
 0x70b   :  { %v4374_v17 = vmax.f32 %v4358_v48, 0.0  ;;  %v4241_v0 = vadd.f32 %v4240_v52, %v4152_v41  ;;  %v10828_v41 = vld [vmem:[#allocation110_spill] sm:$0xff]  ;;  %v5927_v48 = vld [vmem:[%s10173_s5 + $0x70] sm:$0xff]  ;;  %v3993_v32 = vpop.f32.mrf.mxu0 }
 0x70c   :  { %v9902_v13 = vpop.f32.mrf.mxu1  ;;  %v10829_v29 = vmax.f32 %v10827_v1, %v10828_v41  ;;  %4733 = vmatpush.bf16.msrb.mxu2 %v5927_v48  ;;  %v5922_v1 = vld [vmem:[%s10173_s5 + $0x48] sm:$0xff] }
 0x70d   :  { %v4390_v37 = vpack.c.bf16 %v4374_v17, %v4374_v17  ;;  %v4310_v4 = vmax.f32 %v4231_v28, %v4241_v0  ;;  %v4079_v52 = vpop.f32.mrf.mxu2 }
 0x70f   :  { %v4410_v9 = vunpack.c.l.b16 %v4390_v37  ;;  %v4339_v10 = vmax.f32 %v10826_v53, %v4310_v4  ;;  %v5926_v37 = vld [vmem:[%s10173_s5 + $0x68] sm:$0xff] }
 0x710   :  { %4734 = vmatpush.bf16.msrb.mxu2 %v5926_v37 }
 0x711   :  { %v4413_v58 = vpack.c.b16 %v4410_v9, %v4409_v55  ;;  %v4359_v20 = vadd.f32 %v9882_v51, %v4339_v10  ;;  %v5925_v10 = vld [vmem:[%s10173_s5 + $0x60] sm:$0xff] }
 0x712   :  { %v4242_v18 = vpop.f32.mrf.mxu3 }
 0x713   :  { %v4243_v19 = vadd.f32 %v4242_v18, %v4154_v43  ;;  %4721 = vmatmul.bf16.vlgmr.msra.gmra.mxu2 %v4413_v58  ;;  %v4375_v61 = vmax.f32 %v4359_v20, 0.0 }
 0x714   :  { %v4166_v15 = vpop.f32.mrf.mxu1  ;;  %4735 = vmatpush.bf16.msrb.mxu2 %v5925_v10 }
 0x715   :  { %v4312_v5 = vmax.f32 %v4233_v26, %v4243_v19  ;;  %v4391_v0 = vpack.c.bf16 %v4375_v61, %v4375_v61  ;;  %v4082_v58 = vpop.f32.mrf.mxu2  ;;  %v5924_v26 = vld [vmem:[%s10173_s5 + $0x58] sm:$0xff]  ;;  %v5923_v19 = vld [vmem:[%s10173_s5 + $0x50] sm:$0xff]  ;;  %v3979_v61 = vadd.f32 %v9842_v60, %v9599_v39 }
 0x716   :  { %v5932_v39 = vld [vmem:[%s10173_s5 + $0x98] sm:$0xff] }
 0x717   :  { %v4340_v3 = vmax.f32 %v10829_v29, %v4312_v5  ;;  %4205 = vmatmul.bf16.gmra.mxu1 %v10830_v42  ;;  %4284 = vmatmul.bf16.gmra.mxu3 %v10830_v42  ;;  %v4411_v9 = vunpack.c.l.b16 %v4391_v0  ;;  %v3995_v5 = vpop.f32.mrf.mxu0 }
 0x718   :  { %4736 = vmatpush.bf16.msrb.mxu2 %v5924_v26  ;;  %4755 = vmatpush.bf16.msra.mxu0 %v5932_v39  ;;  %v10835_v39 = vld [vmem:[#allocation84_spill] sm:$0xff] }
 0x719   :  { %v4360_v28 = vadd.f32 %v9882_v51, %v4340_v3  ;;  %v5921_v3 = vld [vmem:[%s10173_s5 + $0x40] sm:$0xff] }
 0x71a   :  { %v4245_v59 = vpop.f32.mrf.mxu3 }
 0x71b   :  { %v4376_v17 = vmax.f32 %v4360_v28, 0.0  ;;  %v4068_v28 = vadd.f32 %v9844_v2, %v3979_v61  ;;  %v3981_v2 = vadd.f32 %v9854_v33, %v9611_v25 }
 0x71c   :  { %v4168_v4 = vpop.f32.mrf.mxu1  ;;  %4737 = vmatpush.bf16.msrb.mxu2 %v5923_v19 }
 0x71d   :  { %v4392_v55 = vpack.c.bf16 %v4376_v17, %v4376_v17  ;;  %v4084_v41 = vpop.f32.mrf.mxu2  ;;  %v4078_v17 = vadd.f32 %v9906_v27, %v3989_v47  ;;  %v4157_v37 = vadd.f32 %v9861_v35, %v4068_v28  ;;  %v4080_v35 = vadd.f32 %v4079_v52, %v3991_v23  ;;  %v10834_v28 = vld [vmem:[#allocation76_spill] sm:$0xff] }
 0x71e   :  { %v3994_v52 = vadd.f32 %v3993_v32, %v9668_v45 }
 0x71f   :  { %v4412_v53 = vunpack.c.l.b16 %v4392_v55  ;;  %v9954_v42 = vpop.f32.mrf.mxu0  ;;  %v4167_v55 = vadd.f32 %v4166_v15, %v4078_v17  ;;  %v10831_v15 = vld [vmem:[#allocation100_spill] sm:$0xff]  ;;  %v4169_v19 = vadd.f32 %v4168_v4, %v4080_v35 }
 0x720   :  { %4738 = vmatpush.bf16.msrb.mxu2 %v5922_v1  ;;  %v10832_v10 = vmax.f32 %v9523_v12, %v10831_v15  ;;  %v4083_v61 = vadd.f32 %v4082_v58, %v3994_v52 }
 0x721   :  { %v4414_v43 = vpack.c.b16 %v4412_v53, %v4411_v9  ;;  %v4246_v9 = vadd.f32 %v4245_v59, %v4157_v37  ;;  %v4070_v53 = vadd.f32 %v9859_v49, %v3981_v2  ;;  %v3984_v49 = vadd.f32 %v9868_v11, %v9624_v56 }
 0x722   :  { %v4247_v18 = vpop.f32.mrf.mxu3 }
 0x723   :  { %4726 = vmatmul.bf16.gmra.mxu2 %v4414_v43  ;;  %v4159_v59 = vadd.f32 %v9874_v8, %v4070_v53  ;;  %v4073_v12 = vadd.f32 %v9872_v38, %v3984_v49  ;;  %v10833_v8 = vmax.f32 %v9546_v22, %v9602_v30  ;;  %v3986_v22 = vadd.f32 %v9886_v54, %v10835_v39  ;;  %v10837_v53 = vld [vmem:[#allocation112_spill] sm:$0xff]  ;;  %v5929_v39 = vld [vmem:[%s10173_s5 + $0x80] sm:$0xff] }
 0x724   :  { %v4171_v20 = vpop.f32.mrf.mxu1  ;;  %4739 = vmatpush.bf16.msrb.mxu2 %v5921_v3 }
 0x725   :  { %v9960_v48 = vpop.f32.mrf.mxu2  ;;  %v4248_v33 = vadd.f32 %v4247_v18, %v4159_v59  ;;  %v4162_v17 = vadd.f32 %v9891_v21, %v4073_v12  ;;  %v4172_v37 = vadd.f32 %v4171_v20, %v4083_v61  ;;  %v4075_v21 = vadd.f32 %v9889_v46, %v3986_v22 }
 0x727   :  { %4210 = vmatmul.bf16.gmra.mxu1 %v10762_v40  ;;  %4289 = vmatmul.bf16.gmra.mxu3 %v10762_v40  ;;  %v4164_v15 = vadd.f32 %v9902_v13, %v4075_v21  ;;  %v3999_v21 = vadd.f32 %v9954_v42, %v9691_v6 }
 0x72a   :  { %v4250_v34 = vpop.f32.mrf.mxu3 }
 0x72b   :  { %v4251_v32 = vadd.f32 %v4250_v34, %v4162_v17 }
 0x72c   :  { %v9947_v29 = vpop.f32.mrf.mxu1 }
 0x72d   :  { %v9980_v26 = vpop.f32.mrf.mxu2 }
 0x732   :  { %v9952_v40 = vpop.f32.mrf.mxu3 }
 0x734   :  { %v9965_v0 = vpop.f32.mrf.mxu1 }
 0x735   :  { %v9998_v11 = vpop.f32.mrf.mxu2 }
 0x737   :  { %4294 = vmatmul.bf16.gmra.mxu3 %v9151_v7  ;;  %v9974_v7 = vpop.f32.mrf.mxu0 }
 0x73a   :  { %v4255_v60 = vpop.f32.mrf.mxu3 }
 0x73b   :  { %v4256_v36 = vadd.f32 %v4255_v60, %v4167_v55  ;;  %v3996_v60 = vadd.f32 %v3995_v5, %v9678_v14  ;;  %v4253_v14 = vadd.f32 %v9952_v40, %v4164_v15 }
 0x73c   :  { %v9983_v1 = vpop.f32.mrf.mxu1 }
 0x73d   :  { %v4314_v27 = vmax.f32 %v4246_v9, %v4256_v36  ;;  %v4085_v20 = vadd.f32 %v4084_v41, %v3996_v60  ;;  %v10015_v41 = vpop.f32.mrf.mxu2 }
 0x73f   :  { %v4341_v43 = vmax.f32 %v10832_v10, %v4314_v27  ;;  %v9994_v18 = vpop.f32.mrf.mxu0  ;;  %v10836_v27 = vld [vmem:[#allocation102_spill] sm:$0xff]  ;;  %v4174_v10 = vadd.f32 %v9947_v29, %v4085_v20  ;;  %v10839_v29 = vld [vmem:[#allocation113_spill] sm:$0xff] }
 0x740   :  { %v10838_v34 = vmax.f32 %v10836_v27, %v10837_v53 }
 0x741   :  { %v4361_v50 = vadd.f32 %v9882_v51, %v4341_v43 }
 0x742   :  { %v4257_v25 = vpop.f32.mrf.mxu3 }
 0x743   :  { %v4258_v31 = vadd.f32 %v4257_v25, %v4169_v19  ;;  %v4377_v47 = vmax.f32 %v4361_v50, 0.0  ;;  %v5931_v25 = vld [vmem:[%s10173_s5 + $0x90] sm:$0xff] }
 0x744   :  { %v10002_v30 = vpop.f32.mrf.mxu1  ;;  %4756 = vmatpush.bf16.msra.mxu0 %v5931_v25 }
 0x745   :  { %v4316_v3 = vmax.f32 %v4248_v33, %v4258_v31  ;;  %v4393_v38 = vpack.c.bf16 %v4377_v47, %v4377_v47  ;;  %v10840_v33 = vld [vmem:[#allocation119_spill] sm:$0xff] }
 0x746   :  { %v10841_v50 = vmax.f32 %v10839_v29, %v10840_v33 }
 0x747   :  { %v4342_v4 = vmax.f32 %v10833_v8, %v4316_v3  ;;  %4299 = vmatmul.bf16.gmra.mxu3 %v10834_v28  ;;  %v4421_v2 = vunpack.c.l.b16 %v4393_v38  ;;  %v10011_v59 = vpop.f32.mrf.mxu0  ;;  %v4097_v8 = vpop.f32.mrf.mxu2 }
 0x749   :  { %v4362_v56 = vadd.f32 %v9882_v51, %v4342_v4 }
 0x74a   :  { %v4260_v45 = vpop.f32.mrf.mxu3 }
 0x74b   :  { %v4378_v58 = vmax.f32 %v4362_v56, 0.0  ;;  %v4261_v55 = vadd.f32 %v4260_v45, %v4172_v37 }
 0x74c   :  { %v10020_v13 = vpop.f32.mrf.mxu1 }
 0x74d   :  { %v4394_v9 = vpack.c.bf16 %v4378_v58, %v4378_v58  ;;  %v4318_v36 = vmax.f32 %v4251_v32, %v4261_v55  ;;  %v5930_v55 = vld [vmem:[%s10173_s5 + $0x88] sm:$0xff] }
 0x74e   :  { %4757 = vmatpush.bf16.msra.mxu0 %v5930_v55 }
 0x74f   :  { %v4422_v23 = vunpack.c.l.b16 %v4394_v9  ;;  %v4343_v35 = vmax.f32 %v10838_v34, %v4318_v36  ;;  %v4008_v61 = vpop.f32.mrf.mxu0  ;;  %v4099_v32 = vpop.f32.mrf.mxu2 }
 0x750   :  { %v4009_v20 = vadd.f32 %v4008_v61, %v9742_v24 }
 0x751   :  { %v4425_v54 = vpack.c.b16 %v4422_v23, %v4421_v2  ;;  %v4363_v5 = vadd.f32 %v9882_v51, %v4343_v35  ;;  %v4088_v2 = vadd.f32 %v9960_v48, %v3999_v21  ;;  %v10842_v48 = vld [vmem:[#allocation86_spill] sm:$0xff]  ;;  %v10849_v21 = vld [vmem:[#allocation8_spill] sm:$0xff] }
 0x752   :  { %v4262_v43 = vpop.f32.mrf.mxu3  ;;  %4758 = vmatpush.bf16.msra.mxu0 %v5929_v39  ;;  %v4098_v23 = vadd.f32 %v4097_v8, %v4009_v20  ;;  %v10850_v20 = vld [vmem:[#allocation10_spill] sm:$0xff] }
 0x753   :  { %v4263_v46 = vadd.f32 %v4262_v43, %v4174_v10  ;;  %4740 = vmatmul.bf16.vlgmr.msrb.gmra.mxu2 %v4425_v54  ;;  %v4379_v49 = vmax.f32 %v4363_v5, 0.0  ;;  %v4177_v27 = vadd.f32 %v9965_v0, %v4088_v2  ;;  %v4001_v43 = vadd.f32 %v9974_v7, %v9703_v63 }
 0x754   :  { %v4186_v17 = vpop.f32.mrf.mxu1 }
 0x755   :  { %v4320_v19 = vmax.f32 %v4253_v14, %v4263_v46  ;;  %v4395_v12 = vpack.c.bf16 %v4379_v49, %v4379_v49  ;;  %v4187_v53 = vadd.f32 %v4186_v17, %v4098_v23  ;;  %v4090_v24 = vadd.f32 %v9980_v26, %v4001_v43 }
 0x756   :  { %v10843_v46 = vmax.f32 %v9639_v44, %v10842_v48 }
 0x757   :  { %v4344_v31 = vmax.f32 %v10841_v50, %v4320_v19  ;;  %v4423_v4 = vunpack.c.l.b16 %v4395_v12  ;;  %v4010_v45 = vpop.f32.mrf.mxu0  ;;  %v4102_v60 = vpop.f32.mrf.mxu2  ;;  %v4179_v19 = vadd.f32 %v9983_v1, %v4090_v24 }
 0x758   :  { %v4011_v14 = vadd.f32 %v4010_v45, %v9752_v57  ;;  %v4004_v57 = vadd.f32 %v9994_v18, %v9716_v62  ;;  %v10848_v45 = vld [vmem:[#allocation16_spill] sm:$0xff] }
 0x759   :  { %v4364_v40 = vadd.f32 %v9882_v51, %v4344_v31 }
 0x75a   :  { %v4265_v52 = vpop.f32.mrf.mxu3  ;;  %v4100_v42 = vadd.f32 %v4099_v32, %v4011_v14  ;;  %v4093_v44 = vadd.f32 %v9998_v11, %v4004_v57  ;;  %v10852_v14 = vld [vmem:[#allocation14_spill] sm:$0xff] }
 0x75b   :  { %v4380_v3 = vmax.f32 %v4364_v40, 0.0  ;;  %v4266_v15 = vadd.f32 %v4265_v52, %v4177_v27  ;;  %v10844_v52 = vld [vmem:[#allocation92_spill] sm:$0xff] }
 0x75c   :  { %v4188_v38 = vpop.f32.mrf.mxu1  ;;  %v4182_v8 = vadd.f32 %v10002_v30, %v4093_v44 }
 0x75d   :  { %v4396_v47 = vpack.c.bf16 %v4380_v3, %v4380_v3  ;;  %v4189_v25 = vadd.f32 %v4188_v38, %v4100_v42  ;;  %v10845_v3 = vld [vmem:[#allocation95_spill] sm:$0xff] }
 0x75e   :  { %v10846_v12 = vmax.f32 %v10844_v52, %v10845_v3 }
 0x75f   :  { %v4424_v28 = vunpack.c.l.b16 %v4396_v47  ;;  %v4013_v22 = vpop.f32.mrf.mxu0  ;;  %v4104_v54 = vpop.f32.mrf.mxu2 }
 0x760   :  { %v4014_v7 = vadd.f32 %v4013_v22, %v9763_v16 }
 0x761   :  { %v4426_v37 = vpack.c.b16 %v4424_v28, %v4423_v4 }
 0x762   :  { %v4267_v56 = vpop.f32.mrf.mxu3  ;;  %v4103_v40 = vadd.f32 %v4102_v60, %v4014_v7  ;;  %v5941_v7 = vld [vmem:[%s10173_s5 + $0xe0] sm:$0xff] }
 0x763   :  { %4745 = vmatmul.bf16.gmra.mxu2 %v4426_v37  ;;  %v4268_v33 = vadd.f32 %v4267_v56, %v4179_v19  ;;  %v10847_v56 = vld [vmem:[#allocation88_spill] sm:$0xff] }
 0x764   :  { %v4191_v36 = vpop.f32.mrf.mxu1  ;;  %v4006_v11 = vadd.f32 %v10011_v59, %v10847_v56  ;;  %v10856_v56 = vld [vmem:[#allocation121_spill] sm:$0xff] }
 0x765   :  { %v4192_v4 = vadd.f32 %v4191_v36, %v4103_v40 }
 0x766   :  { %v4095_v39 = vadd.f32 %v10015_v41, %v4006_v11 }
 0x767   :  { %v4015_v35 = vpop.f32.mrf.mxu0  ;;  %v10051_v49 = vpop.f32.mrf.mxu2 }
 0x768   :  { %v4016_v32 = vadd.f32 %v4015_v35, %v10848_v45  ;;  %v4184_v27 = vadd.f32 %v10020_v13, %v4095_v39  ;;  %v5943_v13 = vld [vmem:[%s10173_s5 + $0xf0] sm:$0xff] }
 0x76a   :  { %v4270_v58 = vpop.f32.mrf.mxu3  ;;  %v4105_v30 = vadd.f32 %v4104_v54, %v4016_v32  ;;  %v5944_v54 = vld [vmem:[%s10173_s5 + $0xf8] sm:$0xff] }
 0x76b   :  { %v4271_v16 = vadd.f32 %v4270_v58, %v4182_v8  ;;  %v10851_v58 = vmax.f32 %v10849_v21, %v10850_v20  ;;  %4770 = vmatpush.bf16.msra.mxu2 %v5944_v54  ;;  %v5938_v8 = vld [vmem:[%s10173_s5 + $0xc8] sm:$0xff] }
 0x76c   :  { %v4193_v6 = vpop.f32.mrf.mxu1 }
 0x76d   :  { %v4194_v59 = vadd.f32 %v4193_v6, %v4105_v30 }
 0x76f   :  { %v10046_v63 = vpop.f32.mrf.mxu0  ;;  %v10070_v23 = vpop.f32.mrf.mxu2  ;;  %4771 = vmatpush.bf16.msra.mxu2 %v5943_v13 }
 0x772   :  { %v4272_v9 = vpop.f32.mrf.mxu3 }
 0x774   :  { %v10057_v47 = vpop.f32.mrf.mxu1 }
 0x777   :  { %v10065_v22 = vpop.f32.mrf.mxu0 }
 0x77a   :  { %v4275_v34 = vpop.f32.mrf.mxu3 }
 0x77b   :  { %v4276_v10 = vadd.f32 %v4275_v34, %v4187_v53 }
 0x77c   :  { %v10073_v34 = vpop.f32.mrf.mxu1 }
 0x77d   :  { %v4322_v5 = vmax.f32 %v4266_v15, %v4276_v10  ;;  %v4273_v15 = vadd.f32 %v4272_v9, %v4184_v27  ;;  %v10858_v27 = vld [vmem:[#allocation124_spill] sm:$0xff] }
 0x77f   :  { %v4345_v0 = vmax.f32 %v10843_v46, %v4322_v5  ;;  %v10853_v5 = vld [vmem:[#allocation15_spill] sm:$0xff]  ;;  %v4023_v9 = vpop.f32.mrf.mxu0  ;;  %v4112_v46 = vpop.f32.mrf.mxu2 }
 0x780   :  { %v10854_v6 = vmax.f32 %v10852_v14, %v10853_v5 }
 0x781   :  { %v4365_v50 = vadd.f32 %v9882_v51, %v4345_v0 }
 0x782   :  { %v4277_v29 = vpop.f32.mrf.mxu3 }
 0x783   :  { %v4278_v31 = vadd.f32 %v4277_v29, %v4189_v25  ;;  %v4381_v1 = vmax.f32 %v4365_v50, 0.0  ;;  %v5942_v29 = vld [vmem:[%s10173_s5 + $0xe8] sm:$0xff] }
 0x784   :  { %4772 = vmatpush.bf16.msra.mxu2 %v5942_v29 }
 0x785   :  { %v4324_v26 = vmax.f32 %v4268_v33, %v4278_v31  ;;  %v4397_v28 = vpack.c.bf16 %v4381_v1, %v4381_v1  ;;  %v4201_v33 = vpop.f32.mrf.mxu1  ;;  %v5940_v1 = vld [vmem:[%s10173_s5 + $0xd8] sm:$0xff] }
 0x787   :  { %v4346_v61 = vmax.f32 %v10846_v12, %v4324_v26  ;;  %v4433_v60 = vunpack.c.l.b16 %v4397_v28  ;;  %v4025_v40 = vpop.f32.mrf.mxu0  ;;  %v4114_v52 = vpop.f32.mrf.mxu2  ;;  %v5939_v12 = vld [vmem:[%s10173_s5 + $0xd0] sm:$0xff] }
 0x788   :  { %4773 = vmatpush.bf16.msra.mxu2 %v5941_v7 }
 0x789   :  { %v4366_v62 = vadd.f32 %v9882_v51, %v4346_v61 }
 0x78a   :  { %v4280_v18 = vpop.f32.mrf.mxu3 }
 0x78b   :  { %v4382_v17 = vmax.f32 %v4366_v62, 0.0  ;;  %v4281_v37 = vadd.f32 %v4280_v18, %v4192_v4  ;;  %v5937_v18 = vld [vmem:[%s10173_s5 + $0xc0] sm:$0xff] }
 0x78c   :  { %4774 = vmatpush.bf16.msra.mxu2 %v5940_v1 }
 0x78d   :  { %v4398_v38 = vpack.c.bf16 %v4382_v17, %v4382_v17  ;;  %v4326_v55 = vmax.f32 %v4271_v16, %v4281_v37  ;;  %v10095_v3 = vpop.f32.mrf.mxu1  ;;  %v10855_v17 = vld [vmem:[#allocation35_spill] sm:$0xff] }
 0x78e   :  { %v4019_v37 = vadd.f32 %v10046_v63, %v10855_v17 }
 0x78f   :  { %v4434_v36 = vunpack.c.l.b16 %v4398_v38  ;;  %v4347_v2 = vmax.f32 %v10851_v58, %v4326_v55  ;;  %v4028_v4 = vpop.f32.mrf.mxu0  ;;  %v4117_v62 = vpop.f32.mrf.mxu2  ;;  %v10857_v58 = vld [vmem:[#allocation101_spill] sm:$0xff] }
 0x790   :  { %4775 = vmatpush.bf16.msra.mxu2 %v5939_v12  ;;  %v4029_v11 = vadd.f32 %v4028_v4, %v10856_v56  ;;  %v4108_v32 = vadd.f32 %v10051_v49, %v4019_v37  ;;  %v10860_v49 = vld [vmem:[#allocation118_spill] sm:$0xff] }
 0x791   :  { %v4437_v53 = vpack.c.b16 %v4434_v36, %v4433_v60  ;;  %v4367_v41 = vadd.f32 %v9882_v51, %v4347_v2  ;;  %v4021_v2 = vadd.f32 %v10065_v22, %v10857_v58 }
 0x792   :  { %v4282_v35 = vpop.f32.mrf.mxu3  ;;  %v4118_v38 = vadd.f32 %v4117_v62, %v4029_v11  ;;  %v4197_v39 = vadd.f32 %v10057_v47, %v4108_v32 }
 0x793   :  { %v4283_v10 = vadd.f32 %v4282_v35, %v4194_v59  ;;  %4759 = vmatmul.bf16.vlgmr.msra.gmra.mxu0 %v4437_v53  ;;  %v4383_v42 = vmax.f32 %v4367_v41, 0.0  ;;  %v4110_v53 = vadd.f32 %v10070_v23, %v4021_v2 }
 0x794   :  { %4776 = vmatpush.bf16.msra.mxu2 %v5938_v8 }
 0x795   :  { %v4328_v43 = vmax.f32 %v4273_v15, %v4283_v10  ;;  %v4399_v25 = vpack.c.bf16 %v4383_v42, %v4383_v42  ;;  %v4206_v16 = vpop.f32.mrf.mxu1  ;;  %v10859_v15 = vld [vmem:[#allocation99_spill] sm:$0xff]  ;;  %v4199_v47 = vadd.f32 %v10073_v34, %v4110_v53  ;;  %v10862_v42 = vld [vmem:[#allocation125_spill] sm:$0xff] }
 0x796   :  { %v4207_v30 = vadd.f32 %v4206_v16, %v4118_v38  ;;  %v10861_v41 = vmax.f32 %v10859_v15, %v10860_v49  ;;  %v10867_v16 = vld [vmem:[#allocation17_spill] sm:$0xff] }
 0x797   :  { %v4348_v24 = vmax.f32 %v10854_v6, %v4328_v43  ;;  %v4435_v31 = vunpack.c.l.b16 %v4399_v25  ;;  %v4030_v45 = vpop.f32.mrf.mxu0  ;;  %v4119_v55 = vpop.f32.mrf.mxu2  ;;  %v4026_v17 = vadd.f32 %v4025_v40, %v10867_v16  ;;  %v10873_v53 = vld [vmem:[#allocation13_spill] sm:$0xff] }
 0x798   :  { %4777 = vmatpush.bf16.msra.mxu2 %v5937_v18  ;;  %v4031_v59 = vadd.f32 %v4030_v45, %v10858_v27 }
 0x799   :  { %v4368_v48 = vadd.f32 %v9882_v51, %v4348_v24  ;;  %v4115_v32 = vadd.f32 %v4114_v52, %v4026_v17  ;;  %v10872_v52 = vld [vmem:[#allocation11_spill] sm:$0xff] }
 0x79a   :  { %v4285_v0 = vpop.f32.mrf.mxu3  ;;  %v4120_v35 = vadd.f32 %v4119_v55, %v4031_v59 }
 0x79b   :  { %v4384_v19 = vmax.f32 %v4368_v48, 0.0  ;;  %v4286_v21 = vadd.f32 %v4285_v0, %v4197_v39  ;;  %v4024_v48 = vadd.f32 %v4023_v9, %v10862_v42  ;;  %v10863_v0 = vld [vmem:[#allocation115_spill] sm:$0xff] }
 0x79d   :  { %v4400_v50 = vpack.c.bf16 %v4384_v19, %v4384_v19  ;;  %v4208_v60 = vpop.f32.mrf.mxu1  ;;  %v4113_v25 = vadd.f32 %v4112_v46, %v4024_v48  ;;  %v10868_v46 = vld [vmem:[#allocation19_spill] sm:$0xff] }
 0x79e   :  { %v4209_v43 = vadd.f32 %v4208_v60, %v4120_v35  ;;  %v10870_v60 = vld [vmem:[#allocation120_spill] sm:$0xff]  ;;  %v10874_v35 = vmax.f32 %v10872_v52, %v10873_v53 }
 0x79f   :  { %v4436_v57 = vunpack.c.l.b16 %v4400_v50  ;;  %v4033_v54 = vpop.f32.mrf.mxu0  ;;  %v4122_v13 = vpop.f32.mrf.mxu2 }
 0x7a0   :  { %v4034_v23 = vadd.f32 %v4033_v54, %v10863_v0 }
 0x7a1   :  { %v4438_v26 = vpack.c.b16 %v4436_v57, %v4435_v31  ;;  %v10864_v31 = vld [vmem:[#allocation116_spill] sm:$0xff]  ;;  %v10865_v57 = vld [vmem:[#allocation90_spill] sm:$0xff] }
 0x7a2   :  { %v4287_v44 = vpop.f32.mrf.mxu3  ;;  %v4123_v29 = vadd.f32 %v4122_v13, %v4034_v23  ;;  %v10866_v7 = vmax.f32 %v10864_v31, %v10865_v57  ;;  %v5956_v57 = vld [vmem:[%s10175_s6] ss:$0 sm:$0xff] }
 0x7a3   :  { %4764 = vmatmul.bf16.gmra.mxu0 %v4438_v26  ;;  %v4288_v5 = vadd.f32 %v4287_v44, %v4199_v47  ;;  %v4202_v26 = vadd.f32 %v4201_v33, %v4113_v25 }
 0x7a5   :  { %v4211_v24 = vpop.f32.mrf.mxu1 }
 0x7a6   :  { %v4212_v1 = vadd.f32 %v4211_v24, %v4123_v29  ;;  %v5946_v24 = vld [vmem:[%s10177_s7 + $0x8] sm:$0xff] }
 0x7a7   :  { %v4035_v9 = vpop.f32.mrf.mxu0  ;;  %v4124_v37 = vpop.f32.mrf.mxu2 }
 0x7a8   :  { %v4036_v56 = vadd.f32 %v4035_v9, %v10868_v46 }
 0x7aa   :  { %v4290_v61 = vpop.f32.mrf.mxu3  ;;  %v4125_v55 = vadd.f32 %v4124_v37, %v4036_v56 }
 0x7ab   :  { %v4291_v8 = vadd.f32 %v4290_v61, %v4202_v26 }
 0x7ad   :  { %v4213_v38 = vpop.f32.mrf.mxu1 }
 0x7b2   :  { %v4292_v28 = vpop.f32.mrf.mxu3 }
 0x7ba   :  { %v4295_v36 = vpop.f32.mrf.mxu3 }
 0x7bb   :  { %v4296_v20 = vadd.f32 %v4295_v36, %v4207_v30  ;;  %v10869_v30 = vld [vmem:[#allocation123_spill] sm:$0xff] }
 0x7bc   :  { %v10871_v36 = vmax.f32 %v10869_v30, %v10870_v60 }
 0x7bd   :  { %v4330_v63 = vmax.f32 %v4286_v21, %v4296_v20  ;;  %v4204_v21 = vadd.f32 %v10095_v3, %v4115_v32  ;;  %v4214_v20 = vadd.f32 %v4213_v38, %v4125_v55 }
 0x7bf   :  { %v4349_v10 = vmax.f32 %v10861_v41, %v4330_v63  ;;  %v4293_v40 = vadd.f32 %v4292_v28, %v4204_v21  ;;  %v4801_v28 = vld [vmem:[%s10177_s7 + $0x18] sm:$0x1] }
 0x7c1   :  { %v4369_v6 = vadd.f32 %v9882_v51, %v4349_v10 }
 0x7c2   :  { %v4297_v14 = vpop.f32.mrf.mxu3 }
 0x7c3   :  { %v4298_v22 = vadd.f32 %v4297_v14, %v4209_v43  ;;  %v4385_v50 = vmax.f32 %v4369_v6, 0.0  ;;  %v4722_v14 = vpop.f32.mrf.mxu2 }
 0x7c4   :  { %v4723_v26 = vadd.f32 %v5956_v57, %v4722_v14 }
 0x7c5   :  { %v4332_v19 = vmax.f32 %v4288_v5, %v4298_v22  ;;  %v4401_v4 = vpack.c.bf16 %v4385_v50, %v4385_v50  ;;  %v4819_v5 = vunpack.c.l.b16 %v4801_v28 }
 0x7c7   :  { %v4350_v34 = vmax.f32 %v10866_v7, %v4332_v19  ;;  %v4445_v33 = vunpack.c.l.b16 %v4401_v4  ;;  %v4823_v6 = vpack.c.b16 %v4819_v5, %v4819_v5  ;;  %v5945_v19 = vld [vmem:[%s10177_s7] sm:$0xff] }
 0x7c9   :  { %v4370_v44 = vadd.f32 %v9882_v51, %v4350_v34  ;;  %v4836_v22 = vsel %vm4834_vm6, %v4823_v6, 0 }
 0x7ca   :  { %v4300_v12 = vpop.f32.mrf.mxu3  ;;  %4842 = vmatpush.bf16.msrb.mxu0 %v4836_v22 }
 0x7cb   :  { %v4386_v62 = vmax.f32 %v4370_v44, 0.0  ;;  %v4301_v18 = vadd.f32 %v4300_v12, %v4212_v1  ;;  %v4724_v42 = vpop.f32.mrf.mxu2 }
 0x7cc   :  { %v4725_v1 = vadd.f32 %v5956_v57, %v4724_v42 }
 0x7cd   :  { %v4402_v11 = vpack.c.bf16 %v4386_v62, %v4386_v62  ;;  %v4334_v45 = vmax.f32 %v4291_v8, %v4301_v18 }
 0x7cf   :  { %v4446_v39 = vunpack.c.l.b16 %v4402_v11  ;;  %v4351_v61 = vmax.f32 %v10871_v36, %v4334_v45 }
 0x7d1   :  { %v4449_v58 = vpack.c.b16 %v4446_v39, %v4445_v33  ;;  %v4371_v27 = vadd.f32 %v9882_v51, %v4351_v61 }
 0x7d2   :  { %v4302_v2 = vpop.f32.mrf.mxu3 }
 0x7d3   :  { %v4303_v59 = vadd.f32 %v4302_v2, %v4214_v20  ;;  %4778 = vmatmul.bf16.vlgmr.msra.gmra.mxu2 %v4449_v58  ;;  %v4387_v49 = vmax.f32 %v4371_v27, 0.0  ;;  %v4727_v48 = vpop.f32.mrf.mxu2  ;;  %v5957_v58 = vld [vmem:[%s10176_s8] ss:$0 sm:$0xff] }
 0x7d4   :  { %v4728_v11 = vadd.f32 %v5956_v57, %v4727_v48 }
 0x7d5   :  { %v4336_v63 = vmax.f32 %v4293_v40, %v4303_v59  ;;  %v4403_v54 = vpack.c.bf16 %v4387_v49, %v4387_v49 }
 0x7d7   :  { %v4352_v15 = vmax.f32 %v10874_v35, %v4336_v63  ;;  %v4447_v3 = vunpack.c.l.b16 %v4403_v54 }
 0x7d9   :  { %v4372_v41 = vadd.f32 %v9882_v51, %v4352_v15  ;;  %v5947_v51 = vld [vmem:[%s10177_s7 + $0x10] sm:$0xff] }
 0x7da   :  { %4843 = vmatpush.bf16.msrb.mxu0 %v5947_v51 }
 0x7db   :  { %v4388_v10 = vmax.f32 %v4372_v41, 0.0  ;;  %v4729_v0 = vpop.f32.mrf.mxu2 }
 0x7dc   :  { %v4730_v45 = vadd.f32 %v5956_v57, %v4729_v0 }
 0x7dd   :  { %v4404_v47 = vpack.c.bf16 %v4388_v10, %v4388_v10 }
 0x7de   :  { %4844 = vmatpush.bf16.msrb.mxu0 %v5946_v24 }
 0x7df   :  { %v4448_v43 = vunpack.c.l.b16 %v4404_v47 }
 0x7e1   :  { %v4450_v13 = vpack.c.b16 %v4448_v43, %v4447_v3 }
 0x7e2   :  { %4845 = vmatpush.bf16.msrb.mxu0 %v5945_v19 }
 0x7e3   :  { %4783 = vmatmul.bf16.gmra.mxu2 %v4450_v13  ;;  %v4741_v23 = vpop.f32.mrf.mxu2 }
 0x7e4   :  { %v4742_v44 = vadd.f32 %v4741_v23, %v4723_v26 }
 0x7eb   :  { %v4743_v25 = vpop.f32.mrf.mxu2 }
 0x7ec   :  { %v4744_v12 = vadd.f32 %v4743_v25, %v4725_v1 }
 0x7f3   :  { %v4746_v29 = vpop.f32.mrf.mxu2 }
 0x7f4   :  { %v4747_v32 = vadd.f32 %v4746_v29, %v4728_v11 }
 0x7fb   :  { %v4748_v31 = vpop.f32.mrf.mxu2 }
 0x7fc   :  { %v4749_v55 = vadd.f32 %v4748_v31, %v4730_v45 }
 0x810   :  { %v4760_v50 = vpop.f32.mrf.mxu0 }
 0x811   :  { %v4761_v8 = vadd.f32 %v4760_v50, %v4742_v44 }
 0x818   :  { %v4762_v7 = vpop.f32.mrf.mxu0 }
 0x819   :  { %v4763_v4 = vadd.f32 %v4762_v7, %v4744_v12 }
 0x820   :  { %v4765_v16 = vpop.f32.mrf.mxu0 }
 0x821   :  { %v4766_v33 = vadd.f32 %v4765_v16, %v4747_v32 }
 0x828   :  { %v4767_v38 = vpop.f32.mrf.mxu0 }
 0x829   :  { %v4768_v39 = vadd.f32 %v4767_v38, %v4749_v55 }
 0x856   :  { %v4779_v34 = vpop.f32.mrf.mxu2 }
 0x857   :  { %v4780_v62 = vadd.f32 %v4779_v34, %v4761_v8 }
 0x859   :  { %v4789_v17 = vmax.f32 %v4780_v62, 0.0 }
 0x85e   :  { %v4781_v18 = vpop.f32.mrf.mxu2 }
 0x85f   :  { %v4782_v9 = vadd.f32 %v4781_v18, %v4763_v4 }
 0x861   :  { %v4790_v37 = vmax.f32 %v4782_v9, 0.0 }
 0x863   :  { %v4793_v46 = vpack.c.bf16 %v4790_v37, %v4789_v17 }
 0x865   :  { %5757 = vmatmul.msk.bf16.vlgmr.msrb.gmra.mxu0 %vm4827_vm7, %v4793_v46 }
 0x866   :  { %v4784_v56 = vpop.f32.mrf.mxu2 }
 0x867   :  { %v4785_v30 = vadd.f32 %v4784_v56, %v4766_v33 }
 0x869   :  { %v4791_v61 = vmax.f32 %v4785_v30, 0.0 }
 0x86e   :  { %v4786_v60 = vpop.f32.mrf.mxu2 }
 0x86f   :  { %v4787_v36 = vadd.f32 %v4786_v60, %v4768_v39 }
 0x871   :  { %v4792_v21 = vmax.f32 %v4787_v36, 0.0 }
 0x873   :  { %v4794_v20 = vpack.c.bf16 %v4792_v21, %v4791_v61 }
 0x875   :  { %5758 = vmatmul.msk.bf16.gmra.mxu0 %vm4827_vm7, %v4794_v20 }
 0x8e2   :  { %v4847_v2 = vpop.f32.mrf.mxu0 }
 0x8e3   :  { %v4848_v40 = vadd.f32 %v5957_v58, %v4847_v2 }
 0x8e5   :  { %4857 = vmax.xlane.f32.xlu0 %v4848_v40 }
 0x8ea   :  { %v4849_v27 = vpop.f32.mrf.mxu0 }
 0x8eb   :  { %v4850_v59 = vadd.f32 %v5957_v58, %v4849_v27 }
 0x8ed   :  { %4859 = vmax.xlane.f32.xlu1 %v4850_v59 }
 0x8f2   :  { %v4852_v63 = vpop.f32.mrf.mxu0 }
 0x8f3   :  { %v4853_v52 = vadd.f32 %v5957_v58, %v4852_v63 }
 0x8f5   :  { %4861 = vmax.xlane.f32.xlu2 %v4853_v52 }
 0x8fa   :  { %v4854_v53 = vpop.f32.mrf.mxu0 }
 0x8fb   :  { %v4855_v35 = vadd.f32 %v5957_v58, %v4854_v53 }
 0x8fd   :  { %4863 = vmax.xlane.f32.xlu2 %v4855_v35 }
 0x958   :  { %v4858_v15 = vpop.xlane.xlu0 %4857 }
 0x959   :  { %v4865_v49 = vsub.f32 %v4848_v40, %v4858_v15 }
 0x95b   :  { %v4869_v41 = vmul.f32 1.442695, %v4865_v49 }
 0x95d   :  { %5958 = vpow2.f32 %v4869_v41 }
 0x960   :  { %v4860_v10 = vpop.xlane.xlu1 %4859 }
 0x961   :  { %v4866_v54 = vsub.f32 %v4850_v59, %v4860_v10 }
 0x963   :  { %v5959_v47 = vpop.eup %5958  ;;  %v4871_v3 = vmul.f32 1.442695, %v4866_v54 }
 0x964   :  { %4877 = vadd.xlane.f32.xlu0 %v5959_v47 }
 0x965   :  { %5960 = vpow2.f32 %v4871_v3 }
 0x968   :  { %v4862_v43 = vpop.xlane.xlu2 %4861 }
 0x969   :  { %v4867_v13 = vsub.f32 %v4853_v52, %v4862_v43 }
 0x96b   :  { %v5961_v28 = vpop.eup %5960  ;;  %v4873_v14 = vmul.f32 1.442695, %v4867_v13 }
 0x96c   :  { %4879 = vadd.xlane.f32.xlu1 %v5961_v28 }
 0x96d   :  { %5962 = vpow2.f32 %v4873_v14 }
 0x970   :  { %v4864_v5 = vpop.xlane.xlu2 %4863 }
 0x971   :  { %v4868_v6 = vsub.f32 %v4855_v35, %v4864_v5 }
 0x973   :  { %v5963_v22 = vpop.eup %5962  ;;  %v4875_v51 = vmul.f32 1.442695, %v4868_v6 }
 0x974   :  { %4881 = vadd.xlane.f32.xlu2 %v5963_v22 }
 0x975   :  { %5964 = vpow2.f32 %v4875_v51 }
 0x97b   :  { %v5965_v24 = vpop.eup %5964 }
 0x97c   :  { %4883 = vadd.xlane.f32.xlu0 %v5965_v24 }
 0x9d7   :  { %v4878_v42 = vpop.xlane.xlu0 %4877 }
 0x9d8   :  { %5966 = vlog2.f32 %v4878_v42 }
 0x9de   :  { %v5967_v48 = vpop.eup %5966 }
 0x9df   :  { %v4886_v0 = vmul.f32 0.6931472, %v5967_v48  ;;  %v4880_v23 = vpop.xlane.xlu1 %4879 }
 0x9e0   :  { %5968 = vlog2.f32 %v4880_v23 }
 0x9e1   :  { %v4893_v19 = vsub.f32 %v4865_v49, %v4886_v0 }
 0x9e3   :  { %4897 = vst [vmem:[%s10178_s9] sm:$0xff] %v4893_v19 }
 0x9e6   :  { %v5969_v25 = vpop.eup %5968 }
 0x9e7   :  { %v4888_v29 = vmul.f32 0.6931472, %v5969_v25  ;;  %v4882_v50 = vpop.xlane.xlu2 %4881 }
 0x9e8   :  { %5970 = vlog2.f32 %v4882_v50 }
 0x9e9   :  { %v4894_v31 = vsub.f32 %v4866_v54, %v4888_v29 }
 0x9eb   :  { %4898 = vst [vmem:[%s10178_s9 + $0x8] sm:$0xff] %v4894_v31 }
 0x9ee   :  { %v5971_v57 = vpop.eup %5970 }
 0x9ef   :  { %v4890_v7 = vmul.f32 0.6931472, %v5971_v57  ;;  %v4884_v34 = vpop.xlane.xlu0 %4883 }
 0x9f0   :  { %5972 = vlog2.f32 %v4884_v34 }
 0x9f1   :  { %v4895_v26 = vsub.f32 %v4867_v13, %v4890_v7 }
 0x9f3   :  { %4899 = vst [vmem:[%s10178_s9 + $0x10] sm:$0xff] %v4895_v26 }
 0x9f6   :  { %v5973_v1 = vpop.eup %5972 }
 0x9f7   :  { %v4892_v44 = vmul.f32 0.6931472, %v5973_v1 }
 0x9f9   :  { %v4896_v12 = vsub.f32 %v4868_v6, %v4892_v44 }
 0x9fb   :  { %4900 = vst [vmem:[%s10178_s9 + $0x18] sm:$0xff] %v4896_v12 }

</bundles_post_ra>
